<compile_context>
chip_gen: v7x
topology: tpu7x:2x2x1
jax: 0.10.0
libtpu: 0.0.40
codegen_flags: <defaults>
</compile_context>

<pallas_src>
import functools

import jax
import jax.numpy as jnp
from jax.experimental import pallas as pl
from jax.experimental.pallas import tpu as pltpu

LN_EPS = 1e-5  # torch.nn.LayerNorm default


def _layernorm(x, gamma, beta):
    """LayerNorm over last axis (biased variance, eps inside rsqrt) — matches torch."""
    mu = jnp.mean(x, axis=-1, keepdims=True)
    xc = x - mu
    var = jnp.mean(xc * xc, axis=-1, keepdims=True)
    return xc * jax.lax.rsqrt(var + LN_EPS) * gamma + beta


# --------------------------------- kernel ------------------------------------

def _attention_kernel(x_ref, g_ref, b_ref, wqkv_ref, wout_ref, o_ref, *,
                      heads, dim_head, block_q, matmul_dtype):
    # x_ref:    (1, N, dim)        f32
    # wqkv_ref: (dim, 3*inner)     bf16   (1/sqrt(dh) folded into the Q columns)
    # wout_ref: (inner, dim)       bf16
    # o_ref:    (1, block_q, dim)
    n = x_ref.shape[1]
    inner = heads * dim_head

    g = g_ref[0]                                        # (dim,)
    b = b_ref[0]

    x_full = x_ref[0]                                   # (N, dim) f32
    xn_full = _layernorm(x_full, g, b)                  # (N, dim) f32

    if block_q == n:
        # Single query tile: ONE flat full-depth QKV matmul (K = dim, RHS 3*inner wide).
        qkv = jnp.dot(xn_full.astype(matmul_dtype), wqkv_ref[...],
                      preferred_element_type=jnp.float32)           # (N, 3*inner) f32
        q_flat = qkv[:, :inner]
        k_flat = qkv[:, inner:2 * inner]
        v_flat = qkv[:, 2 * inner:]
    else:
        # Query-tiled: K/V from the full sequence, Q from this query tile only.
        kv = jnp.dot(xn_full.astype(matmul_dtype), wqkv_ref[:, inner:],
                     preferred_element_type=jnp.float32)            # (N, 2*inner) f32
        k_flat = kv[:, :inner]
        v_flat = kv[:, inner:]
        q_start = pl.multiple_of(pl.program_id(1) * block_q, block_q)
        x_q = x_ref[0, pl.ds(q_start, block_q), :]                  # (bq, dim) f32
        xn_q = _layernorm(x_q, g, b)
        q_flat = jnp.dot(xn_q.astype(matmul_dtype), wqkv_ref[:, :inner],
                         preferred_element_type=jnp.float32)        # (bq, inner) f32

    # Split the lane axis into heads with static lane slices (cheap relayout).
    def to_heads(t):                                    # (rows, inner) -> (H, rows, dh)
        return jnp.stack(
            [t[:, h * dim_head:(h + 1) * dim_head] for h in range(heads)], axis=0)

    q = to_heads(q_flat).astype(matmul_dtype)           # (H, bq, dh)
    k = to_heads(k_flat).astype(matmul_dtype)           # (H, N,  dh)
    v = to_heads(v_flat).astype(matmul_dtype)           # (H, N,  dh)

    # Scores (scale already folded into Wq); softmax in f32, divide on the EUP slot.
    dots = jnp.einsum('hqd,hkd->hqk', q, k,
                      preferred_element_type=jnp.float32)            # (H, bq, N) f32
    dots = dots - jnp.max(dots, axis=-1, keepdims=True)
    e = jnp.exp(dots)
    attn = e * pl.reciprocal(jnp.sum(e, axis=-1, keepdims=True), approx=True)

    out = jnp.einsum('hqk,hkd->hqd', attn.astype(matmul_dtype), v,
                     preferred_element_type=jnp.float32)             # (H, bq, dh) f32

    # Fused head-merge + output projection: lane-concat heads back to (bq, inner),
    # then ONE full-depth (K = inner) matmul — replaces four K=32 matmuls + head-sum.
    out_flat = jnp.concatenate([out[h] for h in range(heads)], axis=-1)   # (bq, inner)
    y = jnp.dot(out_flat.astype(matmul_dtype), wout_ref[...],
                preferred_element_type=jnp.float32)                  # (bq, dim) f32
    o_ref[0] = y.astype(o_ref.dtype)


# ------------------------------ parameter prep --------------------------------

def prepare_attention_params(gamma, beta, wqkv, wout, *, heads, dim_head,
                             matmul_dtype=jnp.bfloat16):
    """One-time weight prep (call once, keep the result; NOT in the per-call path):
    folds 1/sqrt(dim_head) into the Q columns of Wqkv and casts weights to bf16.

    wqkv: (dim, 3*inner) = nn.Linear(dim, inner*3, bias=False).weight.T
    wout: (inner, dim)   = nn.Linear(inner, dim, bias=False).weight.T
    """
    dim = wqkv.shape[0]
    inner = heads * dim_head
    assert wqkv.shape == (dim, 3 * inner), wqkv.shape
    assert wout.shape == (inner, dim), wout.shape
    scale = dim_head ** -0.5
    wqkv_folded = jnp.concatenate([wqkv[:, :inner] * scale, wqkv[:, inner:]], axis=1)
    return {
        'gamma': gamma.reshape(1, dim).astype(jnp.float32),
        'beta': beta.reshape(1, dim).astype(jnp.float32),
        'wqkv': wqkv_folded.astype(matmul_dtype),
        'wout': wout.astype(matmul_dtype),
    }


# --------------------------------- wrapper ------------------------------------

def attention_forward(x, params, *, heads, dim_head, block_q=None, out_dtype=None):
    """Pallas implementation of Attention.forward(x).

    x: (B, N, dim) f32.  `params` from prepare_attention_params.
    block_q: optional query-tile size (must divide N, multiple of 8); default N.
    out_dtype: output dtype (default x.dtype; pass jnp.bfloat16 to halve writeback).
    """
    B, N, dim = x.shape
    inner = heads * dim_head
    # TODO(synk): for real ViT-3D token counts that are not (8,128)-friendly
    # (e.g. N = tokens + CLS = 513), pad N host-side to a multiple of 8/128 and
    # slice the result after the call to keep stores lane/sublane dense.
    if block_q is None:
        block_q = N
    assert N % block_q == 0 and (block_q == N or block_q % 8 == 0), (N, block_q)
    if out_dtype is None:
        out_dtype = x.dtype
    matmul_dtype = params['wqkv'].dtype

    kernel = functools.partial(_attention_kernel, heads=heads, dim_head=dim_head,
                               block_q=block_q, matmul_dtype=matmul_dtype)

    return pl.pallas_call(
        kernel,
        out_shape=jax.ShapeDtypeStruct((B, N, dim), out_dtype),
        grid=(B, N // block_q),
        in_specs=[
            pl.BlockSpec((1, N, dim), lambda bi, qi: (bi, 0, 0)),
            pl.BlockSpec((1, dim), lambda bi, qi: (0, 0)),
            pl.BlockSpec((1, dim), lambda bi, qi: (0, 0)),
            # Whole-weight constant blocks (index_map constant -> no re-fetch).
            pl.BlockSpec((dim, 3 * inner), lambda bi, qi: (0, 0)),
            pl.BlockSpec((inner, dim), lambda bi, qi: (0, 0)),
        ],
        out_specs=pl.BlockSpec((1, block_q, dim), lambda bi, qi: (bi, qi, 0)),
        compiler_params=pltpu.CompilerParams(
            dimension_semantics=("parallel", "parallel")),
    )(x, params['gamma'], params['beta'], params['wqkv'], params['wout'])


# --------------------------- pure-JAX reference -------------------------------

def attention_ref(x, gamma, beta, wqkv, wout, *, heads, dim_head):
    mu = jnp.mean(x, axis=-1, keepdims=True)
    var = jnp.mean((x - mu) ** 2, axis=-1, keepdims=True)
    xn = (x - mu) / jnp.sqrt(var + LN_EPS) * gamma.reshape(1, 1, -1) \
         + beta.reshape(1, 1, -1)
    inner = heads * dim_head
    qkv = xn @ wqkv
    q, k, v = qkv[..., :inner], qkv[..., inner:2 * inner], qkv[..., 2 * inner:]

    def split(t):
        B, N, _ = t.shape
        return t.reshape(B, N, heads, dim_head).transpose(0, 2, 1, 3)

    q, k, v = split(q), split(k), split(v)
    dots = jnp.einsum('bhqd,bhkd->bhqk', q, k) * (dim_head ** -0.5)
    attn = jax.nn.softmax(dots, axis=-1)
    out = jnp.einsum('bhqk,bhkd->bhqd', attn, v)
    B, N = x.shape[0], x.shape[1]
    out = out.transpose(0, 2, 1, 3).reshape(B, N, inner)
    return out @ wout


# ----------------------------------- main -------------------------------------

if __name__ == "__main__":
    key = jax.random.PRNGKey(0)
    kx, kq, ko = jax.random.split(key, 3)

    # Small, lane-dense Attention config: dim = inner = 128, N = 128.
    B, N = 2, 128
    DIM, HEADS, DIM_HEAD = 128, 4, 32
    INNER = HEADS * DIM_HEAD

    x = jax.random.normal(kx, (B, N, DIM), dtype=jnp.float32)
    wqkv = 0.02 * jax.random.normal(kq, (DIM, 3 * INNER), dtype=jnp.float32)
    wout = 0.02 * jax.random.normal(ko, (INNER, DIM), dtype=jnp.float32)
    gamma = jnp.ones((DIM,), jnp.float32)   # torch LayerNorm default init
    beta = jnp.zeros((DIM,), jnp.float32)

    # One-time weight prep, kept OUT of the jitted per-call forward path.
    params = jax.block_until_ready(
        prepare_attention_params(gamma, beta, wqkv, wout,
                                 heads=HEADS, dim_head=DIM_HEAD))

    ref = attention_ref(x, gamma, beta, wqkv, wout, heads=HEADS, dim_head=DIM_HEAD)
    ref_scale = float(jnp.max(jnp.abs(ref)))
    tol = 5e-2 * max(ref_scale, 1e-6)   # bf16 matmuls + approx reciprocal

    # Path 1: one query tile per batch element (single flat QKV matmul).
    fwd = jax.jit(functools.partial(attention_forward, heads=HEADS, dim_head=DIM_HEAD))
    out = jax.block_until_ready(fwd(x, params))
    assert out.shape == (B, N, DIM), out.shape
    assert bool(jnp.all(jnp.isfinite(out)))
    err = float(jnp.max(jnp.abs(out - ref)))
    assert err <= tol, (err, tol)

    # Path 2: query-tiled grid (B, N//64) — bounds the softmax working set and
    # gives a v7x megacore parallel work even when B is 1 or odd.
    fwd_tiled = jax.jit(functools.partial(attention_forward, heads=HEADS,
                                          dim_head=DIM_HEAD, block_q=64))
    out_tiled = jax.block_until_ready(fwd_tiled(x, params))
    err_tiled = float(jnp.max(jnp.abs(out_tiled - ref)))
    assert err_tiled <= tol, (err_tiled, tol)

    print("KERNEL_OK")
</pallas_src>

<mosaic_0001>
module attributes {stable_mosaic.version = 11 : i64} {
  func.func @_attention_kernel(%arg0: i32, %arg1: i32, %arg2: memref<1x128x128xf32, #tpu.memory_space<vmem>>, %arg3: memref<1x128xf32, #tpu.memory_space<vmem>>, %arg4: memref<1x128xf32, #tpu.memory_space<vmem>>, %arg5: memref<128x384xbf16, #tpu.memory_space<vmem>>, %arg6: memref<128x128xbf16, #tpu.memory_space<vmem>>, %arg7: memref<1x128x128xf32, #tpu.memory_space<vmem>>) attributes {dimension_semantics = [#tpu.dimension_semantics<parallel>, #tpu.dimension_semantics<parallel>], iteration_bounds = array<i64: 2, 1>, scalar_prefetch = 0 : i64, scratch_operands = 0 : i64, tpu.core_type = #tpu.core_type<tc>, window_params = [{transform_indices = @transform_0, window_bounds = array<i64: 1, 128, 128>}, {pipeline_mode = #tpu.pipeline_mode<synchronous>, transform_indices = @transform_1, window_bounds = array<i64: 1, 128>}, {pipeline_mode = #tpu.pipeline_mode<synchronous>, transform_indices = @transform_2, window_bounds = array<i64: 1, 128>}, {pipeline_mode = #tpu.pipeline_mode<synchronous>, transform_indices = @transform_3, window_bounds = array<i64: 128, 384>}, {pipeline_mode = #tpu.pipeline_mode<synchronous>, transform_indices = @transform_4, window_bounds = array<i64: 128, 128>}, {transform_indices = @transform_5, window_bounds = array<i64: 1, 128, 128>}]} {
    %c0 = arith.constant 0 : index
    %c0_0 = arith.constant 0 : index
    %0 = vector.load %arg3[%c0, %c0_0] : memref<1x128xf32, #tpu.memory_space<vmem>>, vector<1x128xf32>
    %1 = vector.shape_cast %0 : vector<1x128xf32> to vector<128xf32>
    %c0_1 = arith.constant 0 : index
    %c0_2 = arith.constant 0 : index
    %2 = vector.load %arg4[%c0_1, %c0_2] : memref<1x128xf32, #tpu.memory_space<vmem>>, vector<1x128xf32>
    %3 = vector.shape_cast %2 : vector<1x128xf32> to vector<128xf32>
    %c0_3 = arith.constant 0 : index
    %c0_4 = arith.constant 0 : index
    %c0_5 = arith.constant 0 : index
    %4 = vector.load %arg2[%c0_3, %c0_4, %c0_5] : memref<1x128x128xf32, #tpu.memory_space<vmem>>, vector<1x128x128xf32>
    %5 = vector.shape_cast %4 : vector<1x128x128xf32> to vector<128x128xf32>
    %cst = arith.constant dense<0.000000e+00> : vector<128xf32>
    %6 = vector.multi_reduction <add>, %5, %cst [1] : vector<128x128xf32> to vector<128xf32>
    %7 = vector.shape_cast %6 : vector<128xf32> to vector<128x1xf32>
    %cst_6 = arith.constant 1.280000e+02 : f32
    %8 = vector.broadcast %cst_6 : f32 to vector<128x1xf32>
    %9 = arith.divf %7, %8 : vector<128x1xf32>
    %10 = vector.broadcast %9 : vector<128x1xf32> to vector<128x128xf32>
    %11 = arith.subf %5, %10 : vector<128x128xf32>
    %12 = arith.mulf %11, %11 : vector<128x128xf32>
    %cst_7 = arith.constant dense<0.000000e+00> : vector<128xf32>
    %13 = vector.multi_reduction <add>, %12, %cst_7 [1] : vector<128x128xf32> to vector<128xf32>
    %14 = vector.shape_cast %13 : vector<128xf32> to vector<128x1xf32>
    %cst_8 = arith.constant 1.280000e+02 : f32
    %15 = vector.broadcast %cst_8 : f32 to vector<128x1xf32>
    %16 = arith.divf %14, %15 : vector<128x1xf32>
    %cst_9 = arith.constant 9.99999974E-6 : f32
    %17 = vector.broadcast %cst_9 : f32 to vector<128x1xf32>
    %18 = arith.addf %16, %17 : vector<128x1xf32>
    %19 = math.rsqrt %18 : vector<128x1xf32>
    %20 = vector.broadcast %19 : vector<128x1xf32> to vector<128x128xf32>
    %21 = arith.mulf %11, %20 : vector<128x128xf32>
    %22 = vector.shape_cast %1 : vector<128xf32> to vector<1x128xf32>
    %23 = vector.broadcast %22 : vector<1x128xf32> to vector<128x128xf32>
    %24 = arith.mulf %21, %23 : vector<128x128xf32>
    %25 = vector.shape_cast %3 : vector<128xf32> to vector<1x128xf32>
    %26 = vector.broadcast %25 : vector<1x128xf32> to vector<128x128xf32>
    %27 = arith.addf %24, %26 : vector<128x128xf32>
    %28 = arith.truncf %27 : vector<128x128xf32> to vector<128x128xbf16>
    %c0_10 = arith.constant 0 : index
    %c0_11 = arith.constant 0 : index
    %29 = vector.load %arg5[%c0_10, %c0_11] : memref<128x384xbf16, #tpu.memory_space<vmem>>, vector<128x384xbf16>
    %cst_12 = arith.constant dense<0.000000e+00> : vector<128x384xf32>
    %30 = tpu.matmul %28, %29, %cst_12 {dimension_numbers = #tpu.dot_dimension_numbers<[1], [0], [0], [1], [0, 0, 1, 1], [], []>} : vector<128x128xbf16>, vector<128x384xbf16>, vector<128x384xf32> -> vector<128x384xf32>
    %31 = vector.extract_strided_slice %30 {offsets = [0, 0], sizes = [128, 128], strides = [1, 1]} : vector<128x384xf32> to vector<128x128xf32>
    %32 = vector.extract_strided_slice %30 {offsets = [0, 128], sizes = [128, 128], strides = [1, 1]} : vector<128x384xf32> to vector<128x128xf32>
    %33 = vector.extract_strided_slice %30 {offsets = [0, 256], sizes = [128, 128], strides = [1, 1]} : vector<128x384xf32> to vector<128x128xf32>
    %34 = vector.extract_strided_slice %31 {offsets = [0, 0], sizes = [128, 32], strides = [1, 1]} : vector<128x128xf32> to vector<128x32xf32>
    %35 = vector.extract_strided_slice %31 {offsets = [0, 32], sizes = [128, 32], strides = [1, 1]} : vector<128x128xf32> to vector<128x32xf32>
    %36 = vector.extract_strided_slice %31 {offsets = [0, 64], sizes = [128, 32], strides = [1, 1]} : vector<128x128xf32> to vector<128x32xf32>
    %37 = vector.extract_strided_slice %31 {offsets = [0, 96], sizes = [128, 32], strides = [1, 1]} : vector<128x128xf32> to vector<128x32xf32>
    %38 = vector.shape_cast %34 : vector<128x32xf32> to vector<1x128x32xf32>
    %39 = vector.shape_cast %35 : vector<128x32xf32> to vector<1x128x32xf32>
    %40 = vector.shape_cast %36 : vector<128x32xf32> to vector<1x128x32xf32>
    %41 = vector.shape_cast %37 : vector<128x32xf32> to vector<1x128x32xf32>
    %42 = tpu.concatenate %38, %39, %40, %41 in 0 : vector<1x128x32xf32>, vector<1x128x32xf32>, vector<1x128x32xf32>, vector<1x128x32xf32> -> vector<4x128x32xf32>
    %43 = arith.truncf %42 : vector<4x128x32xf32> to vector<4x128x32xbf16>
    %44 = vector.extract_strided_slice %32 {offsets = [0, 0], sizes = [128, 32], strides = [1, 1]} : vector<128x128xf32> to vector<128x32xf32>
    %45 = vector.extract_strided_slice %32 {offsets = [0, 32], sizes = [128, 32], strides = [1, 1]} : vector<128x128xf32> to vector<128x32xf32>
    %46 = vector.extract_strided_slice %32 {offsets = [0, 64], sizes = [128, 32], strides = [1, 1]} : vector<128x128xf32> to vector<128x32xf32>
    %47 = vector.extract_strided_slice %32 {offsets = [0, 96], sizes = [128, 32], strides = [1, 1]} : vector<128x128xf32> to vector<128x32xf32>
    %48 = vector.shape_cast %44 : vector<128x32xf32> to vector<1x128x32xf32>
    %49 = vector.shape_cast %45 : vector<128x32xf32> to vector<1x128x32xf32>
    %50 = vector.shape_cast %46 : vector<128x32xf32> to vector<1x128x32xf32>
    %51 = vector.shape_cast %47 : vector<128x32xf32> to vector<1x128x32xf32>
    %52 = tpu.concatenate %48, %49, %50, %51 in 0 : vector<1x128x32xf32>, vector<1x128x32xf32>, vector<1x128x32xf32>, vector<1x128x32xf32> -> vector<4x128x32xf32>
    %53 = arith.truncf %52 : vector<4x128x32xf32> to vector<4x128x32xbf16>
    %54 = vector.extract_strided_slice %33 {offsets = [0, 0], sizes = [128, 32], strides = [1, 1]} : vector<128x128xf32> to vector<128x32xf32>
    %55 = vector.extract_strided_slice %33 {offsets = [0, 32], sizes = [128, 32], strides = [1, 1]} : vector<128x128xf32> to vector<128x32xf32>
    %56 = vector.extract_strided_slice %33 {offsets = [0, 64], sizes = [128, 32], strides = [1, 1]} : vector<128x128xf32> to vector<128x32xf32>
    %57 = vector.extract_strided_slice %33 {offsets = [0, 96], sizes = [128, 32], strides = [1, 1]} : vector<128x128xf32> to vector<128x32xf32>
    %58 = vector.shape_cast %54 : vector<128x32xf32> to vector<1x128x32xf32>
    %59 = vector.shape_cast %55 : vector<128x32xf32> to vector<1x128x32xf32>
    %60 = vector.shape_cast %56 : vector<128x32xf32> to vector<1x128x32xf32>
    %61 = vector.shape_cast %57 : vector<128x32xf32> to vector<1x128x32xf32>
    %62 = tpu.concatenate %58, %59, %60, %61 in 0 : vector<1x128x32xf32>, vector<1x128x32xf32>, vector<1x128x32xf32>, vector<1x128x32xf32> -> vector<4x128x32xf32>
    %63 = arith.truncf %62 : vector<4x128x32xf32> to vector<4x128x32xbf16>
    "tpu.trace_start"() <{level = 10 : i32, message = "hqd,hkd->hqk"}> : () -> ()
    %cst_13 = arith.constant dense<0.000000e+00> : vector<4x128x128xf32>
    %64 = tpu.matmul %43, %53, %cst_13 {dimension_numbers = #tpu.dot_dimension_numbers<[2], [2], [1], [1], [0, 0, 0, 1, 1, 1], [0], [0]>} : vector<4x128x32xbf16>, vector<4x128x32xbf16>, vector<4x128x128xf32> -> vector<4x128x128xf32>
    "tpu.trace_stop"() : () -> ()
    %cst_14 = arith.constant dense<0xFF800000> : vector<4x128xf32>
    %65 = vector.multi_reduction <maximumf>, %64, %cst_14 [2] : vector<4x128x128xf32> to vector<4x128xf32>
    %66 = vector.shape_cast %65 : vector<4x128xf32> to vector<4x128x1xf32>
    %67 = vector.broadcast %66 : vector<4x128x1xf32> to vector<4x128x128xf32>
    %68 = arith.subf %64, %67 : vector<4x128x128xf32>
    %69 = math.exp %68 : vector<4x128x128xf32>
    %cst_15 = arith.constant dense<0.000000e+00> : vector<4x128xf32>
    %70 = vector.multi_reduction <add>, %69, %cst_15 [2] : vector<4x128x128xf32> to vector<4x128xf32>
    %71 = vector.shape_cast %70 : vector<4x128xf32> to vector<4x128x1xf32>
    %72 = tpu.reciprocal %71 {approx = true} : vector<4x128x1xf32> -> vector<4x128x1xf32>
    %73 = vector.broadcast %72 : vector<4x128x1xf32> to vector<4x128x128xf32>
    %74 = arith.mulf %69, %73 : vector<4x128x128xf32>
    %75 = arith.truncf %74 : vector<4x128x128xf32> to vector<4x128x128xbf16>
    "tpu.trace_start"() <{level = 10 : i32, message = "hqk,hkd->hqd"}> : () -> ()
    %cst_16 = arith.constant dense<0.000000e+00> : vector<4x128x32xf32>
    %76 = tpu.matmul %75, %63, %cst_16 {dimension_numbers = #tpu.dot_dimension_numbers<[2], [1], [1], [2], [0, 0, 0, 1, 1, 2], [0], [0]>} : vector<4x128x128xbf16>, vector<4x128x32xbf16>, vector<4x128x32xf32> -> vector<4x128x32xf32>
    "tpu.trace_stop"() : () -> ()
    %77 = vector.extract_strided_slice %76 {offsets = [0, 0, 0], sizes = [1, 128, 32], strides = [1, 1, 1]} : vector<4x128x32xf32> to vector<1x128x32xf32>
    %78 = vector.shape_cast %77 : vector<1x128x32xf32> to vector<128x32xf32>
    %79 = vector.extract_strided_slice %76 {offsets = [1, 0, 0], sizes = [1, 128, 32], strides = [1, 1, 1]} : vector<4x128x32xf32> to vector<1x128x32xf32>
    %80 = vector.shape_cast %79 : vector<1x128x32xf32> to vector<128x32xf32>
    %81 = vector.extract_strided_slice %76 {offsets = [2, 0, 0], sizes = [1, 128, 32], strides = [1, 1, 1]} : vector<4x128x32xf32> to vector<1x128x32xf32>
    %82 = vector.shape_cast %81 : vector<1x128x32xf32> to vector<128x32xf32>
    %83 = vector.extract_strided_slice %76 {offsets = [3, 0, 0], sizes = [1, 128, 32], strides = [1, 1, 1]} : vector<4x128x32xf32> to vector<1x128x32xf32>
    %84 = vector.shape_cast %83 : vector<1x128x32xf32> to vector<128x32xf32>
    %85 = tpu.concatenate %78, %80, %82, %84 in 1 : vector<128x32xf32>, vector<128x32xf32>, vector<128x32xf32>, vector<128x32xf32> -> vector<128x128xf32>
    %86 = arith.truncf %85 : vector<128x128xf32> to vector<128x128xbf16>
    %c0_17 = arith.constant 0 : index
    %c0_18 = arith.constant 0 : index
    %87 = vector.load %arg6[%c0_17, %c0_18] : memref<128x128xbf16, #tpu.memory_space<vmem>>, vector<128x128xbf16>
    %cst_19 = arith.constant dense<0.000000e+00> : vector<128x128xf32>
    %88 = tpu.matmul %86, %87, %cst_19 {dimension_numbers = #tpu.dot_dimension_numbers<[1], [0], [0], [1], [0, 0, 1, 1], [], []>} : vector<128x128xbf16>, vector<128x128xbf16>, vector<128x128xf32> -> vector<128x128xf32>
    %c0_20 = arith.constant 0 : index
    %c0_21 = arith.constant 0 : index
    %c0_22 = arith.constant 0 : index
    %89 = vector.load %arg7[%c0_20, %c0_21, %c0_22] : memref<1x128x128xf32, #tpu.memory_space<vmem>>, vector<1x128x128xf32>
    %90 = vector.shape_cast %89 : vector<1x128x128xf32> to vector<128x128xf32>
    %91 = vector.shape_cast %88 : vector<128x128xf32> to vector<1x128x128xf32>
    tpu.vector_store %arg7[%c0_20, %c0_21, %c0_22], %91 {strides = array<i32>} : memref<1x128x128xf32, #tpu.memory_space<vmem>>, vector<1x128x128xf32>,
    return
  }
  func.func @transform_0(%arg0: i32, %arg1: i32) -> (i32, i32, i32) {
    %c0_i32 = arith.constant 0 : i32
    %c0_i32_0 = arith.constant 0 : i32
    %c0_i32_1 = arith.constant 0 : i32
    return %arg0, %c0_i32, %c0_i32_0 : i32, i32, i32
  }
  func.func @transform_1(%arg0: i32, %arg1: i32) -> (i32, i32) {
    %c0_i32 = arith.constant 0 : i32
    %c0_i32_0 = arith.constant 0 : i32
    %c0_i32_1 = arith.constant 0 : i32
    return %c0_i32, %c0_i32_0 : i32, i32
  }
  func.func @transform_2(%arg0: i32, %arg1: i32) -> (i32, i32) {
    %c0_i32 = arith.constant 0 : i32
    %c0_i32_0 = arith.constant 0 : i32
    %c0_i32_1 = arith.constant 0 : i32
    return %c0_i32, %c0_i32_0 : i32, i32
  }
  func.func @transform_3(%arg0: i32, %arg1: i32) -> (i32, i32) {
    %c0_i32 = arith.constant 0 : i32
    %c0_i32_0 = arith.constant 0 : i32
    %c0_i32_1 = arith.constant 0 : i32
    return %c0_i32, %c0_i32_0 : i32, i32
  }
  func.func @transform_4(%arg0: i32, %arg1: i32) -> (i32, i32) {
    %c0_i32 = arith.constant 0 : i32
    %c0_i32_0 = arith.constant 0 : i32
    %c0_i32_1 = arith.constant 0 : i32
    return %c0_i32, %c0_i32_0 : i32, i32
  }
  func.func @transform_5(%arg0: i32, %arg1: i32) -> (i32, i32, i32) {
    %c0_i32 = arith.constant 0 : i32
    %c0_i32_0 = arith.constant 0 : i32
    return %arg0, %arg1, %c0_i32 : i32, i32, i32
  }
}

</mosaic_0001>

<bundles_post_ra>
// kernel: attention_forward.1
= control target key start
LH: loop header
LB: loop body
LE: loop exit
PB: predicated region body
PF: predicated region fallthrough
CT: control target
= control target key end

     0   :  { %10 = vsyncpa [#allocation3], 0  ;;  %s6879_s0 = inlined_call_operand.hbm [shape: f32[2,128,128], index: 0, kind: input, shape index: {}]   ;;  %s6880_s1 = inlined_call_operand.vmem [shape: f32[1,128], index: 1, kind: input, shape index: {}]   ;;  %s6881_s2 = inlined_call_operand.vmem [shape: f32[1,128], index: 2, kind: input, shape index: {}]   ;;  %s6882_s3 = inlined_call_operand.hbm [shape: bf16[128,384], index: 3, kind: input, shape index: {}]   ;;  %s6883_s4 = inlined_call_operand.hbm [shape: bf16[128,128], index: 4, kind: input, shape index: {}]   ;;  %s6884_s5 = inlined_call_operand.hbm [shape: f32[2,128,128], index: 5, kind: output, shape index: {}]  }
   0x1   :  { %12 = vsyncpa [#allocation3 + $0x1], 0 }
   0x2   :  { %13 = vsyncpa [#allocation6], 0 }
   0x3   :  { %14 = vsyncpa [#allocation4], 0 }
   0x4   :  { %16 = vsyncpa [#allocation4 + $0x1], 0  ;;  %s5342_s18 = smov 0   ;;  %s5344_s19 = smov 0  }
   0x5   :  { %s5346_s20 = smov 0   ;;  %s5348_s21 = smov 0  }
   0x6   :  { %s5350_s22 = smov 0   ;;  %s5352_s23 = smov 0  }
   0x7 LB: > { %s3604_s24 = sadd.s32 4294967295, %s5294_s23   ;;  %s3605_s25 = sadd.s32 4294967294, %s5294_s23   ;;  %s5294_s23 = sphi %s5352_s23, %s22_s23   ;;  %s5290_s22 = sphi %s5350_s22, %s7056_s22   ;;  %s5286_s21 = sphi %s5348_s21, %s7055_s21   ;;  %s5282_s20 = sphi %s5346_s20, %s7054_s20   ;;  %s5278_s19 = sphi %s5344_s19, %s7053_s19   ;;  %s5274_s18 = sphi %s5342_s18, %s7052_s18  }
   0x8   : > { %p54_p0 = scmp.ne.s32.totalorder %s5278_s19, %s5274_s18  ;;  %p5376_p1 = scmp.eq.s32.totalorder %s3604_s24, 0 }
   0x9   : > { %p5380_p2 = scmp.eq.s32.totalorder %s3604_s24, 1  ;;  %p170_p3 = scmp.eq.s32.totalorder %s3605_s25, 1 }
   0xa   : > { %s6939_s26 = scalar_select %p5376_p1, 1, 0 }
   0xb   : > { %p5386_p4 = por %p5376_p1, %p54_p0  ;;  %p3606_p5 = scmp.ge.s32.totalorder %s5294_s23, 1 }
   0xc   : > { %p5391_p6 = por %p170_p3, %p54_p0  ;;  %p177_p7 = scmp.lt.s32.totalorder %s5294_s23, 3 }
   0xd   : > { %s6941_s28 = scalar_select %p5386_p4, 1, 0 }
   0xe   : > { %s6942_s29 = scalar_select %p5391_p6, 1, 0 }
   0xf   : > { %p5396_p8 = pnand %p3606_p5, %p177_p7  ;;  %s5296_s6 = smov [#allocation5]  }
  0x10   : > { %s195_s7 = sshll.u32 %s5296_s6, 4  ;;  %s5297_s9 = smov [#allocation7]   ;;  %s5400_s7 = int_to_ptr.vmem [resolvable:$true] %s195_s7 }
  0x11   : > { %p4231_p9 = pneg %p5396_p8  ;;  %s208_s10 = sshll.u32 %s5297_s9, 4  ;;  %s5411_s10 = int_to_ptr.vmem [resolvable:$true] %s208_s10 }
  0x12   : > { %s5122_s13 = scalar_lea.hbm %s6882_s3, 3072 }
  0x13   : > { %p5407_p11 = pnand %p4231_p9, %p5376_p1  ;;  %p5123_p12 = scmp.ne.s32.totalorder %s6882_s3, %s5122_s13 }
  0x14   : > { %p5129_p5 = scmp.lt.u32.totalorder %s5122_s13, %s6882_s3 }
  0x15   : > { %p5124_p13 = pneg %p5407_p11 }
  0x17   : > { %p5125_p0 = pnand %p5124_p13, %p5123_p12 }
  0x19   : > { %p5126_p3 = pneg %p5125_p0 }
  0x1b   : > { %p5131_p7 = pnand %p5129_p5, %p5126_p3 }
  0x1d   : > { %5134 = shalt.err (!%p5131_p7)
}
  0x1e   : > { %s5135_s24 = scalar_lea.vmem %s5400_s7, 3072  ;;  %p5143_p1 = scmp.lt.s32.totalorder %s5400_s7, %s5400_s7 }
  0x1f   : > { %p5136_p9 = scmp.ne.s32.totalorder %s5400_s7, %s5135_s24  ;;  %p5144_p12 = scmp.lt.s32.totalorder %s5135_s24, %s5135_s24 }
  0x21   : > { %p5138_p10 = pnand %p5136_p9, %p5124_p13  ;;  %p5145_p0 = por %p5144_p12, %p5143_p1 }
  0x23   : > { %p5139_p6 = pneg %p5138_p10 }
  0x25   : > { %p5146_p4 = pnand %p5145_p0, %p5139_p6 }
  0x27   : > { %5149 = shalt.err (!%p5146_p4)
}
  0x28   : > { %s5298_s25 = smov 192   ;;  %s5299_s6 = smov 12  }
  0x29   : > { %4234 = dma.hbm_to_vmem [thread:$0]  (!%p5407_p11), %s6882_s3, 3072, %s5400_s7, [#allocation6], %s5298_s25, %s5298_s25, %s5299_s6  }
  0x2a   : > { %s5150_s14 = scalar_lea.hbm %s6883_s4, 1024 }
  0x2b   : > { %p5151_p1 = scmp.ne.s32.totalorder %s6883_s4, %s5150_s14  ;;  %p5157_p10 = scmp.lt.u32.totalorder %s5150_s14, %s6883_s4 }
  0x2d   : > { %p5153_p4 = pnand %p5151_p1, %p5124_p13 }
  0x2f   : > { %p5154_p6 = pneg %p5153_p4 }
  0x31   : > { %p5159_p3 = pnand %p5157_p10, %p5154_p6 }
  0x33   : > { %5162 = shalt.err (!%p5159_p3)
}
  0x34   : > { %s5163_s7 = scalar_lea.vmem %s5411_s10, 1024  ;;  %p5171_p12 = scmp.lt.s32.totalorder %s5411_s10, %s5411_s10 }
  0x35   : > { %p5164_p5 = scmp.ne.s32.totalorder %s5411_s10, %s5163_s7  ;;  %p5172_p0 = scmp.lt.s32.totalorder %s5163_s7, %s5163_s7 }
  0x37   : > { %p5166_p7 = pnand %p5164_p5, %p5124_p13  ;;  %p5173_p1 = por %p5172_p0, %p5171_p12 }
  0x39   : > { %p5167_p9 = pneg %p5166_p7 }
  0x3b   : > { %p5174_p4 = pnand %p5173_p1, %p5167_p9 }
  0x3d   : > { %5177 = shalt.err (!%p5174_p4)
}
  0x3e   : > { %s5300_s25 = smov 64   ;;  %s5301_s6 = smov 4  }
  0x3f   : > { %4237 = dma.hbm_to_vmem [thread:$0]  (!%p5407_p11), %s6883_s4, 1024, %s5411_s10, [#allocation6], %s5300_s25, %s5300_s25, %s5301_s6  }
  0x40   : > { %s34_s12 = sadd.s32 1, %s5290_s22  ;;  %s41_s13 = sadd.s32 1, %s5282_s20 }
  0x41   : > { %p36_p13 = scmp.ge.s32.totalorder %s34_s12, 2  ;;  %p48_p6 = scmp.ne.s32.totalorder %s5282_s20, %s5278_s19 }
  0x42   : > { %p49_p10 = scmp.eq.s32.totalorder %s5294_s23, 0  ;;  %p4248_p3 = scmp.lt.s32.totalorder %s5294_s23, 2 }
  0x43   : > { %s7058_s12 = smov (%p36_p13, %s34_s12), 0  ;;  %p5475_p7 = por %p5380_p2, %p48_p6 }
  0x44   : > { %p50_p5 = por %p49_p10, %p48_p6  ;;  %s38_s8 = ssub.s32 %s5290_s22, %s7058_s12 }
  0x45   : > { %s6945_s14 = scalar_select %p5475_p7, 1, 0 }
  0x46   : > { %s222_s15 = sand.u32 1, %s5282_s20   ;;  %p39_p9 = scmp.eq.s32.totalorder %s38_s8, 0 }
  0x47   : > { %s3610_s10 = sshll.u32 %s222_s15, 7  ;;  %s3689_s16 = sshll.u32 %s5290_s22, 11 }
  0x48   : > { %s5484_s17 = scalar_select %p39_p9, %s5282_s20, %s41_s13  }
  0x49   : > { %s5489_s25 = scalar_lea.hbm %s6879_s0, %s3689_s16  ;;  %s226_s27 = scalar_lea.vmem [#allocation2], %s3610_s10 }
  0x4a   : > { %s233_s6 = sshll.u32 %s226_s27, 4  ;;  %p5493_p2 = pnand %p4248_p3, %p50_p5  ;;  %s5497_s6 = int_to_ptr.vmem [resolvable:$true] %s233_s6 }
  0x4b   : > { %s5499_s11 = scalar_lea.sflag [#allocation3], %s222_s15  ;;  %s5178_s13 = scalar_lea.hbm %s5489_s25, 2048 }
  0x4c   : > { %p5179_p11 = scmp.ne.s32.totalorder %s5489_s25, %s5178_s13  ;;  %p5180_p12 = pneg %p5493_p2 }
  0x4d   : > { %s5183_s16 = scalar_lea.hbm %s6879_s0, 4096  ;;  %p5184_p4 = scmp.lt.u32.totalorder %s5489_s25, %s6879_s0 }
  0x4e   : > { %p5181_p0 = pnand %p5180_p12, %p5179_p11  ;;  %p5185_p13 = scmp.lt.u32.totalorder %s5183_s16, %s5178_s13 }
  0x4f   : > { %p5187_p10 = scmp.lt.u32.totalorder %s5178_s13, %s5489_s25 }
  0x50   : > { %p5182_p1 = pneg %p5181_p0  ;;  %p5186_p6 = por %p5185_p13, %p5184_p4 }
  0x52   : > { %p5188_p3 = por %p5187_p10, %p5186_p6 }
  0x54   : > { %p5189_p5 = pnand %p5188_p3, %p5182_p1 }
  0x56   : > { %5192 = shalt.err (!%p5189_p5)
}
  0x57   : > { %s5193_s15 = scalar_lea.vmem %s5497_s6, 2048  ;;  %s5302_s27 = smov [#allocation2]  }
  0x58   : > { %p5194_p9 = scmp.ne.s32.totalorder %s5497_s6, %s5193_s15  ;;  %s5198_s8 = sshll.u32 %s5302_s27, 4  ;;  %s5199_s8 = int_to_ptr.vmem [resolvable:$false] %s5198_s8 }
  0x59   : > { %s5200_s10 = scalar_lea.vmem %s5199_s8, 4096  ;;  %p5201_p7 = scmp.lt.s32.totalorder %s5497_s6, %s5199_s8 }
  0x5a   : > { %p5196_p11 = pnand %p5194_p9, %p5180_p12  ;;  %p5202_p4 = scmp.lt.s32.totalorder %s5200_s10, %s5193_s15 }
  0x5c   : > { %p5197_p0 = pneg %p5196_p11  ;;  %p5203_p13 = por %p5202_p4, %p5201_p7 }
  0x5e   : > { %p5204_p6 = pnand %p5203_p13, %p5197_p0 }
  0x60   : > { %5207 = shalt.err (!%p5204_p6)
}
  0x61   : > { %s5303_s13 = smov 128   ;;  %s5304_s16 = smov 8  }
  0x62   : > { %4241 = dma.hbm_to_vmem [thread:$0]  (!%p5493_p2), %s5489_s25, 2048, %s5497_s6, %s5499_s11, %s5303_s13, %s5303_s13, %s5304_s16  }
  0x63   : > { %245 = sbr.rel (%p5396_p8) target bundleno = 2176 (0x880), region = 40 }
  0x6a   : > { %s5530_s24 = sand.u32 1, %s5278_s19   ;;  %p6947_p7 = scmp.ne.s32.totalorder %s6941_s28, 0 }
  0x6b   : > { %s3614_s7 = sshll.u32 %s5530_s24, 7  ;;  %s248_s15 = scalar_lea.sflag [#allocation3], %s5530_s24 }
  0x6c   : > { %s5536_s27 = scalar_lea.vmem [#allocation2], %s3614_s7 }
  0x6d   : > { %5261 = dma.done.wait (%p6947_p7), %s248_s15, 2048  }
  0x6e   : > { %5263 = vsyncadd (%p6947_p7), %s248_s15, 4294965248  ;;  %p6948_p2 = scmp.ne.s32.totalorder %s6939_s26, 0 }
  0x70   : > { %5265 = dma.done.wait (%p6948_p2), [#allocation6], 4096  }
  0x71   : > { %5267 = vsyncadd (%p6948_p2), [#allocation6], 4294963200  ;;  %v290_v0 = vld [vmem:[%s5536_s27] sm:$0xff]  ;;  %v292_v1 = vld [vmem:[%s5536_s27 + $0x10] sm:$0xff]  ;;  %vm1481_vm0 = vcmask 261120   ;;  %s5306_s6 = smov 96  }
  0x72   : > { %306 = vadd.xlane.f32.xlu0 %v290_v0  ;;  %310 = vadd.xlane.f32.xlu1 %v292_v1  ;;  %v291_v2 = vld [vmem:[%s5536_s27 + $0x8] sm:$0xff]  ;;  %v293_v3 = vld [vmem:[%s5536_s27 + $0x18] sm:$0xff]  ;;  %v294_v4 = vld [vmem:[%s5536_s27 + $0x20] sm:$0xff]  ;;  %s5307_s9 = smov 64   ;;  %s5308_s11 = smov 32   ;;  %vm3266_vm1 = vcmask 523264  }
  0x73   : > { %v295_v5 = vld [vmem:[%s5536_s27 + $0x28] sm:$0xff]  ;;  %v5553_v6 = vld [vmem:[%s5536_s27 + $0x30] sm:$0xff]  ;;  %v5556_v7 = vld [vmem:[%s5536_s27 + $0x38] sm:$0xff]  ;;  %vm3283_vm2 = vcmask 785408   ;;  %s6805_s8 = scalar_lea.vmem [#allocation8], %s3614_s7  ;;  %s3690_s10 = sshll.u32 %s5286_s21, 11 }
  0x74   : > { %v5559_v8 = vld [vmem:[%s5536_s27 + $0x40] sm:$0xff]  ;;  %v5562_v9 = vld [vmem:[%s5536_s27 + $0x48] sm:$0xff]  ;;  %v5567_v10 = vld [vmem:[%s5536_s27 + $0x50] sm:$0xff]  ;;  %s3501_s13 = sshll.u32 %s6805_s8, 4  ;;  %s6825_s15 = scalar_lea.hbm %s6884_s5, %s3690_s10  ;;  %s6827_s13 = int_to_ptr.vmem [resolvable:$true] %s3501_s13 }
  0x75   : > { %v5570_v11 = vld [vmem:[%s5536_s27 + $0x58] sm:$0xff]  ;;  %v5577_v12 = vld [vmem:[%s5536_s27 + $0x60] sm:$0xff]  ;;  %v5580_v13 = vld [vmem:[%s5536_s27 + $0x68] sm:$0xff]  ;;  %s3486_s21 = scalar_lea.sflag [#allocation4], %s5530_s24  ;;  %p7049_p12 = scmp.ne.s32.totalorder %s6945_s14, 0 }
  0x76   : > { %308 = vadd.xlane.f32.xlu0 %v291_v2  ;;  %312 = vadd.xlane.f32.xlu1 %v293_v3  ;;  %v5585_v14 = vld [vmem:[%s5536_s27 + $0x70] sm:$0xff]  ;;  %v5588_v15 = vld [vmem:[%s5536_s27 + $0x78] sm:$0xff]  ;;  %v4796_v17 = vld [vmem:[#allocation5] ss:$12 sps:$4 sm:$0xff]   ;;  %s5208_s27 = scalar_lea.vmem %s6827_s13, 2048  ;;  %s5309_s26 = smov [#allocation8]  }
  0x77   : > { %v4794_v16 = vld [vmem:[#allocation5 + $0x4] ss:$12 sps:$4 sm:$0xff]   ;;  %v4797_v18 = vld [vmem:[#allocation5 + $0x1c] ss:$12 sps:$4 sm:$0xff]   ;;  %p5209_p8 = scmp.ne.s32.totalorder %s6827_s13, %s5208_s27  ;;  %s5212_s28 = sshll.u32 %s5309_s26, 4  ;;  %s5213_s28 = int_to_ptr.vmem [resolvable:$false] %s5212_s28 }
  0x78   : > { %v4799_v19 = vld [vmem:[#allocation5 + $0x8] ss:$12 sps:$4 sm:$0xff]   ;;  %695 = vmatprep.subr.bf16.mxu0 %v4794_v16  ;;  %v4800_v58 = vld [vmem:[#allocation5 + $0x18] ss:$12 sps:$4 sm:$0xff]   ;;  %s5214_s30 = scalar_lea.vmem %s5213_s28, 4096  ;;  %p5215_p3 = scmp.lt.s32.totalorder %s6827_s13, %s5213_s28 }
  0x79   : > { %696 = vmatpush1.bf16.msra.mxu0 %v4796_v17  ;;  %3851 = vmatprep.subr.bf16.mxu1 %v4799_v19  ;;  %p5210_p1 = pnand %p5209_p8, %p7049_p12  ;;  %p5216_p5 = scmp.lt.s32.totalorder %s5214_s30, %s5208_s27 }
  0x7a   : > { %314 = vadd.xlane.f32.xlu0 %v294_v4  ;;  %316 = vadd.xlane.f32.xlu1 %v295_v5 }
  0x7b   : > { %697 = vmatprep.subr.bf16.mxu0 %v4797_v18  ;;  %3852 = vmatpush3.bf16.msra.mxu1 %v4799_v19  ;;  %v4805_v18 = vld [vmem:[#allocation5 + $0x4c] ss:$12 sps:$4 sm:$0xff]   ;;  %p5211_p10 = pneg %p5210_p1  ;;  %p5217_p9 = por %p5216_p5, %p5215_p3 }
  0x7c   : > { %v4807_v19 = vld [vmem:[#allocation5 + $0x38] ss:$12 sps:$4 sm:$0xff]  }
  0x7d   : > { %698 = vmatpush1.bf16.msra.mxu0 %v4800_v58  ;;  %p5218_p11 = pnand %p5217_p9, %p5211_p10 }
  0x7e   : > { %318 = vadd.xlane.f32.xlu0 %v5553_v6  ;;  %320 = vadd.xlane.f32.xlu1 %v5556_v7 }
  0x82   : > { %322 = vadd.xlane.f32.xlu0 %v5559_v8  ;;  %324 = vadd.xlane.f32.xlu1 %v5562_v9 }
  0x86   : > { %326 = vadd.xlane.f32.xlu0 %v5567_v10  ;;  %328 = vadd.xlane.f32.xlu1 %v5570_v11 }
  0x8a   : > { %330 = vadd.xlane.f32.xlu0 %v5577_v12  ;;  %332 = vadd.xlane.f32.xlu1 %v5580_v13 }
  0x8e   : > { %334 = vadd.xlane.f32.xlu0 %v5585_v14  ;;  %336 = vadd.xlane.f32.xlu1 %v5588_v15 }
  0xff   : > { %v307_v20 = vpop.xlane.xlu0 %306  ;;  %v311_v21 = vpop.xlane.xlu1 %310 }
 0x100   : > { %v339_v22 = vmul.f32 0.0078125, %v307_v20  ;;  %v341_v23 = vmul.f32 0.0078125, %v311_v21 }
 0x102   : > { %v5592_v24 = vsub.f32 %v290_v0, %v339_v22  ;;  %v5594_v25 = vsub.f32 %v292_v1, %v341_v23  ;;  %v4801_v0 = vld [vmem:[#allocation5 + $0x34] ss:$12 sps:$4 sm:$0xff]  }
 0x103   : > { %v309_v26 = vpop.xlane.xlu0 %308  ;;  %v313_v27 = vpop.xlane.xlu1 %312  ;;  %v4803_v1 = vld [vmem:[#allocation5 + $0x20] ss:$12 sps:$4 sm:$0xff]   ;;  %699 = vmatprep.subr.bf16.mxu0 %v4801_v0  ;;  %v4808_v22 = vld [vmem:[#allocation5 + $0x48] ss:$12 sps:$4 sm:$0xff]  }
 0x104   : > { %v340_v28 = vmul.f32 0.0078125, %v309_v26  ;;  %v371_v29 = vmul.f32 %v5592_v24, %v5592_v24  ;;  %v342_v30 = vmul.f32 0.0078125, %v313_v27  ;;  %v373_v31 = vmul.f32 %v5594_v25, %v5594_v25  ;;  %3853 = vmatprep.subr.bf16.mxu1 %v4803_v1 }
 0x105   : > { %3854 = vmatpush3.bf16.msra.mxu1 %v4803_v1 }
 0x106   : > { %387 = vadd.xlane.f32.xlu0 %v371_v29  ;;  %v5600_v32 = vsub.f32 %v291_v2, %v340_v28  ;;  %v5602_v33 = vsub.f32 %v293_v3, %v342_v30  ;;  %3855 = vmatprep.subr.bf16.mxu1 %v4807_v19  ;;  %v4809_v29 = vld [vmem:[#allocation5 + $0x64] ss:$12 sps:$4 sm:$0xff]  }
 0x107   : > { %v315_v34 = vpop.xlane.xlu0 %314  ;;  %v317_v35 = vpop.xlane.xlu1 %316  ;;  %v4811_v30 = vld [vmem:[#allocation5 + $0x50] ss:$12 sps:$4 sm:$0xff]  }
 0x108   : > { %v343_v36 = vmul.f32 0.0078125, %v315_v34  ;;  %v372_v37 = vmul.f32 %v5600_v32, %v5600_v32  ;;  %v344_v38 = vmul.f32 0.0078125, %v317_v35  ;;  %v374_v39 = vmul.f32 %v5602_v33, %v5602_v33 }
 0x109   : > { %3856 = vmatpush3.bf16.msra.mxu1 %v4807_v19 }
 0x10a   : > { %391 = vadd.xlane.f32.xlu0 %v373_v31  ;;  %389 = vadd.xlane.f32.xlu1 %v372_v37  ;;  %v5608_v40 = vsub.f32 %v294_v4, %v343_v36  ;;  %v5610_v41 = vsub.f32 %v295_v5, %v344_v38  ;;  %v4812_v31 = vld [vmem:[#allocation5 + $0x60] ss:$12 sps:$4 sm:$0xff]   ;;  %v4815_v36 = vld [vmem:[#allocation5 + $0x68] ss:$12 sps:$4 sm:$0xff]   ;;  %v4816_v37 = vld [vmem:[#allocation5 + $0x78] ss:$12 sps:$4 sm:$0xff]  }
 0x10b   : > { %v319_v42 = vpop.xlane.xlu0 %318  ;;  %v321_v43 = vpop.xlane.xlu1 %320  ;;  %3857 = vmatprep.subr.bf16.mxu1 %v4811_v30  ;;  %v4819_v38 = vld [vmem:[#allocation5 + $0x80] ss:$12 sps:$4 sm:$0xff]  }
 0x10c   : > { %v345_v44 = vmul.f32 0.0078125, %v319_v42  ;;  %v375_v45 = vmul.f32 %v5608_v40, %v5608_v40  ;;  %v346_v46 = vmul.f32 0.0078125, %v321_v43  ;;  %v376_v47 = vmul.f32 %v5610_v41, %v5610_v41  ;;  %v4821_v42 = vld [vmem:[#allocation5 + $0xac] ss:$12 sps:$4 sm:$0xff]  }
 0x10d   : > { %3858 = vmatpush3.bf16.msra.mxu1 %v4811_v30  ;;  %v4823_v43 = vld [vmem:[#allocation5 + $0x98] ss:$12 sps:$4 sm:$0xff]  }
 0x10e   : > { %393 = vadd.xlane.f32.xlu1 %v374_v39  ;;  %395 = vadd.xlane.f32.xlu0 %v375_v45  ;;  %v5617_v48 = vsub.f32 %v5553_v6, %v345_v44  ;;  %v5620_v49 = vsub.f32 %v5556_v7, %v346_v46  ;;  %v4804_v7 = vld [vmem:[#allocation5 + $0x30] ss:$12 sps:$4 sm:$0xff]   ;;  %v4824_v44 = vld [vmem:[#allocation5 + $0xa8] ss:$12 sps:$4 sm:$0xff]   ;;  %v5305_v46 = vmov 0  }
 0x10f   : > { %v323_v50 = vpop.xlane.xlu0 %322  ;;  %v325_v51 = vpop.xlane.xlu1 %324  ;;  %700 = vmatpush1.bf16.msra.mxu0 %v4804_v7  ;;  %3859 = vmatprep.subr.bf16.mxu1 %v4815_v36  ;;  %v4820_v39 = vld [vmem:[#allocation5 + $0x90] ss:$12 sps:$4 sm:$0xff]  }
 0x110   : > { %v347_v52 = vmul.f32 0.0078125, %v323_v50  ;;  %v377_v53 = vmul.f32 %v5617_v48, %v5617_v48  ;;  %v348_v54 = vmul.f32 0.0078125, %v325_v51  ;;  %v378_v55 = vmul.f32 %v5620_v49, %v5620_v49  ;;  %701 = vmatprep.subr.bf16.mxu0 %v4805_v18  ;;  %v4825_v45 = vld [vmem:[#allocation5 + $0xb0] ss:$12 sps:$4 sm:$0xff]   ;;  %727 = vmatprep.mubr.bf16.mxu0 %v5305_v46 }
 0x111   : > { %3860 = vmatpush3.bf16.msra.mxu1 %v4815_v36 }
 0x112   : > { %397 = vadd.xlane.f32.xlu1 %v376_v47  ;;  %399 = vadd.xlane.f32.xlu0 %v377_v53  ;;  %v5627_v56 = vsub.f32 %v5559_v8, %v347_v52  ;;  %v5630_v57 = vsub.f32 %v5562_v9, %v348_v54 }
 0x113   : > { %v327_v59 = vpop.xlane.xlu0 %326  ;;  %v329_v60 = vpop.xlane.xlu1 %328  ;;  %702 = vmatpush1.bf16.msra.mxu0 %v4808_v22  ;;  %3861 = vmatprep.subr.bf16.mxu1 %v4819_v38  ;;  %v5671_v22 = vld [vmem:[%s6880_s1] ss:$0 sm:$0xff] }
 0x114   : > { %v349_v61 = vmul.f32 0.0078125, %v327_v59  ;;  %v379_v62 = vmul.f32 %v5627_v56, %v5627_v56  ;;  %v350_v63 = vmul.f32 0.0078125, %v329_v60  ;;  %v380_v2 = vmul.f32 %v5630_v57, %v5630_v57  ;;  %703 = vmatprep.subr.bf16.mxu0 %v4809_v29 }
 0x115   : > { %3862 = vmatpush3.bf16.msra.mxu1 %v4819_v38 }
 0x116   : > { %401 = vadd.xlane.f32.xlu1 %v378_v55  ;;  %403 = vadd.xlane.f32.xlu0 %v379_v62  ;;  %v5637_v3 = vsub.f32 %v5567_v10, %v349_v61  ;;  %v5640_v4 = vsub.f32 %v5570_v11, %v350_v63 }
 0x117   : > { %v331_v5 = vpop.xlane.xlu0 %330  ;;  %v333_v6 = vpop.xlane.xlu1 %332  ;;  %704 = vmatpush1.bf16.msra.mxu0 %v4812_v31  ;;  %3863 = vmatprep.subr.bf16.mxu1 %v4823_v43 }
 0x118   : > { %v351_v8 = vmul.f32 0.0078125, %v331_v5  ;;  %v381_v9 = vmul.f32 %v5637_v3, %v5637_v3  ;;  %v352_v16 = vmul.f32 0.0078125, %v333_v6  ;;  %v382_v10 = vmul.f32 %v5640_v4, %v5640_v4 }
 0x119   : > { %3864 = vmatpush3.bf16.msra.mxu1 %v4823_v43 }
 0x11a   : > { %405 = vadd.xlane.f32.xlu1 %v380_v2  ;;  %407 = vadd.xlane.f32.xlu0 %v381_v9  ;;  %v5647_v11 = vsub.f32 %v5577_v12, %v351_v8  ;;  %v5650_v17 = vsub.f32 %v5580_v13, %v352_v16 }
 0x11b   : > { %v335_v20 = vpop.xlane.xlu0 %334  ;;  %v337_v21 = vpop.xlane.xlu1 %336  ;;  %3865 = vmatprep.subr.bf16.mxu1 %v4825_v45 }
 0x11c   : > { %v353_v23 = vmul.f32 0.0078125, %v335_v20  ;;  %v383_v26 = vmul.f32 %v5647_v11, %v5647_v11  ;;  %v354_v27 = vmul.f32 0.0078125, %v337_v21  ;;  %v384_v12 = vmul.f32 %v5650_v17, %v5650_v17 }
 0x11d   : > { %3866 = vmatpush3.bf16.msra.mxu1 %v4825_v45 }
 0x11e   : > { %409 = vadd.xlane.f32.xlu1 %v382_v10  ;;  %411 = vadd.xlane.f32.xlu0 %v383_v26  ;;  %v5657_v13 = vsub.f32 %v5585_v14, %v353_v23  ;;  %v5660_v28 = vsub.f32 %v5588_v15, %v354_v27  ;;  %v4813_v14 = vld [vmem:[#allocation5 + $0x7c] ss:$12 sps:$4 sm:$0xff]   ;;  %v4817_v15 = vld [vmem:[#allocation5 + $0x94] ss:$12 sps:$4 sm:$0xff]  }
 0x11f   : > { %705 = vmatprep.subr.bf16.mxu0 %v4813_v14  ;;  %v5678_v14 = vld [vmem:[%s6881_s2] ss:$0 sm:$0xff] }
 0x120   : > { %v385_v34 = vmul.f32 %v5657_v13, %v5657_v13  ;;  %v386_v35 = vmul.f32 %v5660_v28, %v5660_v28  ;;  %706 = vmatpush1.bf16.msra.mxu0 %v4816_v37 }
 0x121   : > { %707 = vmatprep.subr.bf16.mxu0 %v4817_v15 }
 0x122   : > { %413 = vadd.xlane.f32.xlu1 %v384_v12  ;;  %415 = vadd.xlane.f32.xlu0 %v385_v34 }
 0x124   : > { %708 = vmatpush1.bf16.msra.mxu0 %v4820_v39 }
 0x125   : > { %709 = vmatprep.subr.bf16.mxu0 %v4821_v42 }
 0x126   : > { %417 = vadd.xlane.f32.xlu1 %v386_v35 }
 0x128   : > { %710 = vmatpush1.bf16.msra.mxu0 %v4824_v44 }
 0x193   : > { %v388_v47 = vpop.xlane.xlu0 %387 }
 0x194   : > { %v419_v50 = vmul.f32 0.0078125, %v388_v47 }
 0x196   : > { %v435_v51 = vadd.f32 1e-05, %v419_v50 }
 0x197   : > { %v390_v52 = vpop.xlane.xlu1 %389  ;;  %v392_v53 = vpop.xlane.xlu0 %391 }
 0x198   : > { %4834 = vrsqrt.f32 %v435_v51  ;;  %v420_v54 = vmul.f32 0.0078125, %v390_v52  ;;  %v421_v55 = vmul.f32 0.0078125, %v392_v53 }
 0x19a   : > { %v436_v58 = vadd.f32 1e-05, %v420_v54  ;;  %v437_v59 = vadd.f32 1e-05, %v421_v55 }
 0x19b   : > { %v394_v60 = vpop.xlane.xlu1 %393  ;;  %v396_v61 = vpop.xlane.xlu0 %395 }
 0x19c   : > { %4836 = vrsqrt.f32 %v436_v58  ;;  %v422_v62 = vmul.f32 0.0078125, %v394_v60  ;;  %v423_v63 = vmul.f32 0.0078125, %v396_v61 }
 0x19d   : > { %4838 = vrsqrt.f32 %v437_v59 }
 0x19e   : > { %v438_v0 = vadd.f32 1e-05, %v422_v62  ;;  %v439_v1 = vadd.f32 1e-05, %v423_v63 }
 0x19f   : > { %v398_v2 = vpop.xlane.xlu1 %397  ;;  %v400_v5 = vpop.xlane.xlu0 %399 }
 0x1a0   : > { %4840 = vrsqrt.f32 %v438_v0  ;;  %v424_v6 = vmul.f32 0.0078125, %v398_v2  ;;  %v425_v7 = vmul.f32 0.0078125, %v400_v5 }
 0x1a1   : > { %4842 = vrsqrt.f32 %v439_v1 }
 0x1a2   : > { %v4835_v8 = vpop.eup %4834  ;;  %v440_v9 = vadd.f32 1e-05, %v424_v6  ;;  %v441_v16 = vadd.f32 1e-05, %v425_v7 }
 0x1a3   : > { %v402_v10 = vpop.xlane.xlu1 %401  ;;  %v404_v18 = vpop.xlane.xlu0 %403  ;;  %v467_v19 = vmul.f32 %v4835_v8, %v5592_v24 }
 0x1a4   : > { %4844 = vrsqrt.f32 %v440_v9  ;;  %v426_v20 = vmul.f32 0.0078125, %v402_v10  ;;  %v427_v21 = vmul.f32 0.0078125, %v404_v18 }
 0x1a5   : > { %4846 = vrsqrt.f32 %v441_v16  ;;  %v489_v34 = vmul.f32 %v5671_v22, %v467_v19 }
 0x1a6   : > { %v4837_v23 = vpop.eup %4836  ;;  %v442_v26 = vadd.f32 1e-05, %v426_v20  ;;  %v443_v27 = vadd.f32 1e-05, %v427_v21 }
 0x1a7   : > { %v4839_v12 = vpop.eup %4838  ;;  %v406_v29 = vpop.xlane.xlu1 %405  ;;  %v468_v31 = vmul.f32 %v4837_v23, %v5600_v32  ;;  %v511_v45 = vadd.f32 %v5678_v14, %v489_v34 }
 0x1a8   : > { %v408_v30 = vpop.xlane.xlu0 %407  ;;  %4848 = vrsqrt.f32 %v442_v26  ;;  %v428_v24 = vmul.f32 0.0078125, %v406_v29  ;;  %v469_v36 = vmul.f32 %v4839_v12, %v5594_v25 }
 0x1a9   : > { %v429_v35 = vmul.f32 0.0078125, %v408_v30  ;;  %4850 = vrsqrt.f32 %v443_v27  ;;  %v490_v37 = vmul.f32 %v5671_v22, %v468_v31 }
 0x1aa   : > { %v4841_v15 = vpop.eup %4840  ;;  %v444_v38 = vadd.f32 1e-05, %v428_v24  ;;  %v491_v32 = vmul.f32 %v5671_v22, %v469_v36 }
 0x1ab   : > { %v445_v39 = vadd.f32 1e-05, %v429_v35  ;;  %v4843_v42 = vpop.eup %4842  ;;  %v410_v43 = vpop.xlane.xlu1 %409  ;;  %v512_v47 = vadd.f32 %v5678_v14, %v490_v37  ;;  %v470_v50 = vmul.f32 %v4841_v15, %v5602_v33 }
 0x1ac   : > { %v412_v44 = vpop.xlane.xlu0 %411  ;;  %4852 = vrsqrt.f32 %v444_v38  ;;  %v430_v51 = vmul.f32 0.0078125, %v410_v43  ;;  %v471_v54 = vmul.f32 %v4843_v42, %v5608_v40  ;;  %v513_v60 = vadd.f32 %v5678_v14, %v491_v32 }
 0x1ad   : > { %v431_v25 = vmul.f32 0.0078125, %v412_v44  ;;  %4854 = vrsqrt.f32 %v445_v39  ;;  %v527_v52 = vpack.c.bf16 %v512_v47, %v511_v45  ;;  %v492_v53 = vmul.f32 %v5671_v22, %v470_v50 }
 0x1ae   : > { %v4845_v55 = vpop.eup %4844  ;;  %v446_v58 = vadd.f32 1e-05, %v430_v51  ;;  %v493_v1 = vmul.f32 %v5671_v22, %v471_v54 }
 0x1af   : > { %v447_v59 = vadd.f32 1e-05, %v431_v25  ;;  %v4847_v61 = vpop.eup %4846  ;;  %v414_v62 = vpop.xlane.xlu1 %413  ;;  %728 = vmatmul.mubr.bf16.vlgmr.msra.gmra.mrb[0].mxu0 %v527_v52  ;;  %3867 = vmatprep.mubr.bf16.mxu1 %v527_v52  ;;  %v514_v33 = vadd.f32 %v5678_v14, %v492_v53  ;;  %v472_v0 = vmul.f32 %v4845_v55, %v5610_v41 }
 0x1b0   : > { %v416_v63 = vpop.xlane.xlu0 %415  ;;  %4856 = vrsqrt.f32 %v446_v58  ;;  %v432_v2 = vmul.f32 0.0078125, %v414_v62  ;;  %737 = vmatprep.mubr.bf16.mxu0 %v5305_v46  ;;  %v473_v40 = vmul.f32 %v4847_v61, %v5617_v48  ;;  %v515_v19 = vadd.f32 %v5678_v14, %v493_v1 }
 0x1b1   : > { %v433_v5 = vmul.f32 0.0078125, %v416_v63  ;;  %4858 = vrsqrt.f32 %v447_v59  ;;  %v528_v6 = vpack.c.bf16 %v514_v33, %v513_v60  ;;  %v494_v7 = vmul.f32 %v5671_v22, %v472_v0 }
 0x1b2   : > { %v4849_v8 = vpop.eup %4848  ;;  %v448_v9 = vadd.f32 1e-05, %v432_v2  ;;  %v495_v10 = vmul.f32 %v5671_v22, %v473_v40 }
 0x1b3   : > { %v449_v16 = vadd.f32 1e-05, %v433_v5  ;;  %v4851_v18 = vpop.eup %4850  ;;  %v418_v41 = vpop.xlane.xlu1 %417  ;;  %3868 = vmatmul.mubr.bf16.vlgmr.msra.gmra.mrb[0].mxu1 %v528_v6  ;;  %v516_v20 = vadd.f32 %v5678_v14, %v494_v7  ;;  %v474_v21 = vmul.f32 %v4849_v8, %v5620_v49 }
 0x1b4   : > { %4860 = vrsqrt.f32 %v448_v9  ;;  %v434_v48 = vmul.f32 0.0078125, %v418_v41  ;;  %v475_v23 = vmul.f32 %v4851_v18, %v5627_v56  ;;  %v517_v30 = vadd.f32 %v5678_v14, %v495_v10 }
 0x1b5   : > { %4862 = vrsqrt.f32 %v449_v16  ;;  %v529_v26 = vpack.c.bf16 %v516_v20, %v515_v19  ;;  %v496_v27 = vmul.f32 %v5671_v22, %v474_v21 }
 0x1b6   : > { %v4853_v12 = vpop.eup %4852  ;;  %v450_v29 = vadd.f32 1e-05, %v434_v48  ;;  %v497_v49 = vmul.f32 %v5671_v22, %v475_v23 }
 0x1b7   : > { %v4855_v31 = vpop.eup %4854  ;;  %738 = vmatmul.mubr.bf16.gmra.mrb[4].mxu0 %v528_v6  ;;  %3871 = vmatprep.mubr.bf16.mxu1 %v529_v26  ;;  %v518_v34 = vadd.f32 %v5678_v14, %v496_v27  ;;  %v476_v24 = vmul.f32 %v4853_v12, %v5630_v57 }
 0x1b8   : > { %4864 = vrsqrt.f32 %v450_v29  ;;  %747 = vmatprep.mubr.bf16.mxu0 %v5305_v46  ;;  %v477_v56 = vmul.f32 %v4855_v31, %v5637_v3  ;;  %v519_v39 = vadd.f32 %v5678_v14, %v497_v49 }
 0x1b9   : > { %v530_v35 = vpack.c.bf16 %v518_v34, %v517_v30  ;;  %v498_v36 = vmul.f32 %v5671_v22, %v476_v24 }
 0x1ba   : > { %v4857_v37 = vpop.eup %4856  ;;  %v499_v15 = vmul.f32 %v5671_v22, %v477_v56 }
 0x1bb   : > { %v4859_v38 = vpop.eup %4858  ;;  %3872 = vmatmul.mubr.bf16.gmra.mrb[4].mxu1 %v530_v35  ;;  %v520_v32 = vadd.f32 %v5678_v14, %v498_v36  ;;  %v478_v57 = vmul.f32 %v4857_v37, %v5640_v4 }
 0x1bc   : > { %v479_v42 = vmul.f32 %v4859_v38, %v5647_v11  ;;  %v521_v45 = vadd.f32 %v5678_v14, %v499_v15 }
 0x1bd   : > { %v531_v43 = vpack.c.bf16 %v520_v32, %v519_v39  ;;  %v500_v44 = vmul.f32 %v5671_v22, %v478_v57 }
 0x1be   : > { %v4861_v3 = vpop.eup %4860  ;;  %v501_v25 = vmul.f32 %v5671_v22, %v479_v42 }
 0x1bf   : > { %v4863_v47 = vpop.eup %4862  ;;  %748 = vmatmul.mubr.bf16.gmra.mrb[8].mxu0 %v529_v26  ;;  %3875 = vmatprep.mubr.bf16.mxu1 %v531_v43  ;;  %v522_v50 = vadd.f32 %v5678_v14, %v500_v44  ;;  %v480_v51 = vmul.f32 %v4861_v3, %v5650_v17 }
 0x1c0   : > { %757 = vmatprep.mubr.bf16.mxu0 %v5305_v46  ;;  %v481_v4 = vmul.f32 %v4863_v47, %v5657_v13  ;;  %v523_v54 = vadd.f32 %v5678_v14, %v501_v25 }
 0x1c1   : > { %v532_v11 = vpack.c.bf16 %v522_v50, %v521_v45  ;;  %v502_v52 = vmul.f32 %v5671_v22, %v480_v51 }
 0x1c2   : > { %v4865_v53 = vpop.eup %4864  ;;  %v503_v59 = vmul.f32 %v5671_v22, %v481_v4 }
 0x1c3   : > { %3876 = vmatmul.mubr.bf16.gmra.mrb[8].mxu1 %v532_v11  ;;  %v524_v55 = vadd.f32 %v5678_v14, %v502_v52  ;;  %v482_v58 = vmul.f32 %v4865_v53, %v5660_v28 }
 0x1c4   : > { %v525_v13 = vadd.f32 %v5678_v14, %v503_v59 }
 0x1c5   : > { %v533_v17 = vpack.c.bf16 %v524_v55, %v523_v54  ;;  %v504_v60 = vmul.f32 %v5671_v22, %v482_v58 }
 0x1c7   : > { %758 = vmatmul.mubr.bf16.gmra.mrb[12].mxu0 %v530_v35  ;;  %3879 = vmatprep.mubr.bf16.mxu1 %v533_v17  ;;  %v526_v61 = vadd.f32 %v5678_v14, %v504_v60 }
 0x1c8   : > { %767 = vmatprep.mubr.bf16.mxu0 %v5305_v46 }
 0x1c9   : > { %v534_v62 = vpack.c.bf16 %v526_v61, %v525_v13 }
 0x1cb   : > { %3880 = vmatmul.mubr.bf16.gmra.mrb[12].mxu1 %v534_v62 }
 0x1cf   : > { %768 = vmatmul.mubr.bf16.gmra.mrb[16].mxu0 %v531_v43 }
 0x1d0   : > { %777 = vmatprep.mubr.bf16.mxu0 %v5305_v46 }
 0x1d7   : > { %778 = vmatmul.mubr.bf16.gmra.mrb[20].mxu0 %v532_v11 }
 0x1d8   : > { %787 = vmatprep.mubr.bf16.mxu0 %v5305_v46 }
 0x1df   : > { %788 = vmatmul.mubr.bf16.gmra.mrb[24].mxu0 %v533_v17 }
 0x1e0   : > { %797 = vmatprep.mubr.bf16.mxu0 %v5305_v46 }
 0x1e7   : > { %798 = vmatmul.mubr.bf16.gmra.mrb[28].mxu0 %v534_v62 }
 0x282   : > { %v729_v28 = vpop.f32.mrb[0].mxu0 }
 0x283   : > { %v731_v22 = vpop.f32.mrb[1].mxu0 }
 0x284   : > { %v733_v63 = vpop.f32.mrb[2].mxu0 }
 0x285   : > { %v1065_v33 = vpack.c.bf16 %v733_v63, %v729_v28  ;;  %v735_v14 = vpop.f32.mrb[3].mxu0  ;;  %v5732_v0 = vpack.i.bf16 %v733_v63, %v729_v28 }
 0x286   : > { %v1257_v1 = vpack.c.bf16 %v735_v14, %v731_v22  ;;  %v3869_v2 = vpop.f32.mrb[0].mxu1  ;;  %v5734_v5 = vpack.i.bf16 %v735_v14, %v731_v22 }
 0x287   : > { %v842_v40 = vpop.f32.mrb[1].mxu1  ;;  %3899 = vmatprep.mubr.msk.bf16.mxu0 %vm1481_vm0, %v1065_v33 }
 0x288   : > { %v3870_v6 = vpop.f32.mrb[2].mxu1  ;;  %4315 = vrot.lane.b32.xlu0 %v5734_v5, %s5306_s6  ;;  %4187 = vmatprep.subr.msk.bf16.mxu0 %vm1481_vm0, %v1257_v1  ;;  %v1507_v46 = vsel %vm1481_vm0, %v1257_v1, 0 }
 0x289   : > { %v845_v7 = vpop.f32.mrb[3].mxu1  ;;  %3884 = vmatpush3.bf16.xpose.msra.mxu0 %v1507_v46  ;;  %v5741_v8 = vpack.i.bf16 %v3870_v6, %v3869_v2  ;;  %v5743_v9 = vpack.c.bf16 %v3870_v6, %v3869_v2 }
 0x28a   : > { %v5745_v16 = vpop.f32.mrb[4].mxu0  ;;  %v5747_v10 = vpack.i.bf16 %v845_v7, %v842_v40  ;;  %v5749_v18 = vpack.c.bf16 %v845_v7, %v842_v40 }
 0x28b   : > { %v741_v41 = vpop.f32.mrb[5].mxu0 }
 0x28c   : > { %v5751_v19 = vpop.f32.mrb[6].mxu0 }
 0x28d   : > { %v1066_v20 = vpack.c.bf16 %v5751_v19, %v5745_v16  ;;  %v745_v21 = vpop.f32.mrb[7].mxu0  ;;  %v5757_v48 = vpack.i.bf16 %v5751_v19, %v5745_v16 }
 0x28e   : > { %v1258_v23 = vpack.c.bf16 %v745_v21, %v741_v41  ;;  %v3873_v26 = vpop.f32.mrb[4].mxu1  ;;  %v5759_v27 = vpack.i.bf16 %v745_v21, %v741_v41 }
 0x28f   : > { %v858_v12 = vpop.f32.mrb[5].mxu1 }
 0x290   : > { %v3874_v29 = vpop.f32.mrb[6].mxu1  ;;  %4320 = vrot.lane.b32.xlu1 %v5759_v27, %s5306_s6  ;;  %4188 = vmatprep.subr.msk.bf16.mxu0 %vm1481_vm0, %v1258_v23  ;;  %v1510_v30 = vsel %vm1481_vm0, %v1258_v23, 0 }
 0x291   : > { %v5765_v31 = vpack.i.bf16 %v3874_v29, %v3873_v26  ;;  %v861_v34 = vpop.f32.mrb[7].mxu1  ;;  %3886 = vmatpush3.bf16.xpose.msra.mxu0 %v1510_v30  ;;  %v5767_v24 = vpack.c.bf16 %v3874_v29, %v3873_v26 }
 0x292   : > { %v5769_v49 = vpop.f32.mrb[8].mxu0  ;;  %v5771_v56 = vpack.i.bf16 %v861_v34, %v858_v12  ;;  %v5773_v35 = vpack.c.bf16 %v861_v34, %v858_v12 }
 0x293   : > { %v751_v36 = vpop.f32.mrb[9].mxu0 }
 0x294   : > { %v5775_v37 = vpop.f32.mrb[10].mxu0 }
 0x295   : > { %v1067_v15 = vpack.c.bf16 %v5775_v37, %v5769_v49  ;;  %v755_v38 = vpop.f32.mrb[11].mxu0  ;;  %v5781_v39 = vpack.i.bf16 %v5775_v37, %v5769_v49 }
 0x296   : > { %v1259_v32 = vpack.c.bf16 %v755_v38, %v751_v36  ;;  %v3877_v57 = vpop.f32.mrb[8].mxu1  ;;  %v5783_v42 = vpack.i.bf16 %v755_v38, %v751_v36 }
 0x297   : > { %v874_v43 = vpop.f32.mrb[9].mxu1 }
 0x298   : > { %v3878_v44 = vpop.f32.mrb[10].mxu1  ;;  %4325 = vrot.lane.b32.xlu1 %v5783_v42, %s5306_s6  ;;  %4189 = vmatprep.subr.msk.bf16.mxu0 %vm1481_vm0, %v1259_v32  ;;  %v1513_v3 = vsel %vm1481_vm0, %v1259_v32, 0 }
 0x299   : > { %v5789_v45 = vpack.i.bf16 %v3878_v44, %v3877_v57  ;;  %v877_v47 = vpop.f32.mrb[11].mxu1  ;;  %3888 = vmatpush3.bf16.xpose.msra.mxu0 %v1513_v3  ;;  %v5791_v50 = vpack.c.bf16 %v3878_v44, %v3877_v57 }
 0x29a   : > { %v5793_v51 = vpack.i.bf16 %v877_v47, %v874_v43  ;;  %v5795_v25 = vpop.f32.mrb[12].mxu0  ;;  %v5797_v4 = vpack.c.bf16 %v877_v47, %v874_v43 }
 0x29b   : > { %v761_v11 = vpop.f32.mrb[13].mxu0 }
 0x29c   : > { %v5799_v52 = vpop.f32.mrb[14].mxu0 }
 0x29d   : > { %v1068_v53 = vpack.c.bf16 %v5799_v52, %v5795_v25  ;;  %v765_v54 = vpop.f32.mrb[15].mxu0  ;;  %v5805_v55 = vpack.i.bf16 %v5799_v52, %v5795_v25 }
 0x29e   : > { %v1260_v58 = vpack.c.bf16 %v765_v54, %v761_v11  ;;  %v3881_v59 = vpop.f32.mrb[12].mxu1  ;;  %v5807_v17 = vpack.i.bf16 %v765_v54, %v761_v11 }
 0x29f   : > { %v890_v60 = vpop.f32.mrb[13].mxu1 }
 0x2a0   : > { %v3882_v13 = vpop.f32.mrb[14].mxu1  ;;  %4330 = vrot.lane.b32.xlu1 %v5807_v17, %s5306_s6  ;;  %4190 = vmatprep.subr.msk.bf16.mxu0 %vm1481_vm0, %v1260_v58  ;;  %v1516_v61 = vsel %vm1481_vm0, %v1260_v58, 0 }
 0x2a1   : > { %v5813_v62 = vpack.i.bf16 %v3882_v13, %v3881_v59  ;;  %v893_v28 = vpop.f32.mrb[15].mxu1  ;;  %3890 = vmatpush3.bf16.xpose.msra.mxu0 %v1516_v61  ;;  %v5815_v22 = vpack.c.bf16 %v3882_v13, %v3881_v59 }
 0x2a2   : > { %v5817_v63 = vpop.f32.mrb[16].mxu0  ;;  %v5819_v33 = vpack.i.bf16 %v893_v28, %v890_v60  ;;  %v5821_v14 = vpack.c.bf16 %v893_v28, %v890_v60 }
 0x2a3   : > { %6949 = vst [vmem:[#allocation12_spill] sm:$0xff] %v5813_v62  ;;  %v771_v1 = vpop.f32.mrb[17].mxu0 }
 0x2a4   : > { %v773_v2 = vpop.f32.mrb[18].mxu0 }
 0x2a5   : > { %v1069_v40 = vpack.c.bf16 %v773_v2, %v5817_v63  ;;  %v775_v6 = vpop.f32.mrb[19].mxu0  ;;  %v5825_v46 = vpack.i.bf16 %v773_v2, %v5817_v63 }
 0x2a6   : > { %v1261_v7 = vpack.c.bf16 %v775_v6, %v771_v1  ;;  %v4334_v41 = vpack.i.bf16 %v775_v6, %v771_v1 }
 0x2a8   : > { %4335 = vrot.lane.b32.xlu0 %v4334_v41, %s5306_s6  ;;  %4191 = vmatprep.subr.msk.bf16.mxu0 %vm1481_vm0, %v1261_v7  ;;  %v1519_v21 = vsel %vm1481_vm0, %v1261_v7, 0 }
 0x2a9   : > { %3892 = vmatpush3.bf16.xpose.msra.mxu0 %v1519_v21 }
 0x2aa   : > { %v779_v23 = vpop.f32.mrb[20].mxu0 }
 0x2ab   : > { %v781_v26 = vpop.f32.mrb[21].mxu0 }
 0x2ac   : > { %v783_v12 = vpop.f32.mrb[22].mxu0 }
 0x2ad   : > { %v1070_v29 = vpack.c.bf16 %v783_v12, %v779_v23  ;;  %v785_v30 = vpop.f32.mrb[23].mxu0  ;;  %v5830_v34 = vpack.i.bf16 %v783_v12, %v779_v23 }
 0x2ae   : > { %v1262_v36 = vpack.c.bf16 %v785_v30, %v781_v26  ;;  %v4339_v38 = vpack.i.bf16 %v785_v30, %v781_v26 }
 0x2b0   : > { %4340 = vrot.lane.b32.xlu1 %v4339_v38, %s5306_s6  ;;  %4192 = vmatprep.subr.msk.bf16.mxu0 %vm1481_vm0, %v1262_v36  ;;  %v1522_v32 = vsel %vm1481_vm0, %v1262_v36, 0 }
 0x2b1   : > { %3894 = vmatpush3.bf16.xpose.msra.mxu0 %v1522_v32 }
 0x2b2   : > { %v789_v57 = vpop.f32.mrb[24].mxu0 }
 0x2b3   : > { %v791_v43 = vpop.f32.mrb[25].mxu0 }
 0x2b4   : > { %v793_v44 = vpop.f32.mrb[26].mxu0 }
 0x2b5   : > { %v1071_v3 = vpack.c.bf16 %v793_v44, %v789_v57  ;;  %v795_v47 = vpop.f32.mrb[27].mxu0  ;;  %v5835_v11 = vpack.i.bf16 %v793_v44, %v789_v57 }
 0x2b6   : > { %v1263_v54 = vpack.c.bf16 %v795_v47, %v791_v43  ;;  %v4344_v58 = vpack.i.bf16 %v795_v47, %v791_v43 }
 0x2b8   : > { %4345 = vrot.lane.b32.xlu0 %v4344_v58, %s5306_s6  ;;  %4193 = vmatprep.subr.msk.bf16.mxu0 %vm1481_vm0, %v1263_v54  ;;  %v1525_v59 = vsel %vm1481_vm0, %v1263_v54, 0 }
 0x2b9   : > { %3896 = vmatpush3.bf16.xpose.msra.mxu0 %v1525_v59 }
 0x2ba   : > { %v799_v60 = vpop.f32.mrb[28].mxu0 }
 0x2bb   : > { %v801_v13 = vpop.f32.mrb[29].mxu0 }
 0x2bc   : > { %4355 = vrot.lane.b32.xlu0 %v5734_v5, %s5307_s9  ;;  %v803_v61 = vpop.f32.mrb[30].mxu0 }
 0x2bd   : > { %v1072_v28 = vpack.c.bf16 %v803_v61, %v799_v60  ;;  %v805_v63 = vpop.f32.mrb[31].mxu0  ;;  %v5842_v1 = vpack.i.bf16 %v803_v61, %v799_v60 }
 0x2be   : > { %v1264_v2 = vpack.c.bf16 %v805_v63, %v801_v13  ;;  %v4349_v6 = vpack.i.bf16 %v805_v63, %v801_v13 }
 0x2c0   : > { %4365 = vrot.lane.b32.xlu0 %v5734_v5, %s5308_s11  ;;  %4350 = vrot.lane.b32.xlu1 %v4349_v6, %s5306_s6  ;;  %v1528_v7 = vsel %vm1481_vm0, %v1264_v2, 0 }
 0x2c1   : > { %4194 = vmatprep.subr.msk.bf16.mxu0 %vm1481_vm0, %v1264_v2 }
 0x2c2   : > { %3898 = vmatpush3.bf16.xpose.msra.mxu0 %v1528_v7 }
 0x2c4   : > { %4375 = vrot.lane.b32.xlu0 %v5759_v27, %s5307_s9  ;;  %4360 = vrot.lane.b32.xlu1 %v5732_v0, %s5306_s6 }
 0x2c8   : > { %4385 = vrot.lane.b32.xlu0 %v5783_v42, %s5307_s9  ;;  %4370 = vrot.lane.b32.xlu1 %v5757_v48, %s5306_s6 }
 0x2c9   : > { %3900 = vmatmul.mubr.msk.bf16.vlgmr.msra.gmra.mrb[32].mxu0 %vm1481_vm0, %v1066_v20 }
 0x2ca   : > { %3903 = vmatprep.mubr.msk.bf16.mxu0 %vm1481_vm0, %v1067_v15 }
 0x2cc   : > { %4395 = vrot.lane.b32.xlu0 %v5807_v17, %s5307_s9  ;;  %4380 = vrot.lane.b32.xlu1 %v5759_v27, %s5308_s11 }
 0x2d0   : > { %4405 = vrot.lane.b32.xlu0 %v4334_v41, %s5307_s9  ;;  %4390 = vrot.lane.b32.xlu1 %v5783_v42, %s5308_s11 }
 0x2d1   : > { %3904 = vmatmul.mubr.msk.bf16.gmra.mrb[36].mxu0 %vm1481_vm0, %v1068_v53 }
 0x2d2   : > { %3907 = vmatprep.mubr.msk.bf16.mxu0 %vm1481_vm0, %v1069_v40 }
 0x2d4   : > { %4415 = vrot.lane.b32.xlu0 %v5781_v39, %s5306_s6  ;;  %4400 = vrot.lane.b32.xlu1 %v5807_v17, %s5308_s11 }
 0x2d8   : > { %4425 = vrot.lane.b32.xlu0 %v5805_v55, %s5306_s6  ;;  %4410 = vrot.lane.b32.xlu1 %v4334_v41, %s5308_s11 }
 0x2d9   : > { %3908 = vmatmul.mubr.msk.bf16.gmra.mrb[40].mxu0 %vm1481_vm0, %v1070_v29 }
 0x2da   : > { %3911 = vmatprep.mubr.msk.bf16.mxu0 %vm1481_vm0, %v1071_v3 }
 0x2dc   : > { %4435 = vrot.lane.b32.xlu0 %v5825_v46, %s5306_s6  ;;  %4420 = vrot.lane.b32.xlu1 %v4339_v38, %s5307_s9 }
 0x2e0   : > { %4445 = vrot.lane.b32.xlu0 %v5830_v34, %s5306_s6  ;;  %4430 = vrot.lane.b32.xlu1 %v4339_v38, %s5308_s11 }
 0x2e1   : > { %3912 = vmatmul.mubr.msk.bf16.gmra.mrb[44].mxu0 %vm1481_vm0, %v1072_v28 }
 0x2e4   : > { %4455 = vrot.lane.b32.xlu0 %v5835_v11, %s5306_s6  ;;  %4440 = vrot.lane.b32.xlu1 %v4344_v58, %s5307_s9 }
 0x2e8   : > { %4460 = vrot.lane.b32.xlu0 %v5842_v1, %s5306_s6  ;;  %4450 = vrot.lane.b32.xlu1 %v4344_v58, %s5308_s11 }
 0x2ec   : > { %4465 = vrot.lane.b32.xlu0 %v5732_v0, %s5307_s9  ;;  %4470 = vrot.lane.b32.xlu1 %v4349_v6, %s5307_s9 }
 0x2f0   : > { %4485 = vrot.lane.b32.xlu0 %v5732_v0, %s5308_s11  ;;  %4475 = vrot.lane.b32.xlu1 %v4349_v6, %s5308_s11 }
 0x2f4   : > { %4495 = vrot.lane.b32.xlu0 %v5781_v39, %s5307_s9  ;;  %4480 = vrot.lane.b32.xlu1 %v5757_v48, %s5307_s9 }
 0x2f8   : > { %4505 = vrot.lane.b32.xlu0 %v5781_v39, %s5308_s11  ;;  %4490 = vrot.lane.b32.xlu1 %v5757_v48, %s5308_s11 }
 0x2fa   : > { %v4316_v5 = vpop.permute.xlu0 %4315 }
 0x2fb   : > { %v4318_v16 = vunpack.i.h.bf16 %v4316_v5  ;;  %v4317_v19 = vunpack.i.l.bf16 %v4316_v5 }
 0x2fc   : > { %4515 = vrot.lane.b32.xlu0 %v5825_v46, %s5307_s9  ;;  %4500 = vrot.lane.b32.xlu1 %v5805_v55, %s5307_s9 }
 0x2fd   : > { %v1265_v0 = vpack.c.bf16 %v4318_v16, %v4317_v19 }
 0x2ff   : > { %4195 = vmatprep.subr.msk.bf16.mxu1 %vm1481_vm0, %v1265_v0  ;;  %v1652_v20 = vsel %vm1481_vm0, %v1265_v0, 0 }
 0x300   : > { %3916 = vmatpush3.bf16.xpose.msra.mxu1 %v1652_v20  ;;  %4525 = vrot.lane.b32.xlu0 %v5825_v46, %s5308_s11 }
 0x301   : > { %4510 = vrot.lane.b32.xlu1 %v5805_v55, %s5308_s11 }
 0x302   : > { %v4321_v48 = vpop.permute.xlu1 %4320 }
 0x303   : > { %v4323_v27 = vunpack.i.h.bf16 %v4321_v48  ;;  %v4322_v49 = vunpack.i.l.bf16 %v4321_v48 }
 0x304   : > { %4535 = vrot.lane.b32.xlu0 %v5835_v11, %s5307_s9 }
 0x305   : > { %v1266_v37 = vpack.c.bf16 %v4323_v27, %v4322_v49  ;;  %4520 = vrot.lane.b32.xlu1 %v5830_v34, %s5307_s9 }
 0x307   : > { %4196 = vmatprep.subr.msk.bf16.mxu1 %vm1481_vm0, %v1266_v37  ;;  %v1655_v15 = vsel %vm1481_vm0, %v1266_v37, 0 }
 0x308   : > { %3918 = vmatpush3.bf16.xpose.msra.mxu1 %v1655_v15  ;;  %4545 = vrot.lane.b32.xlu0 %v5835_v11, %s5308_s11 }
 0x309   : > { %4530 = vrot.lane.b32.xlu1 %v5830_v34, %s5308_s11 }
 0x30a   : > { %v4326_v39 = vpop.permute.xlu1 %4325 }
 0x30b   : > { %v4328_v42 = vunpack.i.h.bf16 %v4326_v39  ;;  %v4327_v25 = vunpack.i.l.bf16 %v4326_v39 }
 0x30c   : > { %4555 = vrot.lane.b32.xlu0 %v5747_v10, %s5306_s6 }
 0x30d   : > { %v1267_v52 = vpack.c.bf16 %v4328_v42, %v4327_v25  ;;  %4540 = vrot.lane.b32.xlu1 %v5842_v1, %s5307_s9 }
 0x30f   : > { %4197 = vmatprep.subr.msk.bf16.mxu1 %vm1481_vm0, %v1267_v52  ;;  %v1658_v53 = vsel %vm1481_vm0, %v1267_v52, 0 }
 0x310   : > { %3920 = vmatpush3.bf16.xpose.msra.mxu1 %v1658_v53  ;;  %4565 = vrot.lane.b32.xlu0 %v5771_v56, %s5306_s6 }
 0x311   : > { %4550 = vrot.lane.b32.xlu1 %v5842_v1, %s5308_s11 }
 0x312   : > { %v4331_v55 = vpop.permute.xlu1 %4330 }
 0x313   : > { %v4333_v17 = vunpack.i.h.bf16 %v4331_v55  ;;  %v4332_v40 = vunpack.i.l.bf16 %v4331_v55 }
 0x314   : > { %4575 = vrot.lane.b32.xlu0 %v5793_v51, %s5306_s6 }
 0x315   : > { %v1268_v46 = vpack.c.bf16 %v4333_v17, %v4332_v40  ;;  %4560 = vrot.lane.b32.xlu1 %v5741_v8, %s5306_s6 }
 0x317   : > { %4198 = vmatprep.subr.msk.bf16.mxu1 %vm1481_vm0, %v1268_v46  ;;  %v1661_v41 = vsel %vm1481_vm0, %v1268_v46, 0 }
 0x318   : > { %3922 = vmatpush3.bf16.xpose.msra.mxu1 %v1661_v41  ;;  %4585 = vrot.lane.b32.xlu0 %v5819_v33, %s5306_s6 }
 0x319   : > { %4570 = vrot.lane.b32.xlu1 %v5765_v31, %s5306_s6 }
 0x31a   : > { %v4336_v21 = vpop.permute.xlu0 %4335 }
 0x31b   : > { %v4338_v23 = vunpack.i.h.bf16 %v4336_v21  ;;  %v4337_v26 = vunpack.i.l.bf16 %v4336_v21 }
 0x31c   : > { %4595 = vrot.lane.b32.xlu0 %v5747_v10, %s5307_s9 }
 0x31d   : > { %v1269_v12 = vpack.c.bf16 %v4338_v23, %v4337_v26  ;;  %4580 = vrot.lane.b32.xlu1 %v5789_v45, %s5306_s6 }
 0x31f   : > { %4199 = vmatprep.subr.msk.bf16.mxu1 %vm1481_vm0, %v1269_v12  ;;  %v1664_v29 = vsel %vm1481_vm0, %v1269_v12, 0 }
 0x320   : > { %3924 = vmatpush3.bf16.xpose.msra.mxu1 %v1664_v29  ;;  %4610 = vrot.lane.b32.xlu0 %v5741_v8, %s5308_s11 }
 0x321   : > { %4590 = vrot.lane.b32.xlu1 %v5813_v62, %s5306_s6 }
 0x322   : > { %v4341_v30 = vpop.permute.xlu1 %4340 }
 0x323   : > { %v4343_v34 = vunpack.i.h.bf16 %v4341_v30  ;;  %v4342_v36 = vunpack.i.l.bf16 %v4341_v30 }
 0x324   : > { %4630 = vrot.lane.b32.xlu0 %v5765_v31, %s5308_s11 }
 0x325   : > { %v1270_v38 = vpack.c.bf16 %v4343_v34, %v4342_v36  ;;  %4600 = vrot.lane.b32.xlu1 %v5747_v10, %s5308_s11 }
 0x327   : > { %4200 = vmatprep.subr.msk.bf16.mxu1 %vm1481_vm0, %v1270_v38  ;;  %v1667_v32 = vsel %vm1481_vm0, %v1270_v38, 0 }
 0x328   : > { %3926 = vmatpush3.bf16.xpose.msra.mxu1 %v1667_v32  ;;  %4640 = vrot.lane.b32.xlu0 %v5793_v51, %s5308_s11 }
 0x329   : > { %4605 = vrot.lane.b32.xlu1 %v5741_v8, %s5307_s9 }
 0x32a   : > { %v4346_v57 = vpop.permute.xlu0 %4345 }
 0x32b   : > { %v4348_v43 = vunpack.i.h.bf16 %v4346_v57  ;;  %v4347_v44 = vunpack.i.l.bf16 %v4346_v57 }
 0x32c   : > { %4655 = vrot.lane.b32.xlu0 %v5819_v33, %s5307_s9 }
 0x32d   : > { %v1271_v3 = vpack.c.bf16 %v4348_v43, %v4347_v44  ;;  %4615 = vrot.lane.b32.xlu1 %v5771_v56, %s5307_s9 }
 0x32e   : > { %v4356_v10 = vpop.permute.xlu0 %4355 }
 0x32f   : > { %v4358_v47 = vunpack.i.h.bf16 %v4356_v10  ;;  %v4357_v11 = vunpack.i.l.bf16 %v4356_v10  ;;  %4201 = vmatprep.subr.msk.bf16.mxu1 %vm1481_vm0, %v1271_v3  ;;  %v1670_v54 = vsel %vm1481_vm0, %v1271_v3, 0 }
 0x330   : > { %3928 = vmatpush3.bf16.xpose.msra.mxu1 %v1670_v54  ;;  %4660 = vrot.lane.b32.xlu0 %v5819_v33, %s5308_s11 }
 0x331   : > { %v1273_v8 = vpack.c.bf16 %v4358_v47, %v4357_v11  ;;  %4620 = vrot.lane.b32.xlu1 %v5771_v56, %s5308_s11 }
 0x332   : > { %v4366_v58 = vpop.permute.xlu0 %4365  ;;  %v4351_v59 = vpop.permute.xlu1 %4350 }
 0x333   : > { %v4353_v60 = vunpack.i.h.bf16 %v4351_v59  ;;  %v4352_v13 = vunpack.i.l.bf16 %v4351_v59  ;;  %4203 = vmatprep.subr.msk.bf16.mxu0 %vm1481_vm0, %v1273_v8  ;;  %v4368_v61 = vunpack.i.h.bf16 %v4366_v58  ;;  %v4367_v28 = vunpack.i.l.bf16 %v4366_v58 }
 0x334   : > { %4665 = vrot.lane.b32.xlu0 %v5813_v62, %s5307_s9  ;;  %v1797_v63 = vsel %vm1481_vm0, %v1273_v8, 0 }
 0x335   : > { %v1272_v1 = vpack.c.bf16 %v4353_v60, %v4352_v13  ;;  %4625 = vrot.lane.b32.xlu1 %v5765_v31, %s5307_s9  ;;  %3948 = vmatpush3.bf16.xpose.msra.mxu0 %v1797_v63  ;;  %v1281_v16 = vpack.c.bf16 %v4368_v61, %v4367_v28 }
 0x336   : > { %v4376_v33 = vpop.permute.xlu0 %4375  ;;  %v4361_v56 = vpop.permute.xlu1 %4360 }
 0x337   : > { %v4378_v2 = vunpack.i.h.bf16 %v4376_v33  ;;  %v4377_v6 = vunpack.i.l.bf16 %v4376_v33  ;;  %v4363_v7 = vunpack.i.h.bf16 %v4361_v56  ;;  %v4362_v5 = vunpack.i.l.bf16 %v4361_v56  ;;  %4202 = vmatprep.subr.msk.bf16.mxu1 %vm1481_vm0, %v1272_v1 }
 0x338   : > { %v1673_v19 = vsel %vm1481_vm0, %v1272_v1, 0  ;;  %v1942_v46 = vsel %vm1481_vm0, %v1281_v16, 0 }
 0x339   : > { %v1274_v0 = vpack.c.bf16 %v4378_v2, %v4377_v6  ;;  %v1073_v20 = vpack.c.bf16 %v4363_v7, %v4362_v5  ;;  %4635 = vrot.lane.b32.xlu1 %v5793_v51, %s5307_s9  ;;  %3930 = vmatpush3.bf16.xpose.msra.mxu1 %v1673_v19 }
 0x33a   : > { %4211 = vmatprep.subr.msk.bf16.mxu1 %vm1481_vm0, %v1281_v16  ;;  %v4386_v31 = vpop.permute.xlu0 %4385  ;;  %v4371_v48 = vpop.permute.xlu1 %4370 }
 0x33b   : > { %v4388_v27 = vunpack.i.h.bf16 %v4386_v31  ;;  %v4387_v49 = vunpack.i.l.bf16 %v4386_v31  ;;  %v4373_v37 = vunpack.i.h.bf16 %v4371_v48  ;;  %v4372_v15 = vunpack.i.l.bf16 %v4371_v48  ;;  %3931 = vmatprep.mubr.msk.bf16.mxu1 %vm1481_vm0, %v1073_v20  ;;  %4204 = vmatprep.subr.msk.bf16.mxu0 %vm1481_vm0, %v1274_v0 }
 0x33c   : > { %v1800_v39 = vsel %vm1481_vm0, %v1274_v0, 0 }
 0x33d   : > { %v1275_v42 = vpack.c.bf16 %v4388_v27, %v4387_v49  ;;  %v1074_v25 = vpack.c.bf16 %v4373_v37, %v4372_v15  ;;  %4645 = vrot.lane.b32.xlu1 %v5789_v45, %s5307_s9  ;;  %3950 = vmatpush3.bf16.xpose.msra.mxu0 %v1800_v39 }
 0x33e   : > { %v4396_v51 = vpop.permute.xlu0 %4395  ;;  %v4381_v52 = vpop.permute.xlu1 %4380 }
 0x33f   : > { %v4383_v53 = vunpack.i.h.bf16 %v4381_v52  ;;  %v4382_v55 = vunpack.i.l.bf16 %v4381_v52  ;;  %4205 = vmatprep.subr.msk.bf16.mxu0 %vm1481_vm0, %v1275_v42  ;;  %v4398_v17 = vunpack.i.h.bf16 %v4396_v51  ;;  %v4397_v40 = vunpack.i.l.bf16 %v4396_v51 }
 0x340   : > { %3932 = vmatmul.mubr.msk.bf16.vlgmr.msra.gmra.mrb[16].mxu1 %vm1481_vm0, %v1074_v25  ;;  %v1803_v30 = vsel %vm1481_vm0, %v1275_v42, 0 }
 0x341   : > { %v1282_v41 = vpack.c.bf16 %v4383_v53, %v4382_v55  ;;  %4650 = vrot.lane.b32.xlu1 %v5789_v45, %s5308_s11  ;;  %3980 = vmatpush3.bf16.xpose.msra.mxu1 %v1942_v46  ;;  %v1276_v26 = vpack.c.bf16 %v4398_v17, %v4397_v40 }
 0x342   : > { %v4406_v21 = vpop.permute.xlu0 %4405  ;;  %v4391_v23 = vpop.permute.xlu1 %4390 }
 0x343   : > { %4212 = vmatprep.subr.msk.bf16.mxu1 %vm1481_vm0, %v1282_v41  ;;  %v4393_v12 = vunpack.i.h.bf16 %v4391_v23  ;;  %v4392_v29 = vunpack.i.l.bf16 %v4391_v23  ;;  %v4408_v57 = vunpack.i.h.bf16 %v4406_v21  ;;  %v4407_v43 = vunpack.i.l.bf16 %v4406_v21 }
 0x344   : > { %v1945_v44 = vsel %vm1481_vm0, %v1282_v41, 0  ;;  %v1806_v60 = vsel %vm1481_vm0, %v1276_v26, 0 }
 0x345   : > { %3952 = vmatpush3.bf16.xpose.msra.mxu0 %v1803_v30  ;;  %v1283_v45 = vpack.c.bf16 %v4393_v12, %v4392_v29  ;;  %v1277_v8 = vpack.c.bf16 %v4408_v57, %v4407_v43 }
 0x346   : > { %4206 = vmatprep.subr.msk.bf16.mxu0 %vm1481_vm0, %v1276_v26  ;;  %v4416_v34 = vpop.permute.xlu0 %4415  ;;  %v4401_v36 = vpop.permute.xlu1 %4400 }
 0x347   : > { %v4418_v38 = vunpack.i.h.bf16 %v4416_v34  ;;  %v4417_v32 = vunpack.i.l.bf16 %v4416_v34  ;;  %v4403_v58 = vunpack.i.h.bf16 %v4401_v36  ;;  %v4402_v59 = vunpack.i.l.bf16 %v4401_v36 }
 0x348   : > { %v1948_v6 = vsel %vm1481_vm0, %v1283_v45, 0  ;;  %v1809_v27 = vsel %vm1481_vm0, %v1277_v8, 0 }
 0x349   : > { %v1075_v3 = vpack.c.bf16 %v4418_v38, %v4417_v32  ;;  %3982 = vmatpush3.bf16.xpose.msra.mxu1 %v1945_v44  ;;  %v1284_v33 = vpack.c.bf16 %v4403_v58, %v4402_v59 }
 0x34a   : > { %4213 = vmatprep.subr.msk.bf16.mxu1 %vm1481_vm0, %v1283_v45  ;;  %v4426_v10 = vpop.permute.xlu0 %4425  ;;  %v4411_v47 = vpop.permute.xlu1 %4410 }
 0x34b   : > { %v4428_v11 = vunpack.i.h.bf16 %v4426_v10  ;;  %v4427_v54 = vunpack.i.l.bf16 %v4426_v10  ;;  %3935 = vmatprep.mubr.msk.bf16.mxu1 %vm1481_vm0, %v1075_v3  ;;  %v4413_v20 = vunpack.i.h.bf16 %v4411_v47  ;;  %v4412_v31 = vunpack.i.l.bf16 %v4411_v47 }
 0x34c   : > { %v1951_v53 = vsel %vm1481_vm0, %v1284_v33, 0 }
 0x34d   : > { %v1076_v13 = vpack.c.bf16 %v4428_v11, %v4427_v54  ;;  %3954 = vmatpush3.bf16.xpose.msra.mxu0 %v1806_v60  ;;  %v1285_v25 = vpack.c.bf16 %v4413_v20, %v4412_v31 }
 0x34e   : > { %4207 = vmatprep.subr.msk.bf16.mxu0 %vm1481_vm0, %v1277_v8  ;;  %v4436_v61 = vpop.permute.xlu0 %4435  ;;  %v4421_v28 = vpop.permute.xlu1 %4420 }
 0x34f   : > { %v4438_v63 = vunpack.i.h.bf16 %v4436_v61  ;;  %v4437_v1 = vunpack.i.l.bf16 %v4436_v61  ;;  %3936 = vmatmul.mubr.msk.bf16.gmra.mrb[20].mxu1 %vm1481_vm0, %v1076_v13  ;;  %v4423_v56 = vunpack.i.h.bf16 %v4421_v28  ;;  %v4422_v2 = vunpack.i.l.bf16 %v4421_v28 }
 0x350   : > { %v1954_v45 = vsel %vm1481_vm0, %v1285_v25, 0 }
 0x351   : > { %v1077_v7 = vpack.c.bf16 %v4438_v63, %v4437_v1  ;;  %3984 = vmatpush3.bf16.xpose.msra.mxu1 %v1948_v6  ;;  %v1278_v48 = vpack.c.bf16 %v4423_v56, %v4422_v2 }
 0x352   : > { %4214 = vmatprep.subr.msk.bf16.mxu1 %vm1481_vm0, %v1284_v33  ;;  %v4446_v5 = vpop.permute.xlu0 %4445  ;;  %v4431_v16 = vpop.permute.xlu1 %4430 }
 0x353   : > { %v4448_v19 = vunpack.i.h.bf16 %v4446_v5  ;;  %v4447_v0 = vunpack.i.l.bf16 %v4446_v5  ;;  %3939 = vmatprep.mubr.msk.bf16.mxu1 %vm1481_vm0, %v1077_v7  ;;  %v4433_v21 = vunpack.i.h.bf16 %v4431_v16  ;;  %v4432_v23 = vunpack.i.l.bf16 %v4431_v16 }
 0x354   : > { %v1812_v12 = vsel %vm1481_vm0, %v1278_v48, 0 }
 0x355   : > { %v1078_v49 = vpack.c.bf16 %v4448_v19, %v4447_v0  ;;  %3956 = vmatpush3.bf16.xpose.msra.mxu0 %v1809_v27  ;;  %v1286_v32 = vpack.c.bf16 %v4433_v21, %v4432_v23 }
 0x356   : > { %4208 = vmatprep.subr.msk.bf16.mxu0 %vm1481_vm0, %v1278_v48  ;;  %v4456_v37 = vpop.permute.xlu0 %4455  ;;  %v4441_v15 = vpop.permute.xlu1 %4440 }
 0x357   : > { %v4458_v39 = vunpack.i.h.bf16 %v4456_v37  ;;  %v4457_v42 = vunpack.i.l.bf16 %v4456_v37  ;;  %3940 = vmatmul.mubr.msk.bf16.gmra.mrb[24].mxu1 %vm1481_vm0, %v1078_v49  ;;  %v4443_v51 = vunpack.i.h.bf16 %v4441_v15  ;;  %v4442_v52 = vunpack.i.l.bf16 %v4441_v15 }
 0x358   : > { %v1957_v63 = vsel %vm1481_vm0, %v1286_v32, 0 }
 0x359   : > { %v1079_v55 = vpack.c.bf16 %v4458_v39, %v4457_v42  ;;  %3986 = vmatpush3.bf16.xpose.msra.mxu1 %v1951_v53  ;;  %v1279_v26 = vpack.c.bf16 %v4443_v51, %v4442_v52 }
 0x35a   : > { %4215 = vmatprep.subr.msk.bf16.mxu1 %vm1481_vm0, %v1285_v25  ;;  %v4461_v17 = vpop.permute.xlu0 %4460  ;;  %v4451_v40 = vpop.permute.xlu1 %4450 }
 0x35b   : > { %v4463_v46 = vunpack.i.h.bf16 %v4461_v17  ;;  %v4462_v41 = vunpack.i.l.bf16 %v4461_v17  ;;  %3943 = vmatprep.mubr.msk.bf16.mxu1 %vm1481_vm0, %v1079_v55  ;;  %v4453_v54 = vunpack.i.h.bf16 %v4451_v40  ;;  %v4452_v8 = vunpack.i.l.bf16 %v4451_v40 }
 0x35c   : > { %v1815_v59 = vsel %vm1481_vm0, %v1279_v26, 0 }
 0x35d   : > { %v1080_v29 = vpack.c.bf16 %v4463_v46, %v4462_v41  ;;  %3958 = vmatpush3.bf16.xpose.msra.mxu0 %v1812_v12  ;;  %v1287_v28 = vpack.c.bf16 %v4453_v54, %v4452_v8 }
 0x35e   : > { %4209 = vmatprep.subr.msk.bf16.mxu0 %vm1481_vm0, %v1279_v26  ;;  %v4466_v30 = vpop.permute.xlu0 %4465  ;;  %v4471_v34 = vpop.permute.xlu1 %4470 }
 0x35f   : > { %v4468_v36 = vunpack.i.h.bf16 %v4466_v30  ;;  %v4467_v38 = vunpack.i.l.bf16 %v4466_v30  ;;  %3944 = vmatmul.mubr.msk.bf16.gmra.mrb[28].mxu1 %vm1481_vm0, %v1080_v29  ;;  %v4473_v57 = vunpack.i.h.bf16 %v4471_v34  ;;  %v4472_v43 = vunpack.i.l.bf16 %v4471_v34 }
 0x360   : > { %v1960_v48 = vsel %vm1481_vm0, %v1287_v28, 0 }
 0x361   : > { %v1081_v44 = vpack.c.bf16 %v4468_v36, %v4467_v38  ;;  %3988 = vmatpush3.bf16.xpose.msra.mxu1 %v1954_v45  ;;  %v1280_v58 = vpack.c.bf16 %v4473_v57, %v4472_v43 }
 0x362   : > { %4216 = vmatprep.subr.msk.bf16.mxu1 %vm1481_vm0, %v1286_v32  ;;  %v4486_v3 = vpop.permute.xlu0 %4485  ;;  %v4476_v10 = vpop.permute.xlu1 %4475 }
 0x363   : > { %v4488_v47 = vunpack.i.h.bf16 %v4486_v3  ;;  %v4487_v11 = vunpack.i.l.bf16 %v4486_v3  ;;  %3963 = vmatprep.mubr.msk.bf16.mxu0 %vm1481_vm0, %v1081_v44  ;;  %v4478_v56 = vunpack.i.h.bf16 %v4476_v10  ;;  %v4477_v2 = vunpack.i.l.bf16 %v4476_v10 }
 0x364   : > { %v1818_v6 = vsel %vm1481_vm0, %v1280_v58, 0 }
 0x365   : > { %v1089_v60 = vpack.c.bf16 %v4488_v47, %v4487_v11  ;;  %3960 = vmatpush3.bf16.xpose.msra.mxu0 %v1815_v59  ;;  %v1288_v31 = vpack.c.bf16 %v4478_v56, %v4477_v2 }
 0x366   : > { %4210 = vmatprep.subr.msk.bf16.mxu0 %vm1481_vm0, %v1280_v58  ;;  %v4496_v13 = vpop.permute.xlu0 %4495  ;;  %v4481_v61 = vpop.permute.xlu1 %4480 }
 0x367   : > { %3995 = vmatprep.mubr.msk.bf16.mxu1 %vm1481_vm0, %v1089_v60  ;;  %v4483_v7 = vunpack.i.h.bf16 %v4481_v61  ;;  %v4482_v5 = vunpack.i.l.bf16 %v4481_v61  ;;  %v4498_v0 = vunpack.i.h.bf16 %v4496_v13  ;;  %v4497_v20 = vunpack.i.l.bf16 %v4496_v13 }
 0x368   : > { %v1963_v55 = vsel %vm1481_vm0, %v1288_v31, 0 }
 0x369   : > { %3990 = vmatpush3.bf16.xpose.msra.mxu1 %v1957_v63  ;;  %v1082_v27 = vpack.c.bf16 %v4483_v7, %v4482_v5  ;;  %v1083_v37 = vpack.c.bf16 %v4498_v0, %v4497_v20 }
 0x36a   : > { %4217 = vmatprep.subr.msk.bf16.mxu1 %vm1481_vm0, %v1287_v28  ;;  %v4506_v1 = vpop.permute.xlu0 %4505  ;;  %v4491_v33 = vpop.permute.xlu1 %4490 }
 0x36b   : > { %v4508_v17 = vunpack.i.h.bf16 %v4506_v1  ;;  %v4507_v40 = vunpack.i.l.bf16 %v4506_v1  ;;  %v4493_v46 = vunpack.i.h.bf16 %v4491_v33  ;;  %v4492_v41 = vunpack.i.l.bf16 %v4491_v33 }
 0x36d   : > { %3962 = vmatpush3.bf16.xpose.msra.mxu0 %v1818_v6  ;;  %v1091_v12 = vpack.c.bf16 %v4508_v17, %v4507_v40  ;;  %v1090_v29 = vpack.c.bf16 %v4493_v46, %v4492_v41 }
 0x36e   : > { %4011 = vmatprep.subr.bf16.mxu0 %v5749_v18  ;;  %v4516_v16 = vpop.permute.xlu0 %4515  ;;  %v4501_v19 = vpop.permute.xlu1 %4500 }
 0x36f   : > { %v4503_v39 = vunpack.i.h.bf16 %v4501_v19  ;;  %v4502_v42 = vunpack.i.l.bf16 %v4501_v19  ;;  %v4518_v51 = vunpack.i.h.bf16 %v4516_v16  ;;  %v4517_v52 = vunpack.i.l.bf16 %v4516_v16 }
 0x371   : > { %3992 = vmatpush3.bf16.xpose.msra.mxu1 %v1960_v48  ;;  %v1084_v21 = vpack.c.bf16 %v4503_v39, %v4502_v42  ;;  %v1085_v23 = vpack.c.bf16 %v4518_v51, %v4517_v52 }
 0x372   : > { %4218 = vmatprep.subr.msk.bf16.mxu1 %vm1481_vm0, %v1288_v31  ;;  %v6037_v49 = vpop.permute.xlu0 %4525 }
 0x373   : > { %v4511_v15 = vpop.permute.xlu1 %4510  ;;  %v4528_v47 = vunpack.i.h.bf16 %v6037_v49  ;;  %v4527_v11 = vunpack.i.l.bf16 %v6037_v49 }
 0x374   : > { %3964 = vmatmul.mubr.msk.bf16.vlgmr.msra.gmra.mrb[48].mxu0 %vm1481_vm0, %v1082_v27  ;;  %v4512_v44 = vunpack.i.l.bf16 %v4511_v15 }
 0x375   : > { %3967 = vmatprep.mubr.msk.bf16.mxu0 %vm1481_vm0, %v1083_v37  ;;  %4012 = vmatpush3.bf16.msra.mxu0 %v5749_v18  ;;  %v1093_v13 = vpack.c.bf16 %v4528_v47, %v4527_v11 }
 0x376   : > { %4013 = vmatprep.subr.bf16.mxu0 %v5743_v9  ;;  %v4536_v25 = vpop.permute.xlu0 %4535 }
 0x377   : > { %v4521_v53 = vpop.permute.xlu1 %4520  ;;  %v4538_v36 = vunpack.i.h.bf16 %v4536_v25  ;;  %v4537_v38 = vunpack.i.l.bf16 %v4536_v25 }
 0x378   : > { %v4522_v30 = vunpack.i.l.bf16 %v4521_v53 }
 0x379   : > { %3994 = vmatpush3.bf16.xpose.msra.mxu1 %v1963_v55  ;;  %4014 = vmatpush3.bf16.msra.mxu0 %v5743_v9  ;;  %v4523_v9 = vunpack.i.h.bf16 %v4521_v53  ;;  %v1087_v54 = vpack.c.bf16 %v4538_v36, %v4537_v38 }
 0x37a   : > { %4015 = vmatprep.subr.bf16.mxu0 %v5773_v35  ;;  %v6046_v18 = vpop.permute.xlu0 %4545 }
 0x37b   : > { %v6048_v26 = vpop.permute.xlu1 %4530  ;;  %v1086_v3 = vpack.c.bf16 %v4523_v9, %v4522_v30  ;;  %v4548_v5 = vunpack.i.h.bf16 %v6046_v18  ;;  %v4547_v16 = vunpack.i.l.bf16 %v6046_v18 }
 0x37c   : > { %3968 = vmatmul.mubr.msk.bf16.gmra.mrb[52].mxu0 %vm1481_vm0, %v1084_v21  ;;  %v4532_v56 = vunpack.i.l.bf16 %v6048_v26 }
 0x37d   : > { %3971 = vmatprep.mubr.msk.bf16.mxu0 %vm1481_vm0, %v1085_v23  ;;  %4016 = vmatpush3.bf16.msra.mxu0 %v5773_v35  ;;  %v4513_v35 = vunpack.i.h.bf16 %v4511_v15  ;;  %v1095_v27 = vpack.c.bf16 %v4548_v5, %v4547_v16 }
 0x37e   : > { %4017 = vmatprep.subr.bf16.mxu0 %v5767_v24  ;;  %v4556_v34 = vpop.permute.xlu0 %4555 }
 0x37f   : > { %v4558_v32 = vunpack.i.h.bf16 %v4556_v34  ;;  %v4557_v57 = vunpack.i.l.bf16 %v4556_v34  ;;  %v4541_v43 = vpop.permute.xlu1 %4540 }
 0x380   : > { %3996 = vmatmul.mubr.msk.bf16.vlgmr.msra.gmra.mrb[32].mxu1 %vm1481_vm0, %v1090_v29  ;;  %v4543_v58 = vunpack.i.h.bf16 %v4541_v43  ;;  %v4542_v59 = vunpack.i.l.bf16 %v4541_v43 }
 0x381   : > { %3999 = vmatprep.mubr.msk.bf16.mxu1 %vm1481_vm0, %v1091_v12  ;;  %4018 = vmatpush3.bf16.msra.mxu0 %v5767_v24  ;;  %v1457_v45 = vpack.c.bf16 %v4558_v32, %v4557_v57  ;;  %v1092_v24 = vpack.c.bf16 %v4513_v35, %v4512_v44 }
 0x382   : > { %4019 = vmatprep.subr.bf16.mxu0 %v5797_v4  ;;  %v4566_v10 = vpop.permute.xlu0 %4565  ;;  %v1088_v2 = vpack.c.bf16 %v4543_v58, %v4542_v59 }
 0x383   : > { %v4551_v8 = vpop.permute.xlu1 %4550  ;;  %4043 = vmatprep.subr.bf16.mxu1 %v1457_v45  ;;  %v4568_v28 = vunpack.i.h.bf16 %v4566_v10  ;;  %v4567_v63 = vunpack.i.l.bf16 %v4566_v10 }
 0x384   : > { %3972 = vmatmul.mubr.msk.bf16.gmra.mrb[56].mxu0 %vm1481_vm0, %v1086_v3  ;;  %4044 = vmatpush3.bf16.msra.mxu1 %v1457_v45  ;;  %v4552_v51 = vunpack.i.l.bf16 %v4551_v8 }
 0x385   : > { %3975 = vmatprep.mubr.msk.bf16.mxu0 %vm1481_vm0, %v1087_v54  ;;  %4020 = vmatpush3.bf16.msra.mxu0 %v5797_v4  ;;  %v4533_v4 = vunpack.i.h.bf16 %v6048_v26  ;;  %v1459_v0 = vpack.c.bf16 %v4568_v28, %v4567_v63 }
 0x386   : > { %4021 = vmatprep.subr.bf16.mxu0 %v5791_v50  ;;  %v4576_v60 = vpop.permute.xlu0 %4575 }
 0x387   : > { %v4561_v61 = vpop.permute.xlu1 %4560  ;;  %v1094_v31 = vpack.c.bf16 %v4533_v4, %v4532_v56  ;;  %v4578_v15 = vunpack.i.h.bf16 %v4576_v60  ;;  %v4577_v39 = vunpack.i.l.bf16 %v4576_v60 }
 0x388   : > { %v4563_v1 = vunpack.i.h.bf16 %v4561_v61  ;;  %v4562_v33 = vunpack.i.l.bf16 %v4561_v61  ;;  %4000 = vmatmul.mubr.msk.bf16.gmra.mrb[36].mxu1 %vm1481_vm0, %v1092_v24 }
 0x389   : > { %4003 = vmatprep.mubr.msk.bf16.mxu1 %vm1481_vm0, %v1093_v13  ;;  %4022 = vmatpush3.bf16.msra.mxu0 %v5791_v50  ;;  %v1461_v17 = vpack.c.bf16 %v4578_v15, %v4577_v39 }
 0x38a   : > { %4023 = vmatprep.subr.bf16.mxu0 %v5821_v14  ;;  %v4586_v6 = vpop.permute.xlu0 %4585  ;;  %v1458_v7 = vpack.c.bf16 %v4563_v1, %v4562_v33 }
 0x38b   : > { %v4571_v19 = vpop.permute.xlu1 %4570  ;;  %v4587_v41 = vunpack.i.l.bf16 %v4586_v6 }
 0x38c   : > { %3976 = vmatmul.mubr.msk.bf16.gmra.mrb[60].mxu0 %vm1481_vm0, %v1088_v2  ;;  %4045 = vmatprep.subr.bf16.mxu1 %v1458_v7  ;;  %v4573_v20 = vunpack.i.h.bf16 %v4571_v19  ;;  %v4572_v50 = vunpack.i.l.bf16 %v4571_v19 }
 0x38d   : > { %4024 = vmatpush3.bf16.msra.mxu0 %v5821_v14  ;;  %4046 = vmatpush3.bf16.msra.mxu1 %v1458_v7  ;;  %v4553_v14 = vunpack.i.h.bf16 %v4551_v8 }
 0x38e   : > { %4025 = vmatprep.subr.bf16.mxu0 %v5815_v22  ;;  %4047 = vmatprep.subr.bf16.mxu1 %v1459_v0  ;;  %v4596_v48 = vpop.permute.xlu0 %4595  ;;  %v1460_v42 = vpack.c.bf16 %v4573_v20, %v4572_v50 }
 0x38f   : > { %v4598_v49 = vunpack.i.h.bf16 %v4596_v48  ;;  %v4597_v37 = vunpack.i.l.bf16 %v4596_v48  ;;  %v4581_v52 = vpop.permute.xlu1 %4580  ;;  %v1096_v40 = vpack.c.bf16 %v4553_v14, %v4552_v51 }
 0x390   : > { %4004 = vmatmul.mubr.msk.bf16.gmra.mrb[40].mxu1 %vm1481_vm0, %v1094_v31  ;;  %v4583_v53 = vunpack.i.h.bf16 %v4581_v52  ;;  %v4582_v55 = vunpack.i.l.bf16 %v4581_v52 }
 0x391   : > { %4007 = vmatprep.mubr.msk.bf16.mxu1 %vm1481_vm0, %v1095_v27  ;;  %4026 = vmatpush3.bf16.msra.mxu0 %v5815_v22  ;;  %v6078_v25 = vpack.c.bf16 %v4598_v49, %v4597_v37  ;;  %v4588_v22 = vunpack.i.h.bf16 %v4586_v6 }
 0x392   : > { %4048 = vmatpush3.bf16.msra.mxu1 %v1459_v0  ;;  %v1462_v21 = vpack.c.bf16 %v4583_v53, %v4582_v55  ;;  %v6167_v0 = vpop.permute.xlu0 %4610 }
 0x393   : > { %6950 = vst [vmem:[#allocation13_spill] sm:$0xff] %v6078_v25  ;;  %4049 = vmatprep.subr.bf16.mxu1 %v1460_v42  ;;  %4075 = vmatprep.subr.bf16.mxu0 %v6078_v25  ;;  %v4591_v46 = vpop.permute.xlu1 %4590  ;;  %v1463_v29 = vpack.c.bf16 %v4588_v22, %v4587_v41  ;;  %6959 = vst [vmem:[#allocation22_spill] sm:$0xff] %v6167_v0 }
 0x394   : > { %v4593_v23 = vunpack.i.h.bf16 %v4591_v46  ;;  %v4592_v26 = vunpack.i.l.bf16 %v4591_v46 }
 0x396   : > { %4050 = vmatpush3.bf16.msra.mxu1 %v1460_v42  ;;  %v1464_v32 = vpack.c.bf16 %v4593_v23, %v4592_v26  ;;  %v6169_v20 = vpop.permute.xlu0 %4630 }
 0x397   : > { %4051 = vmatprep.subr.bf16.mxu1 %v1461_v17  ;;  %v4601_v9 = vpop.permute.xlu1 %4600  ;;  %6960 = vst [vmem:[#allocation23_spill] sm:$0xff] %v6169_v20 }
 0x398   : > { %4008 = vmatmul.mubr.msk.bf16.gmra.mrb[44].mxu1 %vm1481_vm0, %v1096_v40  ;;  %v4603_v36 = vunpack.i.h.bf16 %v4601_v9  ;;  %v4602_v38 = vunpack.i.l.bf16 %v4601_v9 }
 0x39a   : > { %4052 = vmatpush3.bf16.msra.mxu1 %v1461_v17  ;;  %v6098_v45 = vpack.c.bf16 %v4603_v36, %v4602_v38  ;;  %v6171_v50 = vpop.permute.xlu0 %4640 }
 0x39b   : > { %4053 = vmatprep.subr.bf16.mxu1 %v1462_v21  ;;  %6961 = vst [vmem:[#allocation24_spill] sm:$0xff] %v6171_v50  ;;  %v6191_v42 = vpop.permute.xlu1 %4605 }
 0x39c   : > { %v6082_v18 = vpop.f32.mrb[32].mxu0  ;;  %6951 = vst [vmem:[#allocation14_spill] sm:$0xff] %v6098_v45  ;;  %6965 = vst [vmem:[#allocation28_spill] sm:$0xff] %v6191_v42 }
 0x39d   : > { %2066 = vmax.xlane.f32.xlu0 %v6082_v18  ;;  %v6085_v12 = vpop.f32.mrb[33].mxu0 }
 0x39e   : > { %4054 = vmatpush3.bf16.msra.mxu1 %v1462_v21  ;;  %v6087_v30 = vpop.f32.mrb[34].mxu0  ;;  %v6175_v48 = vpop.permute.xlu0 %4655 }
 0x39f   : > { %4055 = vmatprep.subr.bf16.mxu1 %v1463_v29  ;;  %v6089_v34 = vpop.f32.mrb[35].mxu0  ;;  %6962 = vst [vmem:[#allocation25_spill] sm:$0xff] %v6175_v48  ;;  %v6210_v46 = vpop.permute.xlu1 %4615 }
 0x3a0   : > { %2064 = vmax.xlane.f32.xlu1 %v6089_v34  ;;  %6970 = vst [vmem:[#allocation33_spill] sm:$0xff] %v6210_v46 }
 0x3a1   : > { %2062 = vmax.xlane.f32.xlu0 %v6085_v12 }
 0x3a2   : > { %4056 = vmatpush3.bf16.msra.mxu1 %v1463_v29  ;;  %v6186_v15 = vpop.permute.xlu0 %4660 }
 0x3a3   : > { %4057 = vmatprep.subr.bf16.mxu1 %v1464_v32  ;;  %6963 = vst [vmem:[#allocation26_spill] sm:$0xff] %v6186_v15  ;;  %v6227_v36 = vpop.permute.xlu1 %4620 }
 0x3a4   : > { %v6093_v57 = vpop.f32.mrb[36].mxu0  ;;  %6974 = vst [vmem:[#allocation37_spill] sm:$0xff] %v6227_v36 }
 0x3a5   : > { %2068 = vmax.xlane.f32.xlu0 %v6087_v30  ;;  %v6096_v43 = vpop.f32.mrb[37].mxu0 }
 0x3a6   : > { %4058 = vmatpush3.bf16.msra.mxu1 %v1464_v32  ;;  %v6100_v35 = vpop.f32.mrb[38].mxu0  ;;  %v6203_v55 = vpop.permute.xlu0 %4665 }
 0x3a7   : > { %4107 = vmatprep.subr.bf16.mxu1 %v6098_v45  ;;  %2076 = vmax.xlane.f32.xlu1 %v6100_v35  ;;  %v6104_v44 = vpop.f32.mrb[39].mxu0  ;;  %6969 = vst [vmem:[#allocation32_spill] sm:$0xff] %v6203_v55  ;;  %v6244_v36 = vpop.permute.xlu1 %4625 }
 0x3a8   : > { %6976 = vst [vmem:[#allocation39_spill] sm:$0xff] %v6244_v36 }
 0x3a9   : > { %2074 = vmax.xlane.f32.xlu0 %v6093_v57 }
 0x3ab   : > { %2072 = vmax.xlane.f32.xlu1 %v6104_v44 }
 0x3ac   : > { %v6108_v3 = vpop.f32.mrb[40].mxu0 }
 0x3ad   : > { %2070 = vmax.xlane.f32.xlu0 %v6096_v43  ;;  %v6111_v10 = vpop.f32.mrb[41].mxu0 }
 0x3ae   : > { %v6113_v47 = vpop.f32.mrb[42].mxu0 }
 0x3af   : > { %2084 = vmax.xlane.f32.xlu1 %v6113_v47  ;;  %v6116_v11 = vpop.f32.mrb[43].mxu0 }
 0x3b1   : > { %2082 = vmax.xlane.f32.xlu0 %v6108_v3 }
 0x3b3   : > { %2080 = vmax.xlane.f32.xlu1 %v6116_v11 }
 0x3b4   : > { %v6120_v54 = vpop.f32.mrb[44].mxu0 }
 0x3b5   : > { %2078 = vmax.xlane.f32.xlu0 %v6111_v10  ;;  %v6123_v8 = vpop.f32.mrb[45].mxu0 }
 0x3b6   : > { %v6125_v24 = vpop.f32.mrb[46].mxu0 }
 0x3b7   : > { %2092 = vmax.xlane.f32.xlu1 %v6125_v24  ;;  %v6128_v58 = vpop.f32.mrb[47].mxu0 }
 0x3b9   : > { %2090 = vmax.xlane.f32.xlu0 %v6120_v54 }
 0x3bb   : > { %2088 = vmax.xlane.f32.xlu1 %v6128_v58 }
 0x3bd   : > { %2086 = vmax.xlane.f32.xlu0 %v6123_v8 }
 0x413   : > { %v6133_v59 = vpop.f32.mrb[16].mxu1 }
 0x414   : > { %v6135_v60 = vpop.f32.mrb[17].mxu1  ;;  %2098 = vmax.xlane.f32.xlu0 %v6133_v59 }
 0x415   : > { %v6138_v13 = vpop.f32.mrb[18].mxu1 }
 0x416   : > { %v6140_v61 = vpop.f32.mrb[19].mxu1  ;;  %2100 = vmax.xlane.f32.xlu1 %v6138_v13 }
 0x422   : > { %v6143_v28 = vpop.f32.mrb[20].mxu1 }
 0x423   : > { %v6145_v63 = vpop.f32.mrb[21].mxu1 }
 0x424   : > { %6952 = vst [vmem:[#allocation15_spill] sm:$0xff] %v6145_v63  ;;  %v6147_v1 = vpop.f32.mrb[22].mxu1 }
 0x425   : > { %6953 = vst [vmem:[#allocation16_spill] sm:$0xff] %v6147_v1  ;;  %v6149_v33 = vpop.f32.mrb[23].mxu1 }
 0x426   : > { %6954 = vst [vmem:[#allocation17_spill] sm:$0xff] %v6149_v33 }
 0x42a   : > { %v6151_v4 = vpop.f32.mrb[24].mxu1  ;;  %v2067_v21 = vpop.xlane.xlu0 %2066 }
 0x42b   : > { %6955 = vst [vmem:[#allocation18_spill] sm:$0xff] %v6151_v4  ;;  %v6153_v56 = vpop.f32.mrb[25].mxu1 }
 0x42c   : > { %6956 = vst [vmem:[#allocation19_spill] sm:$0xff] %v6153_v56  ;;  %v6155_v2 = vpop.f32.mrb[26].mxu1 }
 0x42d   : > { %6957 = vst [vmem:[#allocation20_spill] sm:$0xff] %v6155_v2  ;;  %v6157_v6 = vpop.f32.mrb[27].mxu1 }
 0x42e   : > { %6958 = vst [vmem:[#allocation21_spill] sm:$0xff] %v6157_v6  ;;  %v2063_v15 = vpop.xlane.xlu0 %2062 }
 0x432   : > { %v6159_v7 = vpop.f32.mrb[28].mxu1  ;;  %v2069_v48 = vpop.xlane.xlu0 %2068 }
 0x433   : > { %v6161_v5 = vpop.f32.mrb[29].mxu1 }
 0x434   : > { %v6163_v16 = vpop.f32.mrb[30].mxu1 }
 0x435   : > { %v6165_v19 = vpop.f32.mrb[31].mxu1 }
 0x436   : > { %v2075_v36 = vpop.xlane.xlu0 %2074 }
 0x447   : > { %v6173_v31 = vpop.f32.mrb[48].mxu0 }
 0x448   : > { %2130 = vmax.xlane.f32.xlu0 %v6173_v31  ;;  %v6178_v27 = vpop.f32.mrb[49].mxu0 }
 0x449   : > { %v6180_v49 = vpop.f32.mrb[50].mxu0 }
 0x44a   : > { %2132 = vmax.xlane.f32.xlu1 %v6180_v49  ;;  %v6183_v37 = vpop.f32.mrb[51].mxu0 }
 0x44c   : > { %2094 = vmax.xlane.f32.xlu0 %v6135_v60 }
 0x44e   : > { %2096 = vmax.xlane.f32.xlu1 %v6140_v61 }
 0x44f   : > { %v6189_v39 = vpop.f32.mrb[52].mxu0 }
 0x450   : > { %6964 = vst [vmem:[#allocation27_spill] sm:$0xff] %v6189_v39  ;;  %2126 = vmax.xlane.f32.xlu0 %v6178_v27  ;;  %v6194_v14 = vpop.f32.mrb[53].mxu0 }
 0x451   : > { %6966 = vst [vmem:[#allocation29_spill] sm:$0xff] %v6194_v14  ;;  %v6196_v51 = vpop.f32.mrb[54].mxu0 }
 0x452   : > { %6967 = vst [vmem:[#allocation30_spill] sm:$0xff] %v6196_v51  ;;  %2128 = vmax.xlane.f32.xlu1 %v6183_v37  ;;  %v6199_v52 = vpop.f32.mrb[55].mxu0 }
 0x453   : > { %6968 = vst [vmem:[#allocation31_spill] sm:$0xff] %v6199_v52  ;;  %v6201_v53 = vpop.f32.mrb[32].mxu1 }
 0x454   : > { %v6205_v17 = vpop.f32.mrb[33].mxu1  ;;  %2106 = vmax.xlane.f32.xlu0 %v6143_v28 }
 0x455   : > { %v6208_v40 = vpop.f32.mrb[34].mxu1 }
 0x456   : > { %v6212_v22 = vpop.f32.mrb[35].mxu1  ;;  %2108 = vmax.xlane.f32.xlu1 %v6147_v1 }
 0x457   : > { %v6215_v41 = vpop.f32.mrb[56].mxu0 }
 0x458   : > { %6971 = vst [vmem:[#allocation34_spill] sm:$0xff] %v6215_v41  ;;  %2138 = vmax.xlane.f32.xlu0 %v6189_v39  ;;  %v6218_v23 = vpop.f32.mrb[57].mxu0  ;;  %v2193_v39 = vsub.f32 %v6087_v30, %v2069_v48 }
 0x459   : > { %6972 = vst [vmem:[#allocation35_spill] sm:$0xff] %v6218_v23  ;;  %v6220_v26 = vpop.f32.mrb[58].mxu0 }
 0x45a   : > { %6973 = vst [vmem:[#allocation36_spill] sm:$0xff] %v6220_v26  ;;  %2140 = vmax.xlane.f32.xlu1 %v6196_v51  ;;  %v6223_v29 = vpop.f32.mrb[59].mxu0  ;;  %v6259_v51 = vpop.permute.xlu1 %4635 }
 0x45b   : > { %v6225_v9 = vpop.f32.mrb[36].mxu1  ;;  %6977 = vst [vmem:[#allocation40_spill] sm:$0xff] %v6259_v51  ;;  %v2071_v51 = vpop.xlane.xlu0 %2070 }
 0x45c   : > { %v6229_v38 = vpop.f32.mrb[37].mxu1  ;;  %2102 = vmax.xlane.f32.xlu0 %v6145_v63 }
 0x45d   : > { %v6232_v32 = vpop.f32.mrb[38].mxu1 }
 0x45e   : > { %v6234_v50 = vpop.f32.mrb[39].mxu1  ;;  %2104 = vmax.xlane.f32.xlu1 %v6149_v33  ;;  %v6270_v33 = vpop.permute.xlu1 %4645 }
 0x45f   : > { %v6237_v20 = vpop.f32.mrb[60].mxu0  ;;  %6978 = vst [vmem:[#allocation41_spill] sm:$0xff] %v6270_v33  ;;  %v2196_v33 = vsub.f32 %v6093_v57, %v2075_v36  ;;  %v2083_v63 = vpop.xlane.xlu0 %2082 }
 0x460   : > { %6975 = vst [vmem:[#allocation38_spill] sm:$0xff] %v6237_v20  ;;  %2134 = vmax.xlane.f32.xlu0 %v6194_v14  ;;  %v6240_v45 = vpop.f32.mrb[61].mxu0 }
 0x461   : > { %v6242_v0 = vpop.f32.mrb[62].mxu0 }
 0x462   : > { %2136 = vmax.xlane.f32.xlu1 %v6199_v52  ;;  %v6247_v62 = vpop.f32.mrb[63].mxu0 }
 0x463   : > { %v6249_v55 = vpop.f32.mrb[40].mxu1  ;;  %v2079_v57 = vpop.xlane.xlu0 %2078 }
 0x464   : > { %v6251_v25 = vpop.f32.mrb[41].mxu1  ;;  %2114 = vmax.xlane.f32.xlu0 %v6151_v4 }
 0x465   : > { %v6254_v46 = vpop.f32.mrb[42].mxu1 }
 0x466   : > { %v6256_v42 = vpop.f32.mrb[43].mxu1  ;;  %2116 = vmax.xlane.f32.xlu1 %v6155_v2  ;;  %v2192_v2 = vsub.f32 %v6082_v18, %v2067_v21  ;;  %v2266_v18 = vmul.f32 1.442695, %v2196_v33  ;;  %v2194_v33 = vsub.f32 %v6096_v43, %v2071_v51 }
 0x468   : > { %2146 = vmax.xlane.f32.xlu0 %v6215_v41  ;;  %v6279_v41 = vpop.permute.xlu1 %4650 }
 0x469   : > { %6979 = vst [vmem:[#allocation42_spill] sm:$0xff] %v6279_v41 }
 0x46a   : > { %2148 = vmax.xlane.f32.xlu1 %v6220_v26  ;;  %v2190_v26 = vsub.f32 %v6085_v12, %v2063_v15  ;;  %v2200_v12 = vsub.f32 %v6108_v3, %v2083_v63  ;;  %v2091_v3 = vpop.xlane.xlu0 %2090 }
 0x46b   : > { %v6263_v52 = vpop.f32.mrb[44].mxu1 }
 0x46c   : > { %v6265_v14 = vpop.f32.mrb[45].mxu1  ;;  %2110 = vmax.xlane.f32.xlu0 %v6153_v56  ;;  %v2258_v56 = vmul.f32 1.442695, %v2192_v2  ;;  %v2260_v2 = vmul.f32 1.442695, %v2193_v39  ;;  %v2204_v39 = vsub.f32 %v6120_v54, %v2091_v3 }
 0x46d   : > { %v6268_v4 = vpop.f32.mrb[46].mxu1  ;;  %v2274_v21 = vmul.f32 1.442695, %v2200_v12 }
 0x46e   : > { %v6272_v1 = vpop.f32.mrb[47].mxu1  ;;  %2112 = vmax.xlane.f32.xlu1 %v6157_v6  ;;  %v2254_v6 = vmul.f32 1.442695, %v2190_v26  ;;  %4866 = vpow2.f32 %v2258_v56  ;;  %v2262_v56 = vmul.f32 1.442695, %v2194_v33 }
 0x470   : > { %2142 = vmax.xlane.f32.xlu0 %v6218_v23  ;;  %v2065_v23 = vpop.xlane.xlu1 %2064  ;;  %4868 = vpow2.f32 %v2254_v6 }
 0x471   : > { %v2191_v15 = vsub.f32 %v6089_v34, %v2065_v23  ;;  %4870 = vpow2.f32 %v2266_v18 }
 0x472   : > { %2144 = vmax.xlane.f32.xlu1 %v6223_v29  ;;  %4872 = vpow2.f32 %v2260_v2 }
 0x473   : > { %v2256_v30 = vmul.f32 1.442695, %v2191_v15  ;;  %4874 = vpow2.f32 %v2274_v21  ;;  %v2198_v15 = vsub.f32 %v6111_v10, %v2079_v57 }
 0x474   : > { %2122 = vmax.xlane.f32.xlu0 %v6159_v7  ;;  %v2077_v26 = vpop.xlane.xlu1 %2076 }
 0x475   : > { %4876 = vpow2.f32 %v2256_v30  ;;  %v2197_v63 = vsub.f32 %v6100_v35, %v2077_v26  ;;  %v2282_v35 = vmul.f32 1.442695, %v2204_v39  ;;  %v2270_v21 = vmul.f32 1.442695, %v2198_v15 }
 0x476   : > { %2124 = vmax.xlane.f32.xlu1 %v6163_v16  ;;  %4878 = vpow2.f32 %v2262_v56  ;;  %v2087_v56 = vpop.xlane.xlu0 %2086 }
 0x477   : > { %v2268_v51 = vmul.f32 1.442695, %v2197_v63  ;;  %v2202_v39 = vsub.f32 %v6123_v8, %v2087_v56 }
 0x478   : > { %2154 = vmax.xlane.f32.xlu0 %v6237_v20  ;;  %v6294_v34 = vpop.eup %4866  ;;  %v2073_v6 = vpop.xlane.xlu1 %2072 }
 0x479   : > { %v2195_v23 = vsub.f32 %v6104_v44, %v2073_v6  ;;  %4880 = vpow2.f32 %v2268_v51 }
 0x47a   : > { %2156 = vmax.xlane.f32.xlu1 %v6242_v0  ;;  %v6298_v48 = vpop.eup %4868  ;;  %4882 = vpow2.f32 %v2282_v35 }
 0x47b   : > { %v6302_v43 = vpop.eup %4870  ;;  %v2264_v54 = vmul.f32 1.442695, %v2195_v23 }
 0x47c   : > { %2118 = vmax.xlane.f32.xlu0 %v6161_v5  ;;  %v6306_v36 = vpop.eup %4872  ;;  %v2085_v18 = vpop.xlane.xlu1 %2084 }
 0x47d   : > { %v6309_v12 = vpop.eup %4874  ;;  %4884 = vpow2.f32 %v2264_v54  ;;  %v2201_v44 = vsub.f32 %v6113_v47, %v2085_v18  ;;  %v2278_v54 = vmul.f32 1.442695, %v2202_v39 }
 0x47e   : > { %2120 = vmax.xlane.f32.xlu1 %v6165_v19  ;;  %4886 = vpow2.f32 %v2270_v21 }
 0x47f   : > { %v6313_v2 = vpop.eup %4876  ;;  %v2276_v33 = vmul.f32 1.442695, %v2201_v44 }
 0x480   : > { %2150 = vmax.xlane.f32.xlu0 %v6240_v45  ;;  %v2081_v26 = vpop.xlane.xlu1 %2080  ;;  %v6318_v30 = vpop.eup %4878 }
 0x481   : > { %v2199_v10 = vsub.f32 %v6116_v11, %v2081_v26  ;;  %4888 = vpow2.f32 %v2276_v33 }
 0x482   : > { %2152 = vmax.xlane.f32.xlu1 %v6247_v62 }
 0x483   : > { %v6323_v57 = vpop.eup %4880  ;;  %v2272_v47 = vmul.f32 1.442695, %v2199_v10 }
 0x484   : > { %2386 = vadd.xlane.f32.xlu0 %v6294_v34  ;;  %v6326_v3 = vpop.eup %4882  ;;  %v2093_v6 = vpop.xlane.xlu1 %2092 }
 0x485   : > { %4890 = vpow2.f32 %v2272_v47  ;;  %v2205_v18 = vsub.f32 %v6125_v24, %v2093_v6 }
 0x486   : > { %2382 = vadd.xlane.f32.xlu1 %v6298_v48  ;;  %4892 = vpow2.f32 %v2278_v54 }
 0x487   : > { %v6329_v63 = vpop.eup %4884  ;;  %v2284_v8 = vmul.f32 1.442695, %v2205_v18 }
 0x488   : > { %2394 = vadd.xlane.f32.xlu0 %v6302_v43  ;;  %v6333_v11 = vpop.eup %4886  ;;  %v2089_v15 = vpop.xlane.xlu1 %2088 }
 0x489   : > { %v2203_v26 = vsub.f32 %v6128_v58, %v2089_v15 }
 0x48a   : > { %2388 = vadd.xlane.f32.xlu1 %v6306_v36 }
 0x48b   : > { %v6338_v51 = vpop.eup %4888  ;;  %v2280_v24 = vmul.f32 1.442695, %v2203_v26 }
 0x48c   : > { %2402 = vadd.xlane.f32.xlu0 %v6309_v12 }
 0x48e   : > { %2384 = vadd.xlane.f32.xlu1 %v6313_v2 }
 0x48f   : > { %v6344_v44 = vpop.eup %4890 }
 0x490   : > { %2162 = vmax.xlane.f32.xlu0 %v6201_v53 }
 0x492   : > { %2390 = vadd.xlane.f32.xlu1 %v6318_v30 }
 0x494   : > { %2158 = vmax.xlane.f32.xlu0 %v6205_v17 }
 0x496   : > { %2396 = vadd.xlane.f32.xlu1 %v6323_v57 }
 0x498   : > { %2410 = vadd.xlane.f32.xlu0 %v6326_v3 }
 0x49a   : > { %2392 = vadd.xlane.f32.xlu1 %v6329_v63 }
 0x49c   : > { %2170 = vmax.xlane.f32.xlu0 %v6225_v9 }
 0x49e   : > { %2398 = vadd.xlane.f32.xlu1 %v6333_v11 }
 0x4a0   : > { %2166 = vmax.xlane.f32.xlu0 %v6229_v38 }
 0x4a1   : > { %v2099_v23 = vpop.xlane.xlu0 %2098 }
 0x4a2   : > { %v2208_v35 = vsub.f32 %v6133_v59, %v2099_v23  ;;  %2404 = vadd.xlane.f32.xlu1 %v6338_v51  ;;  %v6353_v59 = vpop.eup %4892 }
 0x4a3   : > { %v2101_v47 = vpop.xlane.xlu1 %2100 }
 0x4a4   : > { %2178 = vmax.xlane.f32.xlu0 %v6249_v55  ;;  %v2290_v21 = vmul.f32 1.442695, %v2208_v35 }
 0x4a6   : > { %2400 = vadd.xlane.f32.xlu1 %v6344_v44  ;;  %4894 = vpow2.f32 %v2290_v21 }
 0x4a7   : > { %4896 = vpow2.f32 %v2284_v8  ;;  %v2209_v8 = vsub.f32 %v6138_v13, %v2101_v47 }
 0x4a8   : > { %2174 = vmax.xlane.f32.xlu0 %v6251_v25  ;;  %4898 = vpow2.f32 %v2280_v24 }
 0x4aa   : > { %2164 = vmax.xlane.f32.xlu1 %v6208_v40 }
 0x4ac   : > { %2186 = vmax.xlane.f32.xlu0 %v6263_v52 }
 0x4ae   : > { %2160 = vmax.xlane.f32.xlu1 %v6212_v22 }
 0x4b0   : > { %2182 = vmax.xlane.f32.xlu0 %v6265_v14  ;;  %v6356_v58 = vpop.eup %4894 }
 0x4b1   : > { %6980 = vst [vmem:[#allocation43_spill] sm:$0xff] %v6356_v58  ;;  %v6359_v33 = vpop.eup %4896 }
 0x4b2   : > { %2406 = vadd.xlane.f32.xlu1 %v6353_v59  ;;  %v6362_v10 = vpop.eup %4898 }
 0x4b4   : > { %2418 = vadd.xlane.f32.xlu0 %v6356_v58 }
 0x4b6   : > { %2412 = vadd.xlane.f32.xlu1 %v6359_v33 }
 0x4ba   : > { %2408 = vadd.xlane.f32.xlu1 %v6362_v10 }
 0x4be   : > { %2172 = vmax.xlane.f32.xlu1 %v6232_v32 }
 0x4c2   : > { %2168 = vmax.xlane.f32.xlu1 %v6234_v50 }
 0x4c6   : > { %2180 = vmax.xlane.f32.xlu1 %v6254_v46 }
 0x4ca   : > { %2176 = vmax.xlane.f32.xlu1 %v6256_v42 }
 0x4ce   : > { %2188 = vmax.xlane.f32.xlu1 %v6268_v4 }
 0x4d2   : > { %2184 = vmax.xlane.f32.xlu1 %v6272_v1 }
 0x4d5   : > { %v2131_v56 = vpop.xlane.xlu0 %2130 }
 0x4d6   : > { %v2224_v6 = vsub.f32 %v6173_v31, %v2131_v56  ;;  %v2292_v56 = vmul.f32 1.442695, %v2209_v8 }
 0x4d7   : > { %v2133_v39 = vpop.xlane.xlu1 %2132 }
 0x4d8   : > { %v2322_v23 = vmul.f32 1.442695, %v2224_v6  ;;  %v2225_v6 = vsub.f32 %v6180_v49, %v2133_v39  ;;  %v6983_v39 = vld [vmem:[#allocation15_spill] sm:$0xff] }
 0x4d9   : > { %v2095_v35 = vpop.xlane.xlu0 %2094 }
 0x4da   : > { %4900 = vpow2.f32 %v2322_v23  ;;  %v2206_v18 = vsub.f32 %v6135_v60, %v2095_v35  ;;  %v2324_v47 = vmul.f32 1.442695, %v2225_v6  ;;  %v6985_v6 = vld [vmem:[#allocation17_spill] sm:$0xff] }
 0x4db   : > { %v2097_v54 = vpop.xlane.xlu1 %2096 }
 0x4dc   : > { %v2286_v15 = vmul.f32 1.442695, %v2206_v18  ;;  %v2207_v21 = vsub.f32 %v6140_v61, %v2097_v54 }
 0x4dd   : > { %v2127_v26 = vpop.xlane.xlu0 %2126 }
 0x4de   : > { %4902 = vpow2.f32 %v2286_v15  ;;  %v2288_v24 = vmul.f32 1.442695, %v2207_v21  ;;  %v2222_v41 = vsub.f32 %v6178_v27, %v2127_v26  ;;  %v6984_v26 = vld [vmem:[#allocation16_spill] sm:$0xff] }
 0x4df   : > { %v2129_v58 = vpop.xlane.xlu1 %2128 }
 0x4e0   : > { %v2318_v20 = vmul.f32 1.442695, %v2222_v41  ;;  %v2223_v31 = vsub.f32 %v6183_v37, %v2129_v58  ;;  %4904 = vpow2.f32 %v2288_v24  ;;  %v6982_v37 = vld [vmem:[#allocation27_spill] sm:$0xff] }
 0x4e1   : > { %v2107_v60 = vpop.xlane.xlu0 %2106 }
 0x4e2   : > { %4906 = vpow2.f32 %v2318_v20  ;;  %v2320_v23 = vmul.f32 1.442695, %v2223_v31  ;;  %v2212_v61 = vsub.f32 %v6143_v28, %v2107_v60 }
 0x4e3   : > { %v2109_v35 = vpop.xlane.xlu1 %2108  ;;  %4908 = vpow2.f32 %v2292_v56 }
 0x4e4   : > { %v6379_v13 = vpop.eup %4900  ;;  %4910 = vpow2.f32 %v2320_v23  ;;  %v2298_v27 = vmul.f32 1.442695, %v2212_v61  ;;  %v2213_v24 = vsub.f32 %v6984_v26, %v2109_v35  ;;  %v6986_v23 = vld [vmem:[#allocation29_spill] sm:$0xff] }
 0x4e5   : > { %6981 = vst [vmem:[#allocation44_spill] sm:$0xff] %v6379_v13  ;;  %v2139_v18 = vpop.xlane.xlu0 %2138  ;;  %2450 = vadd.xlane.f32.xlu1 %v6379_v13  ;;  %4912 = vpow2.f32 %v2324_v47 }
 0x4e6   : > { %v2228_v41 = vsub.f32 %v6982_v37, %v2139_v18  ;;  %4914 = vpow2.f32 %v2298_v27 }
 0x4e7   : > { %v2141_v58 = vpop.xlane.xlu1 %2140 }
 0x4e8   : > { %v6383_v49 = vpop.eup %4902  ;;  %v2330_v28 = vmul.f32 1.442695, %v2228_v41  ;;  %v2300_v41 = vmul.f32 1.442695, %v2213_v24 }
 0x4e9   : > { %v2103_v20 = vpop.xlane.xlu0 %2102  ;;  %2414 = vadd.xlane.f32.xlu0 %v6383_v49 }
 0x4ea   : > { %v2210_v54 = vsub.f32 %v6983_v39, %v2103_v20  ;;  %v6387_v15 = vpop.eup %4904  ;;  %4916 = vpow2.f32 %v2330_v28  ;;  %v6989_v20 = vld [vmem:[#allocation30_spill] sm:$0xff] }
 0x4eb   : > { %v2105_v21 = vpop.xlane.xlu1 %2104  ;;  %v2229_v35 = vsub.f32 %v6989_v20, %v2141_v58 }
 0x4ec   : > { %v6389_v8 = vpop.eup %4906  ;;  %v2294_v31 = vmul.f32 1.442695, %v2210_v54  ;;  %v2211_v60 = vsub.f32 %v6985_v6, %v2105_v21  ;;  %v6990_v54 = vld [vmem:[#allocation31_spill] sm:$0xff] }
 0x4ed   : > { %v2135_v56 = vpop.xlane.xlu0 %2134  ;;  %2416 = vadd.xlane.f32.xlu0 %v6387_v15  ;;  %2446 = vadd.xlane.f32.xlu1 %v6389_v8  ;;  %v6396_v47 = vpop.eup %4908 }
 0x4ee   : > { %v2226_v61 = vsub.f32 %v6986_v23, %v2135_v56  ;;  %6987 = vst [vmem:[#allocation27_spill] sm:$0xff] %v6396_v47  ;;  %v6398_v27 = vpop.eup %4910  ;;  %4918 = vpow2.f32 %v2294_v31  ;;  %v2296_v28 = vmul.f32 1.442695, %v2211_v60  ;;  %v2332_v23 = vmul.f32 1.442695, %v2229_v35  ;;  %v6993_v31 = vld [vmem:[#allocation18_spill] sm:$0xff] }
 0x4ef   : > { %v2137_v18 = vpop.xlane.xlu1 %2136  ;;  %6988 = vst [vmem:[#allocation15_spill] sm:$0xff] %v6398_v27  ;;  %v6404_v26 = vpop.eup %4912 }
 0x4f0   : > { %v2326_v37 = vmul.f32 1.442695, %v2226_v61  ;;  %v2227_v21 = vsub.f32 %v6990_v54, %v2137_v18  ;;  %6991 = vst [vmem:[#allocation16_spill] sm:$0xff] %v6404_v26  ;;  %v6406_v6 = vpop.eup %4914  ;;  %v6995_v18 = vld [vmem:[#allocation34_spill] sm:$0xff] }
 0x4f1   : > { %v2115_v39 = vpop.xlane.xlu0 %2114  ;;  %2448 = vadd.xlane.f32.xlu0 %v6398_v27  ;;  %2420 = vadd.xlane.f32.xlu1 %v6396_v47  ;;  %6992 = vst [vmem:[#allocation17_spill] sm:$0xff] %v6406_v6 }
 0x4f2   : > { %4920 = vpow2.f32 %v2326_v37  ;;  %v2328_v58 = vmul.f32 1.442695, %v2227_v21  ;;  %v2216_v61 = vsub.f32 %v6993_v31, %v2115_v39  ;;  %v6999_v31 = vld [vmem:[#allocation35_spill] sm:$0xff] }
 0x4f3   : > { %v2117_v56 = vpop.xlane.xlu1 %2116  ;;  %4922 = vpow2.f32 %v2300_v41 }
 0x4f4   : > { %4924 = vpow2.f32 %v2296_v28  ;;  %v6411_v37 = vpop.eup %4916  ;;  %v2306_v41 = vmul.f32 1.442695, %v2216_v61  ;;  %v6997_v28 = vld [vmem:[#allocation20_spill] sm:$0xff] }
 0x4f5   : > { %v2147_v24 = vpop.xlane.xlu0 %2146  ;;  %2426 = vadd.xlane.f32.xlu0 %v6406_v6  ;;  %2452 = vadd.xlane.f32.xlu1 %v6404_v26  ;;  %6994 = vst [vmem:[#allocation29_spill] sm:$0xff] %v6411_v37  ;;  %4926 = vpow2.f32 %v2332_v23  ;;  %v2217_v21 = vsub.f32 %v6997_v28, %v2117_v56  ;;  %v6998_v23 = vld [vmem:[#allocation19_spill] sm:$0xff]  ;;  %v7000_v56 = vld [vmem:[#allocation36_spill] sm:$0xff] }
 0x4f6   : > { %v2232_v20 = vsub.f32 %v6995_v18, %v2147_v24  ;;  %4928 = vpow2.f32 %v2328_v58 }
 0x4f7   : > { %v2149_v60 = vpop.xlane.xlu1 %2148  ;;  %4930 = vpow2.f32 %v2306_v41  ;;  %v2308_v27 = vmul.f32 1.442695, %v2217_v21 }
 0x4f8   : > { %v6415_v35 = vpop.eup %4918  ;;  %v2338_v26 = vmul.f32 1.442695, %v2232_v20  ;;  %v2233_v20 = vsub.f32 %v7000_v56, %v2149_v60 }
 0x4f9   : > { %v2111_v54 = vpop.xlane.xlu0 %2110  ;;  %2458 = vadd.xlane.f32.xlu0 %v6411_v37 }
 0x4fa   : > { %v2214_v24 = vsub.f32 %v6998_v23, %v2111_v54  ;;  %4932 = vpow2.f32 %v2338_v26  ;;  %v7002_v26 = vld [vmem:[#allocation21_spill] sm:$0xff] }
 0x4fb   : > { %v2113_v6 = vpop.xlane.xlu1 %2112 }
 0x4fc   : > { %v6417_v13 = vpop.eup %4920  ;;  %v2302_v41 = vmul.f32 1.442695, %v2214_v24  ;;  %v2215_v60 = vsub.f32 %v7002_v26, %v2113_v6 }
 0x4fd   : > { %6996 = vst [vmem:[#allocation30_spill] sm:$0xff] %v6417_v13  ;;  %v2143_v39 = vpop.xlane.xlu0 %2142  ;;  %2422 = vadd.xlane.f32.xlu0 %v6415_v35  ;;  %2454 = vadd.xlane.f32.xlu1 %v6417_v13  ;;  %v6424_v58 = vpop.eup %4922 }
 0x4fe   : > { %v2230_v18 = vsub.f32 %v6999_v31, %v2143_v39  ;;  %v6426_v37 = vpop.eup %4924 }
 0x4ff   : > { %v2145_v61 = vpop.xlane.xlu1 %2144  ;;  %v6431_v54 = vpop.eup %4926 }
 0x500   : > { %v2334_v47 = vmul.f32 1.442695, %v2230_v18  ;;  %7001 = vst [vmem:[#allocation31_spill] sm:$0xff] %v6431_v54  ;;  %v6433_v23 = vpop.eup %4928  ;;  %v2340_v18 = vmul.f32 1.442695, %v2233_v20 }
 0x501   : > { %v2123_v28 = vpop.xlane.xlu0 %2122  ;;  %2424 = vadd.xlane.f32.xlu0 %v6426_v37  ;;  %2428 = vadd.xlane.f32.xlu1 %v6424_v58  ;;  %v6443_v56 = vpop.eup %4930 }
 0x502   : > { %4934 = vpow2.f32 %v2334_v47 }
 0x503   : > { %v2125_v39 = vpop.xlane.xlu1 %2124  ;;  %4936 = vpow2.f32 %v2308_v27  ;;  %v2231_v27 = vsub.f32 %v6223_v29, %v2145_v61 }
 0x504   : > { %v2221_v31 = vsub.f32 %v6163_v16, %v2125_v39  ;;  %4938 = vpow2.f32 %v2302_v41  ;;  %v2304_v16 = vmul.f32 1.442695, %v2215_v60  ;;  %v6447_v20 = vpop.eup %4932 }
 0x505   : > { %v6436_v21 = vpop.xlane.xlu0 %2154  ;;  %2456 = vadd.xlane.f32.xlu0 %v6433_v23  ;;  %2460 = vadd.xlane.f32.xlu1 %v6431_v54  ;;  %4940 = vpow2.f32 %v2340_v18  ;;  %7003 = vst [vmem:[#allocation18_spill] sm:$0xff] %v6447_v20  ;;  %v2336_v41 = vmul.f32 1.442695, %v2231_v27 }
 0x506   : > { %v2316_v24 = vmul.f32 1.442695, %v2221_v31  ;;  %v2220_v31 = vsub.f32 %v6159_v7, %v2123_v28 }
 0x507   : > { %v6441_v47 = vpop.xlane.xlu1 %2156 }
 0x508   : > { %4942 = vpow2.f32 %v2316_v24 }
 0x509   : > { %v2119_v13 = vpop.xlane.xlu0 %2118  ;;  %2434 = vadd.xlane.f32.xlu0 %v6443_v56  ;;  %4944 = vpow2.f32 %v2304_v16 }
 0x50a   : > { %v2218_v29 = vsub.f32 %v6161_v5, %v2119_v13  ;;  %4946 = vpow2.f32 %v2336_v41 }
 0x50b   : > { %v2121_v39 = vpop.xlane.xlu1 %2120 }
 0x50c   : > { %v6449_v54 = vpop.eup %4934  ;;  %v2219_v41 = vsub.f32 %v6165_v19, %v2121_v39 }
 0x50d   : > { %7004 = vst [vmem:[#allocation34_spill] sm:$0xff] %v6449_v54  ;;  %2466 = vadd.xlane.f32.xlu0 %v6447_v20  ;;  %v2151_v6 = vpop.xlane.xlu0 %2150  ;;  %2462 = vadd.xlane.f32.xlu1 %v6449_v54  ;;  %v6454_v18 = vpop.eup %4936  ;;  %v2314_v20 = vmul.f32 1.442695, %v2220_v31  ;;  %v2310_v54 = vmul.f32 1.442695, %v2218_v29 }
 0x50e   : > { %v6456_v60 = vpop.eup %4938 }
 0x50f   : > { %v2153_v26 = vpop.xlane.xlu1 %2152  ;;  %v6462_v27 = vpop.eup %4940 }
 0x510   : > { %v2235_v61 = vsub.f32 %v6247_v62, %v2153_v26  ;;  %v2234_v62 = vsub.f32 %v6240_v45, %v2151_v6 }
 0x511   : > { %2430 = vadd.xlane.f32.xlu0 %v6456_v60  ;;  %v2387_v24 = vpop.xlane.xlu0 %2386  ;;  %2436 = vadd.xlane.f32.xlu1 %v6454_v18 }
 0x512   : > { %v2344_v16 = vmul.f32 1.442695, %v2235_v61  ;;  %v6464_v28 = vpop.eup %4942  ;;  %v2342_v29 = vmul.f32 1.442695, %v2234_v62 }
 0x513   : > { %v2383_v7 = vpop.xlane.xlu1 %2382  ;;  %7005 = vst [vmem:[#allocation20_spill] sm:$0xff] %v6464_v28  ;;  %v6469_v26 = vpop.eup %4944 }
 0x514   : > { %4948 = vpow2.f32 %v2344_v16  ;;  %v6475_v16 = vpop.eup %4946 }
 0x515   : > { %2468 = vadd.xlane.f32.xlu0 %v6462_v27  ;;  %v2395_v5 = vpop.xlane.xlu0 %2394  ;;  %2444 = vadd.xlane.f32.xlu1 %v6464_v28  ;;  %4950 = vpow2.f32 %v2314_v20  ;;  %7006 = vst [vmem:[#allocation19_spill] sm:$0xff] %v6475_v16  ;;  %v2312_v20 = vmul.f32 1.442695, %v2219_v41 }
 0x516   : > { %4952 = vpow2.f32 %v2310_v54 }
 0x517   : > { %v2389_v13 = vpop.xlane.xlu1 %2388 }
 0x518   : > { %4954 = vrcp.f32 %v2389_v13 }
 0x519   : > { %2432 = vadd.xlane.f32.xlu0 %v6469_v26  ;;  %v6473_v31 = vpop.xlane.xlu0 %2402  ;;  %4956 = vrcp.f32 %v2383_v7 }
 0x51a   : > { %4958 = vrcp.f32 %v2387_v24 }
 0x51b   : > { %v2385_v61 = vpop.xlane.xlu1 %2384 }
 0x51c   : > { %4960 = vrcp.f32 %v2385_v61 }
 0x51d   : > { %2464 = vadd.xlane.f32.xlu0 %v6475_v16  ;;  %v2163_v45 = vpop.xlane.xlu0 %2162  ;;  %4962 = vpow2.f32 %v2342_v29 }
 0x51e   : > { %v6478_v6 = vpop.eup %4948  ;;  %v2240_v19 = vsub.f32 %v6201_v53, %v2163_v45  ;;  %4964 = vpow2.f32 %v2312_v20 }
 0x51f   : > { %7007 = vst [vmem:[#allocation35_spill] sm:$0xff] %v6478_v6  ;;  %2472 = vadd.xlane.f32.xlu1 %v6478_v6  ;;  %v2391_v54 = vpop.xlane.xlu1 %2390  ;;  %v6482_v39 = vpop.eup %4950 }
 0x520   : > { %7008 = vst [vmem:[#allocation36_spill] sm:$0xff] %v6482_v39  ;;  %v2354_v7 = vmul.f32 1.442695, %v2240_v19  ;;  %v6485_v62 = vpop.eup %4952 }
 0x521   : > { %2442 = vadd.xlane.f32.xlu0 %v6482_v39  ;;  %v2159_v24 = vpop.xlane.xlu0 %2158  ;;  %7009 = vst [vmem:[#allocation21_spill] sm:$0xff] %v6485_v62 }
 0x522   : > { %4966 = vpow2.f32 %v2354_v7  ;;  %v2238_v13 = vsub.f32 %v6205_v17, %v2159_v24  ;;  %v4955_v41 = vpop.eup %4954 }
 0x523   : > { %v2397_v61 = vpop.xlane.xlu1 %2396  ;;  %v4957_v29 = vpop.eup %4956  ;;  %4968 = vrcp.f32 %v2391_v54  ;;  %v2577_v19 = vmul.f32 %v4955_v41, %v6306_v36  ;;  %v7011_v54 = vld [vmem:[#allocation28_spill] sm:$0xff] }
 0x524   : > { %v2350_v53 = vmul.f32 1.442695, %v2238_v13  ;;  %v4959_v45 = vpop.eup %4958  ;;  %4970 = vrcp.f32 %v2397_v61  ;;  %v2574_v7 = vmul.f32 %v4957_v29, %v6298_v48  ;;  %v4608_v13 = vunpack.i.h.bf16 %v7011_v54  ;;  %v7014_v29 = vld [vmem:[#allocation33_spill] sm:$0xff] }
 0x525   : > { %2438 = vadd.xlane.f32.xlu0 %v6485_v62  ;;  %v6489_v28 = vpop.xlane.xlu0 %2410  ;;  %v4607_v61 = vunpack.i.l.bf16 %v7011_v54  ;;  %v2576_v62 = vmul.f32 %v4959_v45, %v6294_v34  ;;  %v7015_v34 = vld [vmem:[#allocation13_spill] sm:$0xff] }
 0x526   : > { %v4961_v20 = vpop.eup %4960  ;;  %4972 = vpow2.f32 %v2350_v53  ;;  %v4618_v53 = vunpack.i.h.bf16 %v7014_v29 }
 0x527   : > { %4974 = vrcp.f32 %v2395_v5  ;;  %v2393_v39 = vpop.xlane.xlu1 %2392  ;;  %v2575_v17 = vmul.f32 %v4961_v20, %v6313_v2  ;;  %v6494_v24 = vpop.eup %4962  ;;  %v2639_v5 = vpack.c.bf16 %v2577_v19, %v2576_v62  ;;  %v4617_v20 = vunpack.i.l.bf16 %v7014_v29  ;;  %v7016_v19 = vld [vmem:[#allocation39_spill] sm:$0xff] }
 0x528   : > { %7010 = vst [vmem:[#allocation45_spill] sm:$0xff] %v6494_v24  ;;  %4976 = vrcp.f32 %v2393_v39  ;;  %v6502_v41 = vpop.eup %4964  ;;  %v1466_v54 = vpack.c.bf16 %v4608_v13, %v4607_v61 }
 0x529   : > { %2470 = vadd.xlane.f32.xlu0 %v6494_v24  ;;  %v6500_v6 = vpop.xlane.xlu0 %2170  ;;  %v2638_v36 = vpack.c.bf16 %v2575_v17, %v2574_v7  ;;  %7012 = vst [vmem:[#allocation28_spill] sm:$0xff] %v6502_v41  ;;  %v4628_v7 = vunpack.i.h.bf16 %v7016_v19  ;;  %v4627_v17 = vunpack.i.l.bf16 %v7016_v19 }
 0x52b   : > { %4027 = vmatprep.mubr.bf16.mxu0 %v2638_v36  ;;  %v2399_v48 = vpop.xlane.xlu1 %2398 }
 0x52c   : > { %v6504_v2 = vpop.eup %4966  ;;  %4028 = vmatmul.mubr.bf16.vlgmr.msra.gmra.mrb[64].mxu0 %v2639_v5  ;;  %v1467_v5 = vpack.c.bf16 %v4618_v53, %v4617_v20  ;;  %v7017_v53 = vld [vmem:[#allocation40_spill] sm:$0xff] }
 0x52d   : > { %7013 = vst [vmem:[#allocation46_spill] sm:$0xff] %v6504_v2  ;;  %4076 = vmatpush3.bf16.msra.mxu0 %v7015_v34  ;;  %v6509_v39 = vpop.xlane.xlu0 %2166  ;;  %2440 = vadd.xlane.f32.xlu0 %v6502_v41  ;;  %v4969_v45 = vpop.eup %4968  ;;  %v1468_v41 = vpack.c.bf16 %v4628_v7, %v4627_v17  ;;  %v4638_v20 = vunpack.i.h.bf16 %v7017_v53  ;;  %v7018_v7 = vld [vmem:[#allocation41_spill] sm:$0xff] }
 0x52e   : > { %2482 = vadd.xlane.f32.xlu1 %v6504_v2  ;;  %4077 = vmatprep.subr.bf16.mxu0 %v1466_v54  ;;  %v4971_v62 = vpop.eup %4970  ;;  %v2578_v19 = vmul.f32 %v4969_v45, %v6318_v30  ;;  %v4648_v17 = vunpack.i.h.bf16 %v7018_v7  ;;  %v4647_v30 = vunpack.i.l.bf16 %v7018_v7 }
 0x52f   : > { %v2405_v36 = vpop.xlane.xlu1 %2404  ;;  %v2581_v29 = vmul.f32 %v4971_v62, %v6323_v57 }
 0x530   : > { %v6515_v24 = vpop.eup %4972  ;;  %4978 = vrcp.f32 %v2405_v36 }
 0x531   : > { %v4975_v13 = vpop.eup %4974  ;;  %4078 = vmatpush3.bf16.msra.mxu0 %v1466_v54  ;;  %4980 = vrcp.f32 %v2399_v48  ;;  %v2179_v34 = vpop.xlane.xlu0 %2178  ;;  %v4637_v54 = vunpack.i.l.bf16 %v7017_v53 }
 0x532   : > { %v4977_v61 = vpop.eup %4976  ;;  %2478 = vadd.xlane.f32.xlu1 %v6515_v24  ;;  %4079 = vmatprep.subr.bf16.mxu0 %v1467_v5  ;;  %4982 = vrcp.f32 %v6473_v31  ;;  %v2580_v48 = vmul.f32 %v4975_v13, %v6302_v43  ;;  %v2248_v31 = vsub.f32 %v6249_v55, %v2179_v34  ;;  %v2244_v55 = vsub.f32 %v6225_v9, %v6500_v6 }
 0x533   : > { %v2401_v2 = vpop.xlane.xlu1 %2400  ;;  %v2579_v16 = vmul.f32 %v4977_v61, %v6329_v63  ;;  %v1469_v45 = vpack.c.bf16 %v4638_v20, %v4637_v54  ;;  %v7019_v61 = vld [vmem:[#allocation25_spill] sm:$0xff]  ;;  %v1470_v54 = vpack.c.bf16 %v4648_v17, %v4647_v30 }
 0x534   : > { %4984 = vrcp.f32 %v2401_v2  ;;  %v2641_v57 = vpack.c.bf16 %v2581_v29, %v2580_v48  ;;  %v4658_v2 = vunpack.i.h.bf16 %v7019_v61  ;;  %v4657_v43 = vunpack.i.l.bf16 %v7019_v61 }
 0x535   : > { %4080 = vmatpush3.bf16.msra.mxu0 %v1467_v5  ;;  %v2640_v36 = vpack.c.bf16 %v2579_v16, %v2578_v19  ;;  %v2237_v16 = vsub.f32 %v6242_v0, %v6441_v47  ;;  %v2175_v5 = vpop.xlane.xlu0 %2174  ;;  %v2370_v34 = vmul.f32 1.442695, %v2248_v31  ;;  %v2362_v9 = vmul.f32 1.442695, %v2244_v55 }
 0x536   : > { %4081 = vmatprep.subr.bf16.mxu0 %v1468_v41  ;;  %v2246_v53 = vsub.f32 %v6251_v25, %v2175_v5  ;;  %v1471_v0 = vpack.c.bf16 %v4658_v2, %v4657_v43 }
 0x537   : > { %4031 = vmatprep.mubr.bf16.mxu0 %v2640_v36  ;;  %v2165_v62 = vpop.xlane.xlu1 %2164  ;;  %v2348_v36 = vmul.f32 1.442695, %v2237_v16 }
 0x538   : > { %v2241_v63 = vsub.f32 %v6208_v40, %v2165_v62  ;;  %4032 = vmatmul.mubr.bf16.gmra.mrb[68].mxu0 %v2641_v57  ;;  %v2242_v62 = vsub.f32 %v6229_v38, %v6509_v39  ;;  %v2366_v30 = vmul.f32 1.442695, %v2246_v53 }
 0x539   : > { %4082 = vmatpush3.bf16.msra.mxu0 %v1468_v41  ;;  %v7020_v41 = vld [vmem:[#allocation32_spill] sm:$0xff] }
 0x53a   : > { %v2356_v13 = vmul.f32 1.442695, %v2241_v63  ;;  %4083 = vmatprep.subr.bf16.mxu0 %v1469_v45  ;;  %v4979_v29 = vpop.eup %4978  ;;  %v4668_v57 = vunpack.i.h.bf16 %v7020_v41  ;;  %v4667_v17 = vunpack.i.l.bf16 %v7020_v41  ;;  %v2358_v38 = vmul.f32 1.442695, %v2242_v62 }
 0x53b   : > { %v2161_v19 = vpop.xlane.xlu1 %2160  ;;  %v4981_v40 = vpop.eup %4980  ;;  %v2585_v31 = vmul.f32 %v4979_v29, %v6338_v51 }
 0x53c   : > { %4986 = vpow2.f32 %v2356_v13  ;;  %v2239_v20 = vsub.f32 %v6212_v22, %v2161_v19  ;;  %v4983_v48 = vpop.eup %4982  ;;  %v2582_v22 = vmul.f32 %v4981_v40, %v6333_v11  ;;  %v1472_v11 = vpack.c.bf16 %v4668_v57, %v4667_v17 }
 0x53d   : > { %4084 = vmatpush3.bf16.msra.mxu0 %v1469_v45  ;;  %4988 = vpow2.f32 %v2370_v34  ;;  %v2584_v63 = vmul.f32 %v4983_v48, %v6309_v12 }
 0x53e   : > { %v4985_v47 = vpop.eup %4984  ;;  %v2352_v6 = vmul.f32 1.442695, %v2239_v20  ;;  %4085 = vmatprep.subr.bf16.mxu0 %v1470_v54 }
 0x53f   : > { %v2407_v25 = vpop.xlane.xlu1 %2406  ;;  %v2583_v7 = vmul.f32 %v4985_v47, %v6344_v44  ;;  %v2643_v51 = vpack.c.bf16 %v2585_v31, %v2584_v63 }
 0x540   : > { %4990 = vpow2.f32 %v2352_v6 }
 0x541   : > { %4992 = vpow2.f32 %v2348_v36  ;;  %4086 = vmatpush3.bf16.msra.mxu0 %v1470_v54  ;;  %v2642_v45 = vpack.c.bf16 %v2583_v7, %v2582_v22  ;;  %v2187_v36 = vpop.xlane.xlu0 %2186 }
 0x542   : > { %4994 = vrcp.f32 %v6489_v28  ;;  %4087 = vmatprep.subr.bf16.mxu0 %v1471_v0  ;;  %v2252_v62 = vsub.f32 %v6263_v52, %v2187_v36 }
 0x543   : > { %4996 = vpow2.f32 %v2362_v9  ;;  %4035 = vmatprep.mubr.bf16.mxu0 %v2642_v45  ;;  %v2413_v39 = vpop.xlane.xlu1 %2412 }
 0x544   : > { %4998 = vpow2.f32 %v2366_v30  ;;  %4036 = vmatmul.mubr.bf16.gmra.mrb[72].mxu0 %v2643_v51  ;;  %v2378_v7 = vmul.f32 1.442695, %v2252_v62 }
 0x545   : > { %5000 = vrcp.f32 %v2413_v39  ;;  %4088 = vmatpush3.bf16.msra.mxu0 %v1471_v0  ;;  %v2183_v22 = vpop.xlane.xlu0 %2182 }
 0x546   : > { %v6546_v44 = vpop.eup %4986  ;;  %5002 = vrcp.f32 %v2407_v25  ;;  %4089 = vmatprep.subr.bf16.mxu0 %v1472_v11 }
 0x547   : > { %5004 = vpow2.f32 %v2358_v38  ;;  %2484 = vadd.xlane.f32.xlu0 %v6546_v44  ;;  %v2409_v12 = vpop.xlane.xlu1 %2408  ;;  %v6549_v28 = vpop.eup %4988 }
 0x548   : > { %5006 = vrcp.f32 %v2409_v12 }
 0x549   : > { %4090 = vmatpush3.bf16.msra.mxu0 %v1472_v11  ;;  %v2419_v12 = vpop.xlane.xlu0 %2418 }
 0x54a   : > { %v6551_v61 = vpop.eup %4990 }
 0x54b   : > { %v6553_v2 = vpop.eup %4992  ;;  %2498 = vadd.xlane.f32.xlu0 %v6549_v28  ;;  %2480 = vadd.xlane.f32.xlu1 %v6551_v61  ;;  %v2173_v43 = vpop.xlane.xlu1 %2172 }
 0x54c   : > { %v4995_v16 = vpop.eup %4994  ;;  %v2245_v5 = vsub.f32 %v6232_v32, %v2173_v43 }
 0x54d   : > { %v6558_v55 = vpop.eup %4996 }
 0x54e   : > { %v6560_v13 = vpop.eup %4998  ;;  %v2364_v29 = vmul.f32 1.442695, %v2245_v5 }
 0x54f   : > { %v5001_v34 = vpop.eup %5000  ;;  %2494 = vadd.xlane.f32.xlu0 %v6560_v13  ;;  %2490 = vadd.xlane.f32.xlu1 %v6558_v55  ;;  %v2169_v19 = vpop.xlane.xlu1 %2168 }
 0x550   : > { %v5003_v40 = vpop.eup %5002  ;;  %5008 = vpow2.f32 %v2364_v29  ;;  %v2243_v53 = vsub.f32 %v6234_v50, %v2169_v19  ;;  %v2589_v32 = vmul.f32 %v5001_v34, %v6359_v33  ;;  %v2588_v50 = vmul.f32 %v4995_v16, %v6326_v3 }
 0x551   : > { %v6565_v20 = vpop.eup %5004  ;;  %v2586_v47 = vmul.f32 %v5003_v40, %v6353_v59  ;;  %v2250_v3 = vsub.f32 %v6265_v14, %v2183_v22 }
 0x552   : > { %v5007_v54 = vpop.eup %5006  ;;  %v2360_v48 = vmul.f32 1.442695, %v2243_v53  ;;  %v2645_v31 = vpack.c.bf16 %v2589_v32, %v2588_v50  ;;  %v7022_v32 = vld [vmem:[#allocation38_spill] sm:$0xff] }
 0x553   : > { %2476 = vadd.xlane.f32.xlu0 %v6553_v2  ;;  %2486 = vadd.xlane.f32.xlu1 %v6565_v20  ;;  %v2181_v0 = vpop.xlane.xlu1 %2180  ;;  %v2587_v41 = vmul.f32 %v5007_v54, %v6362_v10  ;;  %v2374_v30 = vmul.f32 1.442695, %v2250_v3  ;;  %v2236_v36 = vsub.f32 %v7022_v32, %v6436_v21  ;;  %v7024_v3 = vld [vmem:[#allocation15_spill] sm:$0xff]  ;;  %v7030_v32 = vld [vmem:[#allocation14_spill] sm:$0xff] }
 0x554   : > { %5010 = vpow2.f32 %v2360_v48  ;;  %v2249_v57 = vsub.f32 %v6254_v46, %v2181_v0 }
 0x555   : > { %v2644_v9 = vpack.c.bf16 %v2587_v41, %v2586_v47 }
 0x556   : > { %v2372_v6 = vmul.f32 1.442695, %v2249_v57 }
 0x557   : > { %4039 = vmatprep.mubr.bf16.mxu0 %v2644_v9  ;;  %v2177_v33 = vpop.xlane.xlu1 %2176 }
 0x558   : > { %5012 = vpow2.f32 %v2372_v6  ;;  %v2247_v25 = vsub.f32 %v6256_v42, %v2177_v33  ;;  %4040 = vmatmul.mubr.bf16.gmra.mrb[76].mxu0 %v2645_v31  ;;  %v2346_v6 = vmul.f32 1.442695, %v2236_v36 }
 0x55a   : > { %v6576_v59 = vpop.eup %5008  ;;  %v2368_v10 = vmul.f32 1.442695, %v2247_v25  ;;  %v7023_v25 = vld [vmem:[#allocation22_spill] sm:$0xff] }
 0x55b   : > { %2492 = vadd.xlane.f32.xlu1 %v6576_v59  ;;  %v2189_v46 = vpop.xlane.xlu1 %2188  ;;  %v4613_v22 = vunpack.i.h.bf16 %v7023_v25 }
 0x55c   : > { %5014 = vpow2.f32 %v2368_v10  ;;  %v2253_v45 = vsub.f32 %v6268_v4, %v2189_v46  ;;  %v7021_v4 = vld [vmem:[#allocation12_spill] sm:$0xff]  ;;  %v4612_v10 = vunpack.i.l.bf16 %v7023_v25 }
 0x55d   : > { %5016 = vpow2.f32 %v2378_v7 }
 0x55e   : > { %v6580_v17 = vpop.eup %5010  ;;  %5018 = vpow2.f32 %v2374_v30  ;;  %v2380_v14 = vmul.f32 1.442695, %v2253_v45 }
 0x55f   : > { %2488 = vadd.xlane.f32.xlu1 %v6580_v17  ;;  %v2185_v52 = vpop.xlane.xlu1 %2184 }
 0x560   : > { %v2251_v42 = vsub.f32 %v6272_v1, %v2185_v52 }
 0x562   : > { %v6584_v63 = vpop.eup %5012  ;;  %v2376_v51 = vmul.f32 1.442695, %v2251_v42 }
 0x563   : > { %2500 = vadd.xlane.f32.xlu1 %v6584_v63 }
 0x564   : > { %5020 = vpow2.f32 %v2376_v51 }
 0x565   : > { %5022 = vpow2.f32 %v2380_v14 }
 0x566   : > { %v6588_v38 = vpop.eup %5014 }
 0x567   : > { %2496 = vadd.xlane.f32.xlu0 %v6588_v38  ;;  %v6591_v39 = vpop.eup %5016 }
 0x568   : > { %v6594_v1 = vpop.eup %5018 }
 0x56b   : > { %2506 = vadd.xlane.f32.xlu0 %v6591_v39 }
 0x56e   : > { %v6597_v11 = vpop.eup %5020 }
 0x56f   : > { %2502 = vadd.xlane.f32.xlu0 %v6594_v1  ;;  %v6602_v43 = vpop.eup %5022 }
 0x572   : > { %v2451_v16 = vpop.xlane.xlu1 %2450 }
 0x573   : > { %2504 = vadd.xlane.f32.xlu0 %v6597_v11 }
 0x574   : > { %4670 = vrot.lane.b32.xlu1 %v7021_v4, %s5308_s11  ;;  %v7027_v4 = vld [vmem:[#allocation37_spill] sm:$0xff] }
 0x576   : > { %v2415_v5 = vpop.xlane.xlu0 %2414 }
 0x577   : > { %2508 = vadd.xlane.f32.xlu0 %v6602_v43  ;;  %5024 = vrcp.f32 %v2415_v5 }
 0x57a   : > { %v2417_v29 = vpop.xlane.xlu0 %2416  ;;  %v2447_v34 = vpop.xlane.xlu1 %2446 }
 0x57b   : > { %5026 = vrcp.f32 %v2417_v29 }
 0x57c   : > { %5028 = vrcp.f32 %v2447_v34  ;;  %v1474_v34 = vpack.c.bf16 %v4613_v22, %v4612_v10 }
 0x57d   : > { %5030 = vrcp.f32 %v2419_v12 }
 0x57e   : > { %v2449_v19 = vpop.xlane.xlu0 %2448  ;;  %v2421_v40 = vpop.xlane.xlu1 %2420 }
 0x57f   : > { %5032 = vrcp.f32 %v2449_v19  ;;  %v7028_v19 = vld [vmem:[#allocation44_spill] sm:$0xff] }
 0x580   : > { %5034 = vrcp.f32 %v2421_v40 }
 0x581   : > { %5036 = vrcp.f32 %v2451_v16  ;;  %v5025_v48 = vpop.eup %5024  ;;  %v4623_v16 = vunpack.i.h.bf16 %v7027_v4 }
 0x582   : > { %v2427_v53 = vpop.xlane.xlu0 %2426  ;;  %v2453_v54 = vpop.xlane.xlu1 %2452  ;;  %v2590_v41 = vmul.f32 %v5025_v48, %v6383_v49  ;;  %v7025_v49 = vld [vmem:[#allocation43_spill] sm:$0xff] }
 0x583   : > { %5038 = vrcp.f32 %v2453_v54  ;;  %v7029_v54 = vld [vmem:[#allocation16_spill] sm:$0xff] }
 0x584   : > { %5040 = vpow2.f32 %v2346_v6 }
 0x585   : > { %v5027_v0 = vpop.eup %5026 }
 0x586   : > { %v2459_v47 = vpop.xlane.xlu0 %2458  ;;  %v2591_v57 = vmul.f32 %v5027_v0, %v6387_v15  ;;  %v5029_v50 = vpop.eup %5028  ;;  %v7026_v15 = vld [vmem:[#allocation27_spill] sm:$0xff] }
 0x587   : > { %v5031_v9 = vpop.eup %5030  ;;  %v2606_v7 = vmul.f32 %v5029_v50, %v6389_v8  ;;  %v4622_v8 = vunpack.i.l.bf16 %v7027_v4 }
 0x588   : > { %v2646_v31 = vpack.c.bf16 %v2591_v57, %v2590_v41  ;;  %v2592_v30 = vmul.f32 %v5031_v9, %v7025_v49  ;;  %v7031_v41 = vld [vmem:[#allocation23_spill] sm:$0xff] }
 0x589   : > { %v5033_v33 = vpop.eup %5032  ;;  %v4633_v57 = vunpack.i.h.bf16 %v7031_v41  ;;  %v4632_v50 = vunpack.i.l.bf16 %v7031_v41  ;;  %v1475_v9 = vpack.c.bf16 %v4623_v16, %v4622_v8 }
 0x58a   : > { %v5035_v62 = vpop.eup %5034  ;;  %4059 = vmatprep.mubr.bf16.mxu1 %v2646_v31  ;;  %v2423_v46 = vpop.xlane.xlu0 %2422  ;;  %v2607_v52 = vmul.f32 %v5033_v33, %v7024_v3  ;;  %v7032_v31 = vld [vmem:[#allocation24_spill] sm:$0xff] }
 0x58b   : > { %v2455_v21 = vpop.xlane.xlu1 %2454  ;;  %v2593_v42 = vmul.f32 %v5035_v62, %v7026_v15  ;;  %v5037_v45 = vpop.eup %5036  ;;  %5042 = vrcp.f32 %v2423_v46  ;;  %v4643_v33 = vunpack.i.h.bf16 %v7032_v31  ;;  %v4642_v62 = vunpack.i.l.bf16 %v7032_v31  ;;  %v7033_v15 = vld [vmem:[#allocation42_spill] sm:$0xff] }
 0x58c   : > { %v2654_v51 = vpack.c.bf16 %v2607_v52, %v2606_v7  ;;  %5044 = vrcp.f32 %v2427_v53  ;;  %v2608_v40 = vmul.f32 %v5037_v45, %v7028_v19  ;;  %v1476_v22 = vpack.c.bf16 %v4633_v57, %v4632_v50 }
 0x58d   : > { %v2647_v14 = vpack.c.bf16 %v2593_v42, %v2592_v30  ;;  %v5039_v12 = vpop.eup %5038  ;;  %v1477_v3 = vpack.c.bf16 %v4643_v33, %v4642_v62  ;;  %v4653_v42 = vunpack.i.h.bf16 %v7033_v15  ;;  %v4652_v45 = vunpack.i.l.bf16 %v7033_v15 }
 0x58e   : > { %v2425_v5 = vpop.xlane.xlu0 %2424  ;;  %4091 = vmatprep.mubr.bf16.mxu0 %v2654_v51  ;;  %v2609_v48 = vmul.f32 %v5039_v12, %v7029_v54  ;;  %v6622_v6 = vpop.eup %5040 }
 0x58f   : > { %v2429_v29 = vpop.xlane.xlu1 %2428  ;;  %5046 = vrcp.f32 %v2425_v5  ;;  %4060 = vmatmul.mubr.bf16.vlgmr.msra.gmra.mrb[48].mxu1 %v2647_v14  ;;  %v7034_v14 = vld [vmem:[#allocation17_spill] sm:$0xff] }
 0x590   : > { %4108 = vmatpush3.bf16.msra.mxu1 %v7030_v32  ;;  %5048 = vrcp.f32 %v2429_v29  ;;  %v2655_v36 = vpack.c.bf16 %v2609_v48, %v2608_v40  ;;  %v7036_v40 = vld [vmem:[#allocation30_spill] sm:$0xff] }
 0x591   : > { %5050 = vrcp.f32 %v2455_v21  ;;  %4109 = vmatprep.subr.bf16.mxu1 %v1474_v34 }
 0x592   : > { %5052 = vrcp.f32 %v2459_v47  ;;  %v2457_v53 = vpop.xlane.xlu0 %2456  ;;  %4092 = vmatmul.mubr.bf16.vlgmr.msra.gmra.mrb[80].mxu0 %v2655_v36  ;;  %v1478_v36 = vpack.c.bf16 %v4653_v42, %v4652_v45 }
 0x593   : > { %v2461_v0 = vpop.xlane.xlu1 %2460  ;;  %5054 = vrcp.f32 %v2457_v53 }
 0x594   : > { %4110 = vmatpush3.bf16.msra.mxu1 %v1474_v34  ;;  %5056 = vrcp.f32 %v2461_v0  ;;  %v7038_v0 = vld [vmem:[#allocation31_spill] sm:$0xff] }
 0x595   : > { %4111 = vmatprep.subr.bf16.mxu1 %v1475_v9  ;;  %v5043_v47 = vpop.eup %5042 }
 0x596   : > { %v2435_v25 = vpop.xlane.xlu0 %2434  ;;  %v5045_v10 = vpop.eup %5044  ;;  %v2594_v52 = vmul.f32 %v5043_v47, %v6415_v35  ;;  %v7035_v35 = vld [vmem:[#allocation26_spill] sm:$0xff] }
 0x597   : > { %v2596_v12 = vmul.f32 %v5045_v10, %v7034_v14  ;;  %v4663_v19 = vunpack.i.h.bf16 %v7035_v35  ;;  %v4662_v32 = vunpack.i.l.bf16 %v7035_v35 }
 0x598   : > { %4112 = vmatpush3.bf16.msra.mxu1 %v1475_v9  ;;  %2474 = vadd.xlane.f32.xlu1 %v6622_v6 }
 0x599   : > { %v5047_v46 = vpop.eup %5046  ;;  %4113 = vmatprep.subr.bf16.mxu1 %v1476_v22  ;;  %v1479_v33 = vpack.c.bf16 %v4663_v19, %v4662_v32  ;;  %v7043_v32 = vld [vmem:[#allocation35_spill] sm:$0xff] }
 0x59a   : > { %v5049_v21 = vpop.eup %5048  ;;  %v2467_v7 = vpop.xlane.xlu0 %2466  ;;  %v2595_v49 = vmul.f32 %v5047_v46, %v6426_v37 }
 0x59b   : > { %v5051_v30 = vpop.eup %5050  ;;  %v2463_v51 = vpop.xlane.xlu1 %2462  ;;  %v2597_v4 = vmul.f32 %v5049_v21, %v6424_v58  ;;  %v7037_v58 = vld [vmem:[#allocation29_spill] sm:$0xff] }
 0x59c   : > { %v5053_v16 = vpop.eup %5052  ;;  %4114 = vmatpush3.bf16.msra.mxu1 %v1476_v22  ;;  %v2648_v5 = vpack.c.bf16 %v2595_v49, %v2594_v52  ;;  %v2610_v54 = vmul.f32 %v5051_v30, %v7036_v40 }
 0x59d   : > { %v5055_v29 = vpop.eup %5054  ;;  %4115 = vmatprep.subr.bf16.mxu1 %v1477_v3  ;;  %v2649_v34 = vpack.c.bf16 %v2597_v4, %v2596_v12  ;;  %v2612_v53 = vmul.f32 %v5053_v16, %v7037_v58 }
 0x59e   : > { %v5057_v8 = vpop.eup %5056  ;;  %v2431_v37 = vpop.xlane.xlu0 %2430  ;;  %4063 = vmatprep.mubr.bf16.mxu1 %v2648_v5  ;;  %v2611_v48 = vmul.f32 %v5055_v29, %v6433_v23 }
 0x59f   : > { %4064 = vmatmul.mubr.bf16.gmra.mrb[52].mxu1 %v2649_v34  ;;  %v2613_v41 = vmul.f32 %v5057_v8, %v7038_v0  ;;  %v2437_v50 = vpop.xlane.xlu1 %2436  ;;  %v7040_v34 = vld [vmem:[#allocation19_spill] sm:$0xff] }
 0x5a0   : > { %4116 = vmatpush3.bf16.msra.mxu1 %v1477_v3  ;;  %v2656_v57 = vpack.c.bf16 %v2611_v48, %v2610_v54  ;;  %5058 = vrcp.f32 %v2437_v50  ;;  %v7042_v54 = vld [vmem:[#allocation45_spill] sm:$0xff] }
 0x5a1   : > { %4117 = vmatprep.subr.bf16.mxu1 %v1478_v36  ;;  %v2657_v9 = vpack.c.bf16 %v2613_v41, %v2612_v53  ;;  %5060 = vrcp.f32 %v2431_v37 }
 0x5a2   : > { %v2469_v31 = vpop.xlane.xlu0 %2468  ;;  %4095 = vmatprep.mubr.bf16.mxu0 %v2656_v57  ;;  %5062 = vrcp.f32 %v2435_v25  ;;  %v7044_v57 = vld [vmem:[#allocation36_spill] sm:$0xff] }
 0x5a3   : > { %4096 = vmatmul.mubr.bf16.gmra.mrb[84].mxu0 %v2657_v9  ;;  %v2445_v22 = vpop.xlane.xlu1 %2444  ;;  %v7045_v9 = vld [vmem:[#allocation21_spill] sm:$0xff] }
 0x5a4   : > { %4118 = vmatpush3.bf16.msra.mxu1 %v1478_v36 }
 0x5a5   : > { %4119 = vmatprep.subr.bf16.mxu1 %v1479_v33 }
 0x5a6   : > { %v2433_v23 = vpop.xlane.xlu0 %2432 }
 0x5a7   : > { %5064 = vrcp.f32 %v2433_v23 }
 0x5a8   : > { %5066 = vrcp.f32 %v2469_v31  ;;  %4120 = vmatpush3.bf16.msra.mxu1 %v1479_v33  ;;  %v7046_v33 = vld [vmem:[#allocation28_spill] sm:$0xff] }
 0x5a9   : > { %5068 = vrcp.f32 %v2463_v51 }
 0x5aa   : > { %5070 = vrcp.f32 %v2467_v7  ;;  %v2465_v62 = vpop.xlane.xlu0 %2464  ;;  %v5059_v47 = vpop.eup %5058 }
 0x5ab   : > { %5072 = vrcp.f32 %v2465_v62  ;;  %v5061_v46 = vpop.eup %5060  ;;  %v2601_v52 = vmul.f32 %v5059_v47, %v6454_v18  ;;  %v7039_v18 = vld [vmem:[#allocation34_spill] sm:$0xff]  ;;  %v7047_v62 = vld [vmem:[#allocation20_spill] sm:$0xff] }
 0x5ac   : > { %v5063_v21 = vpop.eup %5062  ;;  %v2473_v30 = vpop.xlane.xlu1 %2472  ;;  %v2598_v25 = vmul.f32 %v5061_v46, %v6456_v60  ;;  %v7041_v60 = vld [vmem:[#allocation18_spill] sm:$0xff] }
 0x5ad   : > { %v2600_v7 = vmul.f32 %v5063_v21, %v6443_v56  ;;  %5074 = vrcp.f32 %v2473_v30 }
 0x5ae   : > { %v2443_v10 = vpop.xlane.xlu0 %2442 }
 0x5af   : > { %v2651_v4 = vpack.c.bf16 %v2601_v52, %v2600_v7 }
 0x5b1   : > { %v5065_v3 = vpop.eup %5064 }
 0x5b2   : > { %v5067_v49 = vpop.eup %5066  ;;  %v2439_v15 = vpop.xlane.xlu0 %2438  ;;  %v2599_v42 = vmul.f32 %v5065_v3, %v6469_v26 }
 0x5b3   : > { %v5069_v45 = vpop.eup %5068  ;;  %v2617_v16 = vmul.f32 %v5067_v49, %v6462_v27 }
 0x5b4   : > { %v5071_v51 = vpop.eup %5070  ;;  %v2650_v14 = vpack.c.bf16 %v2599_v42, %v2598_v25  ;;  %v2614_v29 = vmul.f32 %v5069_v45, %v7039_v18 }
 0x5b5   : > { %v5073_v12 = vpop.eup %5072  ;;  %v2616_v26 = vmul.f32 %v5071_v51, %v7041_v60 }
 0x5b6   : > { %v2471_v5 = vpop.xlane.xlu0 %2470  ;;  %4067 = vmatprep.mubr.bf16.mxu1 %v2650_v14  ;;  %v2615_v8 = vmul.f32 %v5073_v12, %v7040_v34 }
 0x5b7   : > { %5076 = vrcp.f32 %v2471_v5  ;;  %4068 = vmatmul.mubr.bf16.gmra.mrb[56].mxu1 %v2651_v4  ;;  %v2659_v56 = vpack.c.bf16 %v2617_v16, %v2616_v26  ;;  %v5075_v27 = vpop.eup %5074 }
 0x5b8   : > { %5078 = vrcp.f32 %v2443_v10  ;;  %v2658_v35 = vpack.c.bf16 %v2615_v8, %v2614_v29  ;;  %v2619_v36 = vmul.f32 %v5075_v27, %v7043_v32 }
 0x5b9   : > { %5080 = vrcp.f32 %v2439_v15 }
 0x5ba   : > { %5082 = vrcp.f32 %v2445_v22  ;;  %v2441_v19 = vpop.xlane.xlu0 %2440  ;;  %4099 = vmatprep.mubr.bf16.mxu0 %v2658_v35 }
 0x5bb   : > { %5084 = vrcp.f32 %v2441_v19  ;;  %4100 = vmatmul.mubr.bf16.gmra.mrb[88].mxu0 %v2659_v56  ;;  %v2483_v46 = vpop.xlane.xlu1 %2482 }
 0x5bf   : > { %v2479_v21 = vpop.xlane.xlu1 %2478 }
 0x5c0   : > { %5086 = vrcp.f32 %v2479_v21 }
 0x5c1   : > { %v5077_v37 = vpop.eup %5076 }
 0x5c2   : > { %v5079_v40 = vpop.eup %5078  ;;  %v2618_v48 = vmul.f32 %v5077_v37, %v7042_v54  ;;  %v7048_v37 = vld [vmem:[#allocation46_spill] sm:$0xff] }
 0x5c3   : > { %v5081_v58 = vpop.eup %5080  ;;  %v2604_v50 = vmul.f32 %v5079_v40, %v7044_v57 }
 0x5c4   : > { %v5083_v53 = vpop.eup %5082  ;;  %v2660_v0 = vpack.c.bf16 %v2619_v36, %v2618_v48  ;;  %v2602_v31 = vmul.f32 %v5081_v58, %v7045_v9 }
 0x5c5   : > { %v5085_v41 = vpop.eup %5084  ;;  %v2605_v47 = vmul.f32 %v5083_v53, %v7047_v62 }
 0x5c6   : > { %4103 = vmatprep.mubr.bf16.mxu0 %v2660_v0  ;;  %v2603_v23 = vmul.f32 %v5085_v41, %v7046_v33 }
 0x5c7   : > { %v2653_v10 = vpack.c.bf16 %v2605_v47, %v2604_v50 }
 0x5c8   : > { %v2652_v22 = vpack.c.bf16 %v2603_v23, %v2602_v31 }
 0x5ca   : > { %4071 = vmatprep.mubr.bf16.mxu1 %v2652_v22  ;;  %v5087_v30 = vpop.eup %5086 }
 0x5cb   : > { %4072 = vmatmul.mubr.bf16.gmra.mrb[60].mxu1 %v2653_v10  ;;  %v2622_v45 = vmul.f32 %v5087_v30, %v6515_v24 }
 0x5d4   : > { %v2485_v52 = vpop.xlane.xlu0 %2484 }
 0x5d8   : > { %v2481_v3 = vpop.xlane.xlu1 %2480  ;;  %v2499_v25 = vpop.xlane.xlu0 %2498 }
 0x5d9   : > { %5088 = vrcp.f32 %v2481_v3 }
 0x5da   : > { %5090 = vrcp.f32 %v2485_v52 }
 0x5db   : > { %5092 = vrcp.f32 %v2483_v46 }
 0x5dc   : > { %v2491_v49 = vpop.xlane.xlu1 %2490  ;;  %v2495_v12 = vpop.xlane.xlu0 %2494 }
 0x5e0   : > { %v2487_v42 = vpop.xlane.xlu1 %2486  ;;  %v6655_v16 = vpop.xlane.xlu0 %2476 }
 0x5e1   : > { %5094 = vrcp.f32 %v2487_v42 }
 0x5e3   : > { %v5089_v15 = vpop.eup %5088 }
 0x5e4   : > { %v2623_v7 = vmul.f32 %v5089_v15, %v6551_v61  ;;  %v5091_v18 = vpop.eup %5090 }
 0x5e5   : > { %v5093_v34 = vpop.eup %5092  ;;  %v2625_v35 = vmul.f32 %v5091_v18, %v6546_v44 }
 0x5e6   : > { %v2662_v51 = vpack.c.bf16 %v2623_v7, %v2622_v45  ;;  %v2624_v40 = vmul.f32 %v5093_v34, %v7048_v37 }
 0x5e8   : > { %v2493_v14 = vpop.xlane.xlu1 %2492  ;;  %4123 = vmatprep.mubr.bf16.mxu1 %v2662_v51  ;;  %v2663_v48 = vpack.c.bf16 %v2625_v35, %v2624_v40 }
 0x5eb   : > { %v5095_v60 = vpop.eup %5094 }
 0x5ec   : > { %v2489_v4 = vpop.xlane.xlu1 %2488  ;;  %v2626_v54 = vmul.f32 %v5095_v60, %v6565_v20 }
 0x5ed   : > { %5096 = vrcp.f32 %v2489_v4 }
 0x5ee   : > { %5098 = vrcp.f32 %v2493_v14 }
 0x5ef   : > { %5100 = vrcp.f32 %v2495_v12 }
 0x5f0   : > { %v2501_v5 = vpop.xlane.xlu1 %2500  ;;  %5102 = vrcp.f32 %v2491_v49 }
 0x5f4   : > { %v2497_v29 = vpop.xlane.xlu0 %2496  ;;  %v4671_v24 = vpop.permute.xlu1 %4670 }
 0x5f5   : > { %5104 = vrcp.f32 %v2497_v29  ;;  %v4673_v61 = vunpack.i.h.bf16 %v4671_v24  ;;  %v4672_v8 = vunpack.i.l.bf16 %v4671_v24 }
 0x5f6   : > { %5106 = vrcp.f32 %v2501_v5 }
 0x5f7   : > { %v5097_v26 = vpop.eup %5096  ;;  %v1480_v56 = vpack.c.bf16 %v4673_v61, %v4672_v8  ;;  %5108 = vrcp.f32 %v2499_v25 }
 0x5f8   : > { %v2507_v19 = vpop.xlane.xlu0 %2506  ;;  %v2627_v27 = vmul.f32 %v5097_v26, %v6580_v17  ;;  %v5099_v32 = vpop.eup %5098 }
 0x5f9   : > { %4121 = vmatprep.subr.bf16.mxu1 %v1480_v56  ;;  %v5101_v53 = vpop.eup %5100  ;;  %v2629_v17 = vmul.f32 %v5099_v32, %v6576_v59 }
 0x5fa   : > { %4122 = vmatpush3.bf16.msra.mxu1 %v1480_v56  ;;  %v2664_v58 = vpack.c.bf16 %v2627_v27, %v2626_v54  ;;  %v5103_v0 = vpop.eup %5102  ;;  %v2630_v23 = vmul.f32 %v5101_v53, %v6560_v13 }
 0x5fb   : > { %v2628_v31 = vmul.f32 %v5103_v0, %v6558_v55 }
 0x5fc   : > { %v2503_v36 = vpop.xlane.xlu0 %2502 }
 0x5fd   : > { %4124 = vmatmul.mubr.bf16.vlgmr.msra.gmra.mrb[64].mxu1 %v2663_v48  ;;  %5110 = vrcp.f32 %v2503_v36  ;;  %v2665_v62 = vpack.c.bf16 %v2629_v17, %v2628_v31 }
 0x5fe   : > { %4127 = vmatprep.mubr.bf16.mxu1 %v2664_v58 }
 0x5ff   : > { %v5105_v44 = vpop.eup %5104  ;;  %v6661_v41 = vpop.f32.mrb[64].mxu0 }
 0x600   : > { %v6664_v57 = vpop.f32.mrb[65].mxu0  ;;  %v2505_v50 = vpop.xlane.xlu0 %2504  ;;  %v2631_v20 = vmul.f32 %v5105_v44, %v6588_v38 }
 0x601   : > { %5112 = vrcp.f32 %v2505_v50  ;;  %v6667_v9 = vpop.f32.mrb[66].mxu0  ;;  %v5107_v47 = vpop.eup %5106 }
 0x602   : > { %v6670_v33 = vpop.f32.mrb[67].mxu0  ;;  %5114 = vrcp.f32 %v2507_v19  ;;  %v2666_v10 = vpack.c.bf16 %v2631_v20, %v2630_v23  ;;  %v5109_v59 = vpop.eup %5108  ;;  %v2633_v38 = vmul.f32 %v5107_v47, %v6584_v63 }
 0x603   : > { %v2632_v21 = vmul.f32 %v5109_v59, %v6549_v28 }
 0x604   : > { %v2509_v22 = vpop.xlane.xlu0 %2508 }
 0x605   : > { %5116 = vrcp.f32 %v2509_v22  ;;  %4128 = vmatmul.mubr.bf16.gmra.mrb[68].mxu1 %v2665_v62  ;;  %v2667_v52 = vpack.c.bf16 %v2633_v38, %v2632_v21 }
 0x606   : > { %4131 = vmatprep.mubr.bf16.mxu1 %v2666_v10  ;;  %5118 = vrcp.f32 %v6655_v16 }
 0x607   : > { %v5111_v46 = vpop.eup %5110 }
 0x608   : > { %v2634_v13 = vmul.f32 %v5111_v46, %v6594_v1 }
 0x60b   : > { %v5113_v3 = vpop.eup %5112  ;;  %v6675_v55 = vpop.f32.mrb[68].mxu0 }
 0x60c   : > { %v6677_v49 = vpop.f32.mrb[69].mxu0  ;;  %v2635_v30 = vmul.f32 %v5113_v3, %v6597_v11  ;;  %v5115_v15 = vpop.eup %5114 }
 0x60d   : > { %v6681_v25 = vpop.f32.mrb[70].mxu0  ;;  %4132 = vmatmul.mubr.bf16.gmra.mrb[72].mxu1 %v2667_v52  ;;  %v2636_v28 = vmul.f32 %v5115_v15, %v6591_v39 }
 0x60e   : > { %v6683_v42 = vpop.f32.mrb[71].mxu0  ;;  %v2668_v63 = vpack.c.bf16 %v2635_v30, %v2634_v13 }
 0x60f   : > { %v5117_v45 = vpop.eup %5116 }
 0x610   : > { %4135 = vmatprep.mubr.bf16.mxu1 %v2668_v63  ;;  %v2637_v7 = vmul.f32 %v5117_v45, %v6602_v43  ;;  %v5119_v43 = vpop.eup %5118 }
 0x611   : > { %v2621_v61 = vmul.f32 %v5119_v43, %v6553_v2  ;;  %v4827_v43 = vld [vmem:[#allocation7 + $0x8] sm:$0xff]  }
 0x612   : > { %v2669_v51 = vpack.c.bf16 %v2637_v7, %v2636_v28 }
 0x615   : > { %4136 = vmatmul.mubr.bf16.gmra.mrb[76].mxu1 %v2669_v51 }
 0x617   : > { %v6687_v14 = vpop.f32.mrb[72].mxu0 }
 0x618   : > { %v6689_v1 = vpop.f32.mrb[73].mxu0 }
 0x619   : > { %v6691_v11 = vpop.f32.mrb[74].mxu0 }
 0x61a   : > { %v6693_v12 = vpop.f32.mrb[75].mxu0 }
 0x625   : > { %v2475_v4 = vpop.xlane.xlu1 %2474 }
 0x626   : > { %5120 = vrcp.f32 %v2475_v4  ;;  %v4826_v4 = vld [vmem:[#allocation7] sm:$0xff]  }
 0x627   : > { %4139 = vmatprep.subr.bf16.mxu0 %v4826_v4  ;;  %4171 = vmatprep.subr.bf16.mxu1 %v4826_v4 }
 0x628   : > { %4140 = vmatpush3.bf16.msra.mxu0 %v4826_v4  ;;  %4179 = vmatpush3.bf16.msra.mxu1 %v4826_v4 }
 0x629   : > { %4141 = vmatprep.subr.bf16.mxu0 %v4827_v43  ;;  %4172 = vmatprep.subr.bf16.mxu1 %v4827_v43 }
 0x62b   : > { %v6696_v5 = vpop.f32.mrb[76].mxu0 }
 0x62c   : > { %v6698_v18 = vpop.f32.mrb[77].mxu0  ;;  %4142 = vmatpush3.bf16.msra.mxu0 %v4827_v43  ;;  %4180 = vmatpush3.bf16.msra.mxu1 %v4827_v43 }
 0x62d   : > { %v6700_v39 = vpop.f32.mrb[78].mxu0 }
 0x62e   : > { %v6702_v29 = vpop.f32.mrb[79].mxu0 }
 0x630   : > { %v5121_v24 = vpop.eup %5120 }
 0x631   : > { %v2620_v34 = vmul.f32 %v5121_v24, %v6622_v6  ;;  %v4828_v24 = vld [vmem:[#allocation7 + $0x10] sm:$0xff]  }
 0x632   : > { %4143 = vmatprep.subr.bf16.mxu0 %v4828_v24  ;;  %4173 = vmatprep.subr.bf16.mxu1 %v4828_v24 }
 0x633   : > { %v2661_v8 = vpack.c.bf16 %v2621_v61, %v2620_v34  ;;  %v4829_v34 = vld [vmem:[#allocation7 + $0x18] sm:$0xff]   ;;  %4144 = vmatpush3.bf16.msra.mxu0 %v4828_v24  ;;  %4181 = vmatpush3.bf16.msra.mxu1 %v4828_v24  ;;  %v4830_v61 = vld [vmem:[#allocation7 + $0x20] sm:$0xff]  }
 0x634   : > { %4145 = vmatprep.subr.bf16.mxu0 %v4829_v34  ;;  %4174 = vmatprep.subr.bf16.mxu1 %v4829_v34 }
 0x635   : > { %4104 = vmatmul.mubr.bf16.gmra.mrb[92].mxu0 %v2661_v8  ;;  %v4831_v8 = vld [vmem:[#allocation7 + $0x28] sm:$0xff]  }
 0x637   : > { %4146 = vmatpush3.bf16.msra.mxu0 %v4829_v34  ;;  %4182 = vmatpush3.bf16.msra.mxu1 %v4829_v34 }
 0x638   : > { %4147 = vmatprep.subr.bf16.mxu0 %v4830_v61  ;;  %4175 = vmatprep.subr.bf16.mxu1 %v4830_v61 }
 0x63b   : > { %4148 = vmatpush3.bf16.msra.mxu0 %v4830_v61  ;;  %4183 = vmatpush3.bf16.msra.mxu1 %v4830_v61 }
 0x63c   : > { %4149 = vmatprep.subr.bf16.mxu0 %v4831_v8  ;;  %4176 = vmatprep.subr.bf16.mxu1 %v4831_v8 }
 0x63f   : > { %4150 = vmatpush3.bf16.msra.mxu0 %v4831_v8  ;;  %4184 = vmatpush3.bf16.msra.mxu1 %v4831_v8 }
 0x662   : > { %v4061_v60 = vpop.f32.mrb[48].mxu1 }
 0x663   : > { %v2801_v16 = vpop.f32.mrb[49].mxu1 }
 0x664   : > { %v4062_v26 = vpop.f32.mrb[50].mxu1 }
 0x665   : > { %v4674_v35 = vpack.i.bf16 %v4062_v26, %v4061_v60  ;;  %v2804_v56 = vpop.f32.mrb[51].mxu1  ;;  %v4093_v27 = vpop.f32.mrb[80].mxu0  ;;  %v4832_v60 = vld [vmem:[#allocation7 + $0x30] sm:$0xff]  }
 0x666   : > { %v4684_v19 = vpack.i.bf16 %v2804_v56, %v2801_v16  ;;  %v2898_v37 = vpop.f32.mrb[81].mxu0  ;;  %4151 = vmatprep.subr.bf16.mxu0 %v4832_v60  ;;  %v4833_v16 = vld [vmem:[#allocation7 + $0x38] sm:$0xff]   ;;  %4177 = vmatprep.subr.bf16.mxu1 %v4832_v60 }
 0x667   : > { %4675 = vrot.lane.b32.xlu0 %v4674_v35, %s5308_s11  ;;  %v4094_v40 = vpop.f32.mrb[82].mxu0  ;;  %4152 = vmatpush3.bf16.msra.mxu0 %v4832_v60 }
 0x668   : > { %v4679_v54 = vpack.i.bf16 %v4094_v40, %v4093_v27  ;;  %v2901_v48 = vpop.f32.mrb[83].mxu0  ;;  %4185 = vmatpush3.bf16.msra.mxu1 %v4832_v60  ;;  %4153 = vmatprep.subr.bf16.mxu0 %v4833_v16 }
 0x669   : > { %v4689_v32 = vpack.i.bf16 %v2901_v48, %v2898_v37  ;;  %4178 = vmatprep.subr.bf16.mxu1 %v4833_v16 }
 0x66b   : > { %4680 = vrot.lane.b32.xlu0 %v4679_v54, %s5307_s9  ;;  %4154 = vmatpush3.bf16.msra.mxu0 %v4833_v16 }
 0x66c   : > { %4186 = vmatpush3.bf16.msra.mxu1 %v4833_v16 }
 0x66f   : > { %4685 = vrot.lane.b32.xlu0 %v4684_v19, %s5308_s11 }
 0x672   : > { %v4065_v2 = vpop.f32.mrb[52].mxu1 }
 0x673   : > { %4690 = vrot.lane.b32.xlu0 %v4689_v32, %s5307_s9  ;;  %v2817_v6 = vpop.f32.mrb[53].mxu1 }
 0x674   : > { %v4066_v36 = vpop.f32.mrb[54].mxu1 }
 0x675   : > { %v4694_v58 = vpack.i.bf16 %v4066_v36, %v4065_v2  ;;  %v2820_v53 = vpop.f32.mrb[55].mxu1 }
 0x676   : > { %v4699_v0 = vpack.i.bf16 %v2820_v53, %v2817_v6  ;;  %v6710_v44 = vpop.f32.mrb[84].mxu0 }
 0x677   : > { %4695 = vrot.lane.b32.xlu0 %v4694_v58, %s5308_s11  ;;  %v2914_v17 = vpop.f32.mrb[85].mxu0 }
 0x678   : > { %v6713_v50 = vpop.f32.mrb[86].mxu0 }
 0x679   : > { %v4754_v20 = vpack.i.bf16 %v6713_v50, %v6710_v44  ;;  %v2917_v31 = vpop.f32.mrb[87].mxu0 }
 0x67a   : > { %v4704_v23 = vpack.i.bf16 %v2917_v31, %v2914_v17 }
 0x67b   : > { %4700 = vrot.lane.b32.xlu0 %v4699_v0, %s5308_s11 }
 0x67f   : > { %4705 = vrot.lane.b32.xlu0 %v4704_v23, %s5307_s9 }
 0x68a   : > { %v4069_v62 = vpop.f32.mrb[56].mxu1 }
 0x68b   : > { %v2833_v47 = vpop.f32.mrb[57].mxu1 }
 0x68c   : > { %v4070_v22 = vpop.f32.mrb[58].mxu1 }
 0x68d   : > { %v4709_v10 = vpack.i.bf16 %v4070_v22, %v4069_v62  ;;  %v2836_v59 = vpop.f32.mrb[59].mxu1 }
 0x68e   : > { %v4719_v38 = vpack.i.bf16 %v2836_v59, %v2833_v47  ;;  %v4101_v46 = vpop.f32.mrb[88].mxu0 }
 0x68f   : > { %v2930_v21 = vpop.f32.mrb[89].mxu0  ;;  %4710 = vrot.lane.b32.xlu1 %v4709_v10, %s5308_s11 }
 0x690   : > { %v4102_v3 = vpop.f32.mrb[90].mxu0 }
 0x691   : > { %v4714_v52 = vpack.i.bf16 %v4102_v3, %v4101_v46  ;;  %v2933_v13 = vpop.f32.mrb[91].mxu0 }
 0x692   : > { %v4724_v30 = vpack.i.bf16 %v2933_v13, %v2930_v21 }
 0x693   : > { %4715 = vrot.lane.b32.xlu1 %v4714_v52, %s5307_s9 }
 0x697   : > { %4720 = vrot.lane.b32.xlu1 %v4719_v38, %s5308_s11 }
 0x69b   : > { %4725 = vrot.lane.b32.xlu1 %v4724_v30, %s5307_s9 }
 0x69e   : > { %v4073_v15 = vpop.f32.mrb[60].mxu1 }
 0x69f   : > { %v2849_v63 = vpop.f32.mrb[61].mxu1 }
 0x6a0   : > { %v4074_v45 = vpop.f32.mrb[62].mxu1 }
 0x6a1   : > { %v4729_v28 = vpack.i.bf16 %v4074_v45, %v4073_v15  ;;  %v2852_v7 = vpop.f32.mrb[63].mxu1 }
 0x6a2   : > { %v4734_v51 = vpack.i.bf16 %v2852_v7, %v2849_v63 }
 0x6a3   : > { %4730 = vrot.lane.b32.xlu1 %v4729_v28, %s5308_s11 }
 0x6a7   : > { %4735 = vrot.lane.b32.xlu1 %v4734_v51, %s5308_s11 }
 0x6d0   : > { %v4125_v26 = vpop.f32.mrb[64].mxu1 }
 0x6d1   : > { %v2995_v35 = vpop.f32.mrb[65].mxu1 }
 0x6d2   : > { %v4126_v56 = vpop.f32.mrb[66].mxu1 }
 0x6d3   : > { %v4744_v19 = vpack.i.bf16 %v4126_v56, %v4125_v26  ;;  %v2998_v27 = vpop.f32.mrb[67].mxu1 }
 0x6d4   : > { %v4749_v37 = vpack.i.bf16 %v2998_v27, %v2995_v35 }
 0x6d5   : > { %4745 = vrot.lane.b32.xlu0 %v4744_v19, %s5306_s6 }
 0x6d8   : > { %v4129_v40 = vpop.f32.mrb[68].mxu1 }
 0x6d9   : > { %4750 = vrot.lane.b32.xlu0 %v4749_v37, %s5306_s6  ;;  %v3011_v54 = vpop.f32.mrb[69].mxu1  ;;  %v4676_v3 = vpop.permute.xlu0 %4675 }
 0x6da   : > { %v4130_v48 = vpop.f32.mrb[70].mxu1  ;;  %v4678_v45 = vunpack.i.h.bf16 %v4676_v3  ;;  %v4677_v28 = vunpack.i.l.bf16 %v4676_v3 }
 0x6db   : > { %v4784_v32 = vpack.i.bf16 %v4130_v48, %v4129_v40  ;;  %v3014_v2 = vpop.f32.mrb[71].mxu1 }
 0x6dc   : > { %v4774_v6 = vpack.i.bf16 %v3014_v2, %v3011_v54  ;;  %v3253_v43 = vsel %vm1481_vm0, %v6667_v9, %v4678_v45  ;;  %v3252_v24 = vsel %vm1481_vm0, %v6661_v41, %v4677_v28 }
 0x6dd   : > { %4755 = vrot.lane.b32.xlu0 %v4754_v20, %s5307_s9  ;;  %v4681_v52 = vpop.permute.xlu0 %4680 }
 0x6de   : > { %v4683_v51 = vunpack.i.h.bf16 %v4681_v52  ;;  %v4682_v4 = vunpack.i.l.bf16 %v4681_v52 }
 0x6e0   : > { %v4133_v36 = vpop.f32.mrb[72].mxu1  ;;  %v3270_v26 = vsel %vm3266_vm1, %v3253_v43, %v4683_v51  ;;  %v3269_v35 = vsel %vm3266_vm1, %v3252_v24, %v4682_v4 }
 0x6e1   : > { %4775 = vrot.lane.b32.xlu0 %v4774_v6, %s5306_s6  ;;  %v3027_v58 = vpop.f32.mrb[73].mxu1  ;;  %v4686_v13 = vpop.permute.xlu0 %4685 }
 0x6e2   : > { %v4134_v53 = vpop.f32.mrb[74].mxu1  ;;  %v4688_v61 = vunpack.i.h.bf16 %v4686_v13  ;;  %v4687_v8 = vunpack.i.l.bf16 %v4686_v13 }
 0x6e3   : > { %v4759_v0 = vpack.i.bf16 %v4134_v53, %v4133_v36  ;;  %v3030_v17 = vpop.f32.mrb[75].mxu1 }
 0x6e4   : > { %v4764_v31 = vpack.i.bf16 %v3030_v17, %v3027_v58  ;;  %v3251_v41 = vsel %vm1481_vm0, %v6670_v33, %v4688_v61  ;;  %v3250_v54 = vsel %vm1481_vm0, %v6664_v57, %v4687_v8 }
 0x6e5   : > { %4785 = vrot.lane.b32.xlu0 %v4784_v32, %s5306_s6  ;;  %v4691_v30 = vpop.permute.xlu0 %4690 }
 0x6e6   : > { %v4693_v56 = vunpack.i.h.bf16 %v4691_v30  ;;  %v4692_v19 = vunpack.i.l.bf16 %v4691_v30 }
 0x6e8   : > { %v4137_v23 = vpop.f32.mrb[76].mxu1  ;;  %v3268_v2 = vsel %vm3266_vm1, %v3251_v41, %v4693_v56  ;;  %v3267_v6 = vsel %vm3266_vm1, %v3250_v54, %v4692_v19 }
 0x6e9   : > { %v3043_v62 = vpop.f32.mrb[77].mxu1  ;;  %v4696_v15 = vpop.permute.xlu0 %4695 }
 0x6ea   : > { %v4138_v47 = vpop.f32.mrb[78].mxu1  ;;  %v4698_v33 = vunpack.i.h.bf16 %v4696_v15  ;;  %v4697_v57 = vunpack.i.l.bf16 %v4696_v15 }
 0x6eb   : > { %v4789_v22 = vpack.i.bf16 %v4138_v47, %v4137_v23  ;;  %v3046_v10 = vpop.f32.mrb[79].mxu1 }
 0x6ec   : > { %v4779_v59 = vpack.i.bf16 %v3046_v10, %v3043_v62 }
 0x6ed   : > { %v4701_v63 = vpop.permute.xlu0 %4700 }
 0x6ee   : > { %v4703_v17 = vunpack.i.h.bf16 %v4701_v63 }
 0x6f1   : > { %v4706_v7 = vpop.permute.xlu0 %4705 }
 0x6f2   : > { %v4708_v23 = vunpack.i.h.bf16 %v4706_v7  ;;  %v4707_v62 = vunpack.i.l.bf16 %v4706_v7 }
 0x701   : > { %v4711_v4 = vpop.permute.xlu1 %4710 }
 0x702   : > { %v4712_v8 = vunpack.i.l.bf16 %v4711_v4 }
 0x704   : > { %v3260_v56 = vsel %vm1481_vm0, %v6687_v14, %v4712_v8 }
 0x705   : > { %v4716_v43 = vpop.permute.xlu1 %4715 }
 0x708   : > { %v4105_v38 = vpop.f32.mrb[92].mxu0 }
 0x709   : > { %v2946_v46 = vpop.f32.mrb[93].mxu0  ;;  %v4721_v24 = vpop.permute.xlu1 %4720 }
 0x70a   : > { %v4106_v44 = vpop.f32.mrb[94].mxu0 }
 0x70b   : > { %v4769_v50 = vpack.i.bf16 %v4106_v44, %v4105_v38  ;;  %v2949_v20 = vpop.f32.mrb[95].mxu0 }
 0x70c   : > { %v4739_v21 = vpack.i.bf16 %v2949_v20, %v2946_v46 }
 0x70e   : > { %4740 = vrot.lane.b32.xlu1 %v4739_v21, %s5307_s9 }
 0x712   : > { %4760 = vrot.lane.b32.xlu1 %v4759_v0, %s5306_s6 }
 0x716   : > { %4765 = vrot.lane.b32.xlu1 %v4764_v31, %s5306_s6  ;;  %v4702_v31 = vunpack.i.l.bf16 %v4701_v63 }
 0x718   : > { %v3254_v10 = vsel %vm1481_vm0, %v6677_v49, %v4702_v31  ;;  %v3256_v49 = vsel %vm1481_vm0, %v6675_v55, %v4697_v57  ;;  %v4713_v55 = vunpack.i.h.bf16 %v4711_v4 }
 0x719   : > { %v3271_v44 = vsel %vm3266_vm1, %v3254_v10, %v4707_v62 }
 0x71a   : > { %4770 = vrot.lane.b32.xlu1 %v4769_v50, %s5307_s9 }
 0x71e   : > { %4780 = vrot.lane.b32.xlu1 %v4779_v59, %s5306_s6 }
 0x722   : > { %4790 = vrot.lane.b32.xlu1 %v4789_v22, %s5306_s6  ;;  %v3255_v22 = vsel %vm1481_vm0, %v6683_v42, %v4703_v17  ;;  %v3257_v42 = vsel %vm1481_vm0, %v6681_v25, %v4698_v33  ;;  %v4726_v25 = vpop.permute.xlu1 %4725 }
 0x723   : > { %v3272_v46 = vsel %vm3266_vm1, %v3255_v22, %v4708_v23 }
 0x747   : > { %v4746_v34 = vpop.permute.xlu0 %4745 }
 0x748   : > { %v4748_v60 = vunpack.i.h.bf16 %v4746_v34  ;;  %v4747_v16 = vunpack.i.l.bf16 %v4746_v34  ;;  %v4731_v34 = vpop.permute.xlu1 %4730 }
 0x74a   : > { %v3287_v27 = vsel %vm3283_vm2, %v3270_v26, %v4748_v60  ;;  %v3286_v37 = vsel %vm3283_vm2, %v3269_v35, %v4747_v16  ;;  %v4718_v16 = vunpack.i.h.bf16 %v4716_v43  ;;  %v4717_v26 = vunpack.i.l.bf16 %v4716_v43 }
 0x74b   : > { %v3301_v9 = vpack.c.bf16 %v3287_v27, %v3286_v37  ;;  %v4751_v40 = vpop.permute.xlu0 %4750  ;;  %v3261_v35 = vsel %vm1481_vm0, %v6691_v11, %v4713_v55  ;;  %v4723_v27 = vunpack.i.h.bf16 %v4721_v24  ;;  %v4722_v37 = vunpack.i.l.bf16 %v4721_v24 }
 0x74c   : > { %v4753_v48 = vunpack.i.h.bf16 %v4751_v40  ;;  %v4752_v32 = vunpack.i.l.bf16 %v4751_v40  ;;  %v4736_v61 = vpop.permute.xlu1 %4735  ;;  %v3277_v41 = vsel %vm3266_vm1, %v3260_v56, %v4717_v26  ;;  %v3278_v54 = vsel %vm3266_vm1, %v3261_v35, %v4718_v16 }
 0x74d   : > { %v3259_v14 = vsel %vm1481_vm0, %v6693_v12, %v4723_v27  ;;  %v4737_v22 = vunpack.i.l.bf16 %v4736_v61  ;;  %v4733_v12 = vunpack.i.h.bf16 %v4731_v34 }
 0x74e   : > { %v3284_v36 = vsel %vm3283_vm2, %v3267_v6, %v4752_v32  ;;  %v3285_v58 = vsel %vm3283_vm2, %v3268_v2, %v4753_v48  ;;  %v4728_v48 = vunpack.i.h.bf16 %v4726_v25  ;;  %v4727_v32 = vunpack.i.l.bf16 %v4726_v25 }
 0x74f   : > { %v4756_v53 = vpop.permute.xlu0 %4755  ;;  %v3300_v0 = vpack.c.bf16 %v3285_v58, %v3284_v36  ;;  %v3258_v58 = vsel %vm1481_vm0, %v6689_v1, %v4722_v37  ;;  %v4732_v1 = vunpack.i.l.bf16 %v4731_v34 }
 0x750   : > { %v4758_v50 = vunpack.i.h.bf16 %v4756_v53  ;;  %v4757_v20 = vunpack.i.l.bf16 %v4756_v53  ;;  %v3275_v17 = vsel %vm3266_vm1, %v3258_v58, %v4727_v32  ;;  %v3276_v31 = vsel %vm3266_vm1, %v3259_v14, %v4728_v48 }
 0x751   : > { %4155 = vmatprep.mubr.bf16.mxu0 %v3300_v0 }
 0x752   : > { %4156 = vmatmul.mubr.bf16.vlgmr.msra.gmra.mrb[96].mxu0 %v3301_v9  ;;  %v3274_v63 = vsel %vm3266_vm1, %v3257_v42, %v4758_v50  ;;  %v3273_v45 = vsel %vm3266_vm1, %v3256_v49, %v4757_v20 }
 0x753   : > { %v4776_v47 = vpop.permute.xlu0 %4775 }
 0x754   : > { %v4778_v59 = vunpack.i.h.bf16 %v4776_v47  ;;  %v4777_v38 = vunpack.i.l.bf16 %v4776_v47  ;;  %v4738_v47 = vunpack.i.h.bf16 %v4736_v61 }
 0x756   : > { %v3288_v21 = vsel %vm3283_vm2, %v3271_v44, %v4777_v38  ;;  %v3289_v3 = vsel %vm3283_vm2, %v3272_v46, %v4778_v59  ;;  %v3263_v46 = vsel %vm1481_vm0, %v6702_v29, %v4738_v47  ;;  %v3262_v44 = vsel %vm1481_vm0, %v6698_v18, %v4737_v22 }
 0x757   : > { %v4786_v52 = vpop.permute.xlu0 %4785  ;;  %v3302_v13 = vpack.c.bf16 %v3289_v3, %v3288_v21  ;;  %v3265_v29 = vsel %vm1481_vm0, %v6700_v39, %v4733_v12  ;;  %v3264_v18 = vsel %vm1481_vm0, %v6696_v5, %v4732_v1 }
 0x758   : > { %v4788_v30 = vunpack.i.h.bf16 %v4786_v52  ;;  %v4787_v15 = vunpack.i.l.bf16 %v4786_v52 }
 0x759   : > { %4159 = vmatprep.mubr.bf16.mxu0 %v3302_v13 }
 0x75a   : > { %v3290_v28 = vsel %vm3283_vm2, %v3273_v45, %v4787_v15  ;;  %v3291_v7 = vsel %vm3283_vm2, %v3274_v63, %v4788_v30 }
 0x75b   : > { %v3303_v51 = vpack.c.bf16 %v3291_v7, %v3290_v28 }
 0x75d   : > { %4160 = vmatmul.mubr.bf16.gmra.mrb[100].mxu0 %v3303_v51 }
 0x780   : > { %v4741_v60 = vpop.permute.xlu1 %4740 }
 0x781   : > { %v4743_v10 = vunpack.i.h.bf16 %v4741_v60  ;;  %v4742_v59 = vunpack.i.l.bf16 %v4741_v60 }
 0x783   : > { %v3279_v21 = vsel %vm3266_vm1, %v3262_v44, %v4742_v59  ;;  %v3280_v3 = vsel %vm3266_vm1, %v3263_v46, %v4743_v10 }
 0x784   : > { %v4761_v19 = vpop.permute.xlu1 %4760 }
 0x785   : > { %v4763_v9 = vunpack.i.h.bf16 %v4761_v19  ;;  %v4762_v40 = vunpack.i.l.bf16 %v4761_v19 }
 0x787   : > { %v3295_v2 = vsel %vm3283_vm2, %v3278_v54, %v4763_v9  ;;  %v3294_v6 = vsel %vm3283_vm2, %v3277_v41, %v4762_v40 }
 0x788   : > { %v3305_v36 = vpack.c.bf16 %v3295_v2, %v3294_v6  ;;  %v4766_v11 = vpop.permute.xlu1 %4765 }
 0x789   : > { %v4768_v53 = vunpack.i.h.bf16 %v4766_v11  ;;  %v4767_v0 = vunpack.i.l.bf16 %v4766_v11 }
 0x78b   : > { %v3292_v23 = vsel %vm3283_vm2, %v3275_v17, %v4767_v0  ;;  %v3293_v62 = vsel %vm3283_vm2, %v3276_v31, %v4768_v53 }
 0x78c   : > { %v4771_v33 = vpop.permute.xlu1 %4770  ;;  %v3304_v57 = vpack.c.bf16 %v3293_v62, %v3292_v23 }
 0x78d   : > { %v4773_v52 = vunpack.i.h.bf16 %v4771_v33  ;;  %v4772_v13 = vunpack.i.l.bf16 %v4771_v33 }
 0x78e   : > { %4163 = vmatprep.mubr.bf16.mxu1 %v3304_v57 }
 0x78f   : > { %4164 = vmatmul.mubr.bf16.vlgmr.msra.gmra.mrb[80].mxu1 %v3305_v36  ;;  %v3282_v28 = vsel %vm3266_vm1, %v3265_v29, %v4773_v52  ;;  %v3281_v7 = vsel %vm3266_vm1, %v3264_v18, %v4772_v13 }
 0x790   : > { %v4781_v38 = vpop.permute.xlu1 %4780 }
 0x791   : > { %v4783_v50 = vunpack.i.h.bf16 %v4781_v38  ;;  %v4782_v20 = vunpack.i.l.bf16 %v4781_v38 }
 0x793   : > { %v3296_v42 = vsel %vm3283_vm2, %v3279_v21, %v4782_v20  ;;  %v3297_v49 = vsel %vm3283_vm2, %v3280_v3, %v4783_v50 }
 0x794   : > { %v4791_v30 = vpop.permute.xlu1 %4790  ;;  %v3306_v15 = vpack.c.bf16 %v3297_v49, %v3296_v42 }
 0x795   : > { %v4793_v63 = vunpack.i.h.bf16 %v4791_v30  ;;  %v4792_v45 = vunpack.i.l.bf16 %v4791_v30 }
 0x796   : > { %4167 = vmatprep.mubr.bf16.mxu1 %v3306_v15 }
 0x797   : > { %v3298_v51 = vsel %vm3283_vm2, %v3281_v7, %v4792_v45  ;;  %v3299_v4 = vsel %vm3283_vm2, %v3282_v28, %v4793_v63 }
 0x798   : > { %v3307_v43 = vpack.c.bf16 %v3299_v4, %v3298_v51 }
 0x79a   : > { %4168 = vmatmul.mubr.bf16.gmra.mrb[84].mxu1 %v3307_v43 }
 0x825   : > { %v4157_v24 = vpop.f32.mrb[96].mxu0 }
 0x826   : > { %3471 = vst [vmem:[%s6805_s8 + $0x10] sm:$0xff] %v4157_v24  ;;  %v3406_v5 = vpop.f32.mrb[97].mxu0 }
 0x827   : > { %3469 = vst [vmem:[%s6805_s8] sm:$0xff] %v3406_v5  ;;  %v4158_v39 = vpop.f32.mrb[98].mxu0 }
 0x828   : > { %3472 = vst [vmem:[%s6805_s8 + $0x18] sm:$0xff] %v4158_v39  ;;  %v3409_v25 = vpop.f32.mrb[99].mxu0 }
 0x829   : > { %3470 = vst [vmem:[%s6805_s8 + $0x8] sm:$0xff] %v3409_v25 }
 0x830   : > { %v4161_v34 = vpop.f32.mrb[100].mxu0 }
 0x831   : > { %3475 = vst [vmem:[%s6805_s8 + $0x30] sm:$0xff] %v4161_v34  ;;  %v3422_v61 = vpop.f32.mrb[101].mxu0 }
 0x832   : > { %3473 = vst [vmem:[%s6805_s8 + $0x20] sm:$0xff] %v3422_v61  ;;  %v4162_v55 = vpop.f32.mrb[102].mxu0 }
 0x833   : > { %3476 = vst [vmem:[%s6805_s8 + $0x38] sm:$0xff] %v4162_v55  ;;  %v3425_v8 = vpop.f32.mrb[103].mxu0 }
 0x834   : > { %3474 = vst [vmem:[%s6805_s8 + $0x28] sm:$0xff] %v3425_v8 }
 0x862   : > { %v4165_v60 = vpop.f32.mrb[80].mxu1 }
 0x863   : > { %3479 = vst [vmem:[%s6805_s8 + $0x50] sm:$0xff] %v4165_v60  ;;  %v3438_v16 = vpop.f32.mrb[81].mxu1 }
 0x864   : > { %3477 = vst [vmem:[%s6805_s8 + $0x40] sm:$0xff] %v3438_v16  ;;  %v4166_v26 = vpop.f32.mrb[82].mxu1 }
 0x865   : > { %3480 = vst [vmem:[%s6805_s8 + $0x58] sm:$0xff] %v4166_v26  ;;  %v3441_v35 = vpop.f32.mrb[83].mxu1 }
 0x866   : > { %3478 = vst [vmem:[%s6805_s8 + $0x48] sm:$0xff] %v3441_v35 }
 0x86d   : > { %v4169_v56 = vpop.f32.mrb[84].mxu1 }
 0x86e   : > { %3483 = vst [vmem:[%s6805_s8 + $0x70] sm:$0xff] %v4169_v56  ;;  %v3454_v19 = vpop.f32.mrb[85].mxu1 }
 0x86f   : > { %3481 = vst [vmem:[%s6805_s8 + $0x60] sm:$0xff] %v3454_v19  ;;  %v4170_v27 = vpop.f32.mrb[86].mxu1 }
 0x870   : > { %3484 = vst [vmem:[%s6805_s8 + $0x78] sm:$0xff] %v4170_v27  ;;  %v3457_v37 = vpop.f32.mrb[87].mxu1 }
 0x871   : > { %3482 = vst [vmem:[%s6805_s8 + $0x68] sm:$0xff] %v3457_v37 }
 0x872   : > { %5221 = shalt.err (!%p5218_p11)
}
 0x873   : > { %s5222_s25 = scalar_lea.hbm %s6825_s15, 2048  ;;  %s5226_s11 = scalar_lea.hbm %s6884_s5, 4096 }
 0x874   : > { %p5223_p0 = scmp.ne.s32.totalorder %s6825_s15, %s5222_s25  ;;  %p5227_p6 = scmp.lt.u32.totalorder %s6825_s15, %s6884_s5 }
 0x875   : > { %p5228_p7 = scmp.lt.u32.totalorder %s5226_s11, %s5222_s25  ;;  %p5230_p8 = scmp.lt.u32.totalorder %s5222_s25, %s6825_s15 }
 0x876   : > { %p5224_p4 = pnand %p5223_p0, %p7049_p12 }
 0x877   : > { %p5229_p2 = por %p5228_p7, %p5227_p6 }
 0x878   : > { %p5225_p13 = pneg %p5224_p4 }
 0x879   : > { %p5231_p1 = por %p5230_p8, %p5229_p2 }
 0x87b   : > { %p5232_p10 = pnand %p5231_p1, %p5225_p13 }
 0x87d   : > { %5235 = shalt.err (!%p5232_p10)
}
 0x87e   : > { %s5310_s16 = smov 128   ;;  %s5311_s7 = smov 8  }
 0x87f   : > { %4229 = dma.vmem_to_hbm [thread:$0]  (%p7049_p12), %s6827_s13, 2048, %s6825_s15, %s3486_s21, %s5310_s16, %s5310_s16, %s5311_s7  }
 0x880 PF: > { %s3516_s27 = sand.u32 1, %s5274_s18   ;;  %p7050_p3 = scmp.ne.s32.totalorder %s6942_s29, 0 }
 0x881   : > { %p7051_p5 = scmp.ge.s32.totalorder %s5294_s23, 2  ;;  %s3517_s26 = scalar_lea.sflag [#allocation4], %s3516_s27 }
 0x883   : > { %p4243_p9 = pnand %p7051_p5, %p7050_p3 }
 0x885   : > { %5269 = dma.done.wait (!%p4243_p9), %s3517_s26, 2048  }
 0x886   : > { %5271 = vsyncadd (!%p4243_p9), %s3517_s26, 4294965248  ;;  %s22_s23 = sadd.s32 1, %s5294_s23   ;;  %s7052_s18 = smov %s5278_s19 }
 0x887   : > { %p19_p11 = scmp.ge.s32.totalorder %s22_s23, 4   ;;  %s7053_s19 = smov %s5282_s20 }
 0x888   : > { %s7054_s20 = smov %s5484_s17  ;;  %s7055_s21 = smov %s5290_s22 }
 0x889   : > { %s7056_s22 = smov %s7058_s12  ;;  %21 = sbr.rel (!%p19_p11) target bundleno = 7 (0x7), region = 93 }
 0x890   :  { %3522 = vsyncpa [#allocation3], 1 }
 0x891   :  { %3524 = vsyncpa [#allocation3 + $0x1], 1 }
 0x892   :  { %3525 = vsyncpa [#allocation6], 1 }
 0x893   :  { %3526 = vsyncpa [#allocation4], 1 }
 0x894   :  { %3528 = vsyncpa [#allocation4 + $0x1], 1 }

</bundles_post_ra>
